<compile_context>
chip_gen: v6e
topology: v6e:2x2x1
jax: 0.10.0
libtpu: 0.0.40
codegen_flags: <defaults>
</compile_context>

<pallas_src>
from functools import partial

import jax
import jax.numpy as jnp
from jax import lax
from jax.experimental import pallas as pl
from jax.experimental.pallas import tpu as pltpu

_PAR = pltpu.CompilerParams(dimension_semantics=("parallel",))


# ----------------------------------------------------------------------------
# in-kernel helpers
# ----------------------------------------------------------------------------


def _leaky(x):
    return jnp.where(x >= 0.0, x, 0.2 * x)


def _sigmoid(x):
    # exp + approx reciprocal both land on the EUP slot
    return pl.reciprocal(1.0 + jnp.exp(-x), approx=True)


def _conv_reflect_cf(x, w, col, *, H, W, k):
    """Reflection-padded k*k cross-correlation, channel-first flattened layout.

    x   : (Cin, H*W) bf16 activations (row-major flattened spatial)
    w   : (Cout, k*k*Cin) bf16 weight, K index = (di*k + dj)*Cin + cin
    col : (1, H*W) int32 image-column index of every flattened pixel
    Returns (Cout, H*W) f32 via ONE MXU matmul (K = k*k*Cin, N = H*W dense).
    """
    p = (k - 1) // 2
    cin, HW = x.shape
    z = jnp.zeros((cin, p), x.dtype)
    # vertically reflection-padded flattened tile, with p guard lanes each side
    rows = [z]
    for r in range(p, 0, -1):                 # top reflected rows: p, ..., 1
        rows.append(x[:, r * W:(r + 1) * W])
    rows.append(x)
    for r in range(H - 2, H - 2 - p, -1):     # bottom reflected rows: H-2, ...
        rows.append(x[:, r * W:(r + 1) * W])
    rows.append(z)
    xe = jnp.concatenate(rows, axis=1)        # (Cin, (H+2p)*W + 2p)

    wins = []
    for di in range(k):
        s0 = p + di * W
        for dj in range(k):
            d = dj - p
            win = xe[:, s0 + d:s0 + d + HW]
            # fix the horizontally-reflected image-border columns
            for j0 in range(max(0, -d)):      # left border, output cols 0..-d-1
                dpr = -2 * j0 - d
                src = xe[:, s0 + dpr:s0 + dpr + HW]
                win = jnp.where(col == j0, src, win)
            for j0 in range(max(0, d)):       # right border, output cols W-1..
                dpr = 2 * j0 - d
                src = xe[:, s0 + dpr:s0 + dpr + HW]
                win = jnp.where(col == (W - 1 - j0), src, win)
            wins.append(win)
    slab = jnp.concatenate(wins, axis=0)      # (k*k*Cin, H*W) bf16
    return jnp.dot(w, slab, preferred_element_type=jnp.float32)


# ----------------------------------------------------------------------------
# kernels
# ----------------------------------------------------------------------------


def _struct_stim_kernel(up_ref, skip_ref,
                        w1_ref, s1_ref, t1_ref, w2_ref, s2_ref, t2_ref,
                        wsq_ref, wfq_ref, wsp_ref,
                        wfu_ref, sfu_ref, tfu_ref,
                        wb1_ref, sb1_ref, tb1_ref,
                        wb2_ref, sb2_ref, tb2_ref,
                        xs_ref, x1_ref, xs2_ref, *, k, H, W):
    HW = H * W
    col = lax.broadcasted_iota(jnp.int32, (1, HW), 1) % W

    # --- structure stream: cat(up, skip) -> [bns0-folded 3x3 conv]+bn1+lrelu
    #     -> 1x1 conv + bn2 + lrelu -------------------------------------------
    cat = jnp.concatenate([up_ref[0], skip_ref[0]], axis=0).astype(jnp.bfloat16)
    y = _conv_reflect_cf(cat, w1_ref[...], col, H=H, W=W, k=k)
    y = _leaky(y * s1_ref[...] + t1_ref[...])
    xs = jnp.dot(w2_ref[...], y.astype(jnp.bfloat16),
                 preferred_element_type=jnp.float32)
    xs = _leaky(xs * s2_ref[...] + t2_ref[...])                      # (C, HW)
    xs_ref[0] = xs

    # --- SplitChannelAttention: GAP + squeeze + two expand FCs + sigmoids ---
    m = jnp.mean(xs, axis=1, keepdims=True)                          # (C, 1)
    s = _leaky(jnp.sum(m * wsq_ref[...], axis=0, keepdims=True))     # (1, Cr)
    att_f = _sigmoid(jnp.sum(s * wfq_ref[...], axis=1, keepdims=True))  # (C,1)
    att_s = _sigmoid(jnp.sum(s * wsp_ref[...], axis=1, keepdims=True))  # (C,1)

    # --- FourierUnit conv1 (1x1) on the frequency-gated path ----------------
    xf = (xs * att_f).astype(jnp.bfloat16)
    x1 = jnp.dot(wfu_ref[...], xf, preferred_element_type=jnp.float32)
    x1_ref[0] = _leaky(x1 * sfu_ref[...] + tfu_ref[...])             # (Cs, HW)

    # --- spatial branch: gated 3x3 conv + bn + lrelu -> 3x3 conv + bn + lrelu
    xg = (xs * att_s).astype(jnp.bfloat16)
    y1 = _conv_reflect_cf(xg, wb1_ref[...], col, H=H, W=W, k=k)
    y1 = _leaky(y1 * sb1_ref[...] + tb1_ref[...])
    y2 = _conv_reflect_cf(y1.astype(jnp.bfloat16), wb2_ref[...], col,
                          H=H, W=W, k=k)
    xs2_ref[0] = _leaky(y2 * sb2_ref[...] + tb2_ref[...])            # (Cs, HW)


def _freq_kernel(re_ref, im_ref, w_ref, s_ref, t_ref, ore_ref, oim_ref, *, cs):
    """FourierUnit conv2 (1x1) + bn + lrelu on [real | imag] channel halves."""
    x = jnp.concatenate([re_ref[0], im_ref[0]], axis=0)              # (2Cs, M)
    y = jnp.dot(w_ref[...], x, preferred_element_type=jnp.float32)   # f32 MXU
    y = _leaky(y * s_ref[...] + t_ref[...])
    ore_ref[0] = y[:cs]
    oim_ref[0] = y[cs:]


def _texture_kernel(up_ref, skip_ref, fir_ref, x1_ref, xs2_ref,
                    w1_ref, s1_ref, t1_ref, w2_ref, s2_ref, t2_ref,
                    xt_ref, *, k, H, W):
    HW = H * W
    col = lax.broadcasted_iota(jnp.int32, (1, HW), 1) % W
    # STIM skip = irfft + x1 (FourierUnit residual) + spatial_branch2
    stim_skip = fir_ref[0] + x1_ref[0] + xs2_ref[0]                  # (Cs, HW)
    cat = jnp.concatenate([up_ref[0], skip_ref[0], stim_skip],
                          axis=0).astype(jnp.bfloat16)
    y = _conv_reflect_cf(cat, w1_ref[...], col, H=H, W=W, k=k)
    y = _leaky(y * s1_ref[...] + t1_ref[...])
    xt = jnp.dot(w2_ref[...], y.astype(jnp.bfloat16),
                 preferred_element_type=jnp.float32)
    xt_ref[0] = _leaky(xt * s2_ref[...] + t2_ref[...])


# ----------------------------------------------------------------------------
# pallas_call wrappers (grid over batch, "parallel" -> v7x megacore sharding)
# ----------------------------------------------------------------------------


def _wspec(a):
    return pl.BlockSpec(a.shape, lambda b: (0,) * a.ndim)


def struct_stim_call(up, skip, pp, *, k, H, W):
    B = up.shape[0]
    HW = H * W
    w1, s1, t1, w2, s2, t2 = pp["stream_s"]
    wsq, wfq, wsp = pp["sca"]
    wfu, sfu, tfu = pp["fu1"]
    wb1, sb1, tb1 = pp["sb1"]
    wb2, sb2, tb2 = pp["sb2"]
    C, Cs = w2.shape[0], wfu.shape[0]

    def bspec(c):
        return pl.BlockSpec((1, c, HW), lambda b: (b, 0, 0))

    return pl.pallas_call(
        partial(_struct_stim_kernel, k=k, H=H, W=W),
        out_shape=(jax.ShapeDtypeStruct((B, C, HW), jnp.float32),
                   jax.ShapeDtypeStruct((B, Cs, HW), jnp.float32),
                   jax.ShapeDtypeStruct((B, Cs, HW), jnp.float32)),
        grid=(B,),
        in_specs=[bspec(up.shape[1]), bspec(skip.shape[1]),
                  _wspec(w1), _wspec(s1), _wspec(t1),
                  _wspec(w2), _wspec(s2), _wspec(t2),
                  _wspec(wsq), _wspec(wfq), _wspec(wsp),
                  _wspec(wfu), _wspec(sfu), _wspec(tfu),
                  _wspec(wb1), _wspec(sb1), _wspec(tb1),
                  _wspec(wb2), _wspec(sb2), _wspec(tb2)],
        out_specs=(bspec(C), bspec(Cs), bspec(Cs)),
        compiler_params=_PAR,
    )(up, skip, w1, s1, t1, w2, s2, t2, wsq, wfq, wsp,
      wfu, sfu, tfu, wb1, sb1, tb1, wb2, sb2, tb2)


def freq_call(re, im, p):
    w, s, t = p
    B, Cs, M = re.shape
    bspec = pl.BlockSpec((1, Cs, M), lambda b: (b, 0, 0))
    return pl.pallas_call(
        partial(_freq_kernel, cs=Cs),
        out_shape=(jax.ShapeDtypeStruct((B, Cs, M), jnp.float32),
                   jax.ShapeDtypeStruct((B, Cs, M), jnp.float32)),
        grid=(B,),
        in_specs=[bspec, bspec, _wspec(w), _wspec(s), _wspec(t)],
        out_specs=(bspec, bspec),
        compiler_params=_PAR,
    )(re, im, w, s, t)


def texture_call(up, skip, fsp, x1, xs2, pp, *, k, H, W):
    w1, s1, t1, w2, s2, t2 = pp["stream_t"]
    B = up.shape[0]
    HW = H * W
    C = w2.shape[0]

    def bspec(c):
        return pl.BlockSpec((1, c, HW), lambda b: (b, 0, 0))

    return pl.pallas_call(
        partial(_texture_kernel, k=k, H=H, W=W),
        out_shape=jax.ShapeDtypeStruct((B, C, HW), jnp.float32),
        grid=(B,),
        in_specs=[bspec(up.shape[1]), bspec(skip.shape[1]), bspec(fsp.shape[1]),
                  bspec(x1.shape[1]), bspec(xs2.shape[1]),
                  _wspec(w1), _wspec(s1), _wspec(t1),
                  _wspec(w2), _wspec(s2), _wspec(t2)],
        out_specs=bspec(C),
        compiler_params=_PAR,
    )(up, skip, fsp, x1, xs2, w1, s1, t1, w2, s2, t2)


# ----------------------------------------------------------------------------
# decoder forward (host arrays are NCHW, like the PyTorch module)
# ----------------------------------------------------------------------------


def decoder_forward(xs_up, xs_skip, xt_up, xt_skip, pp, ksz):
    B, Csk, H, W = xs_skip.shape
    HW = H * W

    def up2(x):  # nearest-neighbour 2x upsample on NCHW
        return jnp.repeat(jnp.repeat(x, 2, axis=2), 2, axis=3)

    # K1: structure stream + SCA + FourierUnit conv1 + spatial branches
    #     (concat + reflection padding live entirely in VMEM/vregs)
    xs_f, x1_f, xs2_f = struct_stim_call(
        up2(xs_up).reshape(B, -1, HW), xs_skip.reshape(B, Csk, HW),
        pp, k=ksz, H=H, W=W)
    C, Cs = xs_f.shape[1], x1_f.shape[1]

    # FourierUnit frequency path.
    # TODO(synk): rfftn/irfftn (norm='ortho') have no Pallas primitive; jnp.fft glue.
    x1 = x1_f.reshape(B, Cs, H, W)
    f = jnp.fft.rfftn(x1, axes=(2, 3), norm="ortho")                 # (B,Cs,H,Wf)
    Wf = f.shape[3]
    re = jnp.real(f).reshape(B, Cs, H * Wf)
    im = jnp.imag(f).reshape(B, Cs, H * Wf)
    yre, yim = freq_call(re, im, pp["fu2"])                          # K2
    yc = lax.complex(yre.reshape(B, Cs, H, Wf), yim.reshape(B, Cs, H, Wf))
    fsp = jnp.fft.irfftn(yc, s=(H, W), axes=(2, 3), norm="ortho")
    fsp = fsp.astype(jnp.float32).reshape(B, Cs, HW)

    # K3: skip = irfft + x1 + spatial_branch2, fused with the texture stream
    xt_f = texture_call(up2(xt_up).reshape(B, -1, HW),
                        xt_skip.reshape(B, Csk, HW),
                        fsp, x1_f, xs2_f, pp, k=ksz, H=H, W=W)

    return xs_f.reshape(B, C, H, W), xt_f.reshape(B, C, H, W)


# ----------------------------------------------------------------------------
# deterministic raw parameters (torch layout) + build-time prepacking
# ----------------------------------------------------------------------------


def build_raw_params(key, in_up, in_skip, out_ch, ksz, need_bias=True):
    keys = iter(jax.random.split(key, 64))

    def nk():
        return next(keys)

    def make_conv(cin, cout, k, bias):
        k1, k2 = jax.random.split(nk(), 2)
        fan = float(cin * k * k)
        w = jax.random.normal(k1, (cout, cin, k, k), jnp.float32) / (fan ** 0.5)
        b = (0.05 * jax.random.normal(k2, (cout,), jnp.float32)
             if bias else jnp.zeros((cout,), jnp.float32))
        return w, b

    def make_bn(c):
        k1, k2, k3, k4 = jax.random.split(nk(), 4)
        gamma = 1.0 + 0.1 * jax.random.normal(k1, (c,), jnp.float32)
        beta = 0.1 * jax.random.normal(k2, (c,), jnp.float32)
        mean = 0.1 * jax.random.normal(k3, (c,), jnp.float32)
        var = 1.0 + 0.1 * jnp.abs(jax.random.normal(k4, (c,), jnp.float32))
        scale = gamma / jnp.sqrt(var + 1e-5)
        shift = beta - mean * scale
        return scale, shift

    r = {}
    c_cat_s = in_up + in_skip
    c_cat_t = in_up + 2 * in_skip
    r["bns0"] = make_bn(c_cat_s)
    r["convs1"] = make_conv(c_cat_s, out_ch, ksz, need_bias)
    r["bns1"] = make_bn(out_ch)
    r["convs2"] = make_conv(out_ch, out_ch, 1, need_bias)
    r["bns2"] = make_bn(out_ch)
    r["bnt0"] = make_bn(c_cat_t)
    r["convt1"] = make_conv(c_cat_t, out_ch, ksz, need_bias)
    r["bnt1"] = make_bn(out_ch)
    r["convt2"] = make_conv(out_ch, out_ch, 1, need_bias)
    r["bnt2"] = make_bn(out_ch)
    # STIM(in_channel=out_ch, out_channel=in_skip), SCA ratio = 16
    cr = max(out_ch // 16, 1)
    r["sca_sq"] = make_conv(out_ch, cr, 1, False)[0]        # (Cr, C, 1, 1)
    r["sca_freq"] = make_conv(cr, out_ch, 1, False)[0]      # (C, Cr, 1, 1)
    r["sca_spat"] = make_conv(cr, out_ch, 1, False)[0]
    r["fu_conv1"] = make_conv(out_ch, in_skip, 1, False)[0]
    r["fu_bn1"] = make_bn(in_skip)
    r["fu_conv2"] = make_conv(in_skip * 2, in_skip * 2, 1, False)[0]
    r["fu_bn2"] = make_bn(in_skip * 2)
    r["sb1"] = make_conv(out_ch, out_ch, ksz, need_bias)
    r["sb1_bn"] = make_bn(out_ch)
    r["sb2"] = make_conv(out_ch, in_skip, ksz, need_bias)
    r["sb2_bn"] = make_bn(in_skip)
    return r


def prepack_params(r):
    """Fold BN affine + conv bias (+ optional preceding BN) into kernel-ready
    (bf16 weight, f32 scale, f32 shift) tuples; pre-transpose every weight for
    the channel-first single-matmul layout.  Runs once at build time."""

    def fold(bn, b):
        sc, sh = bn
        return (sc.reshape(-1, 1).astype(jnp.float32),
                (sh + sc * b).reshape(-1, 1).astype(jnp.float32))

    def conv3_pack(conv, bn, pre_bn=None):
        w, b = conv                               # (Cout, Cin, k, k)
        cout, cin, k, _ = w.shape
        if pre_bn is not None:                    # conv(BN(x)) folding
            ps, pt = pre_bn
            b = b + jnp.sum(w * pt[None, :, None, None], axis=(1, 2, 3))
            w = w * ps[None, :, None, None]
        wt = jnp.transpose(w, (0, 2, 3, 1)).reshape(cout, k * k * cin)
        sc, sh = fold(bn, b)
        return wt.astype(jnp.bfloat16), sc, sh

    def conv1_pack(w, b, bn, dtype=jnp.bfloat16):
        cout = w.shape[0]
        wt = w.reshape(cout, -1)                  # (Cout, Cin)
        sc, sh = fold(bn, b)
        return wt.astype(dtype), sc, sh

    pp = {}
    pp["stream_s"] = (conv3_pack(r["convs1"], r["bns1"], pre_bn=r["bns0"])
                      + conv1_pack(*r["convs2"], r["bns2"]))
    pp["stream_t"] = (conv3_pack(r["convt1"], r["bnt1"], pre_bn=r["bnt0"])
                      + conv1_pack(*r["convt2"], r["bnt2"]))

    cr, c = r["sca_sq"].shape[0], r["sca_sq"].shape[1]
    pp["sca"] = (r["sca_sq"].reshape(cr, c).T.astype(jnp.float32),   # (C, Cr)
                 r["sca_freq"].reshape(c, cr).astype(jnp.float32),   # (C, Cr)
                 r["sca_spat"].reshape(c, cr).astype(jnp.float32))   # (C, Cr)
    cs = r["fu_conv1"].shape[0]
    pp["fu1"] = conv1_pack(r["fu_conv1"], jnp.zeros((cs,), jnp.float32),
                           r["fu_bn1"])
    pp["sb1"] = conv3_pack(r["sb1"], r["sb1_bn"])
    pp["sb2"] = conv3_pack(r["sb2"], r["sb2_bn"])

    # FourierUnit conv2: permute channels from torch's interleaved ordering
    # (c*2 + {re, im}) to [all real | all imag] halves on both input and output
    # so the kernel consumes/produces separate real/imag planes (f32 to keep
    # the FFT dynamic range).
    w2 = r["fu_conv2"].reshape(2 * cs, 2 * cs)
    perm = jnp.concatenate([jnp.arange(0, 2 * cs, 2), jnp.arange(1, 2 * cs, 2)])
    w2p = w2[perm][:, perm]
    sc2, sh2 = r["fu_bn2"]
    pp["fu2"] = (w2p.astype(jnp.float32),
                 sc2[perm].reshape(-1, 1).astype(jnp.float32),
                 sh2[perm].reshape(-1, 1).astype(jnp.float32))
    return pp


# ----------------------------------------------------------------------------


if __name__ == "__main__":
    B = 2
    IN_UP = 8        # in_channel_up
    IN_SKIP = 8      # in_channel_skip
    OUT_CH = 16      # out_channel (SCA ratio=16 -> reduced channel = 1)
    KSZ = 3          # kernel_size
    H = W = 16       # skip resolution; up inputs are 8x8 -> 2x upsampled
    HU = WU = 8

    key = jax.random.PRNGKey(0)
    kp, k1, k2, k3, k4 = jax.random.split(key, 5)
    raw = build_raw_params(kp, IN_UP, IN_SKIP, OUT_CH, KSZ, need_bias=True)
    pp = prepack_params(raw)

    xs_up = jax.random.normal(k1, (B, IN_UP, HU, WU), jnp.float32)
    xs_skip = jax.random.normal(k2, (B, IN_SKIP, H, W), jnp.float32)
    xt_up = jax.random.normal(k3, (B, IN_UP, HU, WU), jnp.float32)
    xt_skip = jax.random.normal(k4, (B, IN_SKIP, H, W), jnp.float32)

    fwd = jax.jit(partial(decoder_forward, ksz=KSZ))
    xs_out, xt_out = fwd(xs_up, xs_skip, xt_up, xt_skip, pp)
    jax.block_until_ready((xs_out, xt_out))

    assert xs_out.shape == (B, OUT_CH, H, W), xs_out.shape
    assert xt_out.shape == (B, OUT_CH, H, W), xt_out.shape
    assert jnp.all(jnp.isfinite(xs_out)) and jnp.all(jnp.isfinite(xt_out))
    print("KERNEL_OK")
</pallas_src>

<mosaic_0001>
module attributes {stable_mosaic.version = 11 : i64} {
  func.func @_struct_stim_kernel(%arg0: i32, %arg1: memref<1x8x256xf32, #tpu.memory_space<vmem>>, %arg2: memref<1x8x256xf32, #tpu.memory_space<vmem>>, %arg3: memref<16x144xbf16, #tpu.memory_space<vmem>>, %arg4: memref<16x1xf32, #tpu.memory_space<vmem>>, %arg5: memref<16x1xf32, #tpu.memory_space<vmem>>, %arg6: memref<16x16xbf16, #tpu.memory_space<vmem>>, %arg7: memref<16x1xf32, #tpu.memory_space<vmem>>, %arg8: memref<16x1xf32, #tpu.memory_space<vmem>>, %arg9: memref<16x1xf32, #tpu.memory_space<vmem>>, %arg10: memref<16x1xf32, #tpu.memory_space<vmem>>, %arg11: memref<16x1xf32, #tpu.memory_space<vmem>>, %arg12: memref<8x16xbf16, #tpu.memory_space<vmem>>, %arg13: memref<8x1xf32, #tpu.memory_space<vmem>>, %arg14: memref<8x1xf32, #tpu.memory_space<vmem>>, %arg15: memref<16x144xbf16, #tpu.memory_space<vmem>>, %arg16: memref<16x1xf32, #tpu.memory_space<vmem>>, %arg17: memref<16x1xf32, #tpu.memory_space<vmem>>, %arg18: memref<8x144xbf16, #tpu.memory_space<vmem>>, %arg19: memref<8x1xf32, #tpu.memory_space<vmem>>, %arg20: memref<8x1xf32, #tpu.memory_space<vmem>>, %arg21: memref<1x16x256xf32, #tpu.memory_space<vmem>>, %arg22: memref<1x8x256xf32, #tpu.memory_space<vmem>>, %arg23: memref<1x8x256xf32, #tpu.memory_space<vmem>>) attributes {dimension_semantics = [#tpu.dimension_semantics<parallel>], iteration_bounds = array<i64: 2>, scalar_prefetch = 0 : i64, scratch_operands = 0 : i64, tpu.core_type = #tpu.core_type<tc>, window_params = [{transform_indices = @transform_0, window_bounds = array<i64: 1, 8, 256>}, {transform_indices = @transform_1, window_bounds = array<i64: 1, 8, 256>}, {pipeline_mode = #tpu.pipeline_mode<synchronous>, transform_indices = @transform_2, window_bounds = array<i64: 16, 144>}, {pipeline_mode = #tpu.pipeline_mode<synchronous>, transform_indices = @transform_3, window_bounds = array<i64: 16, 1>}, {pipeline_mode = #tpu.pipeline_mode<synchronous>, transform_indices = @transform_4, window_bounds = array<i64: 16, 1>}, {pipeline_mode = #tpu.pipeline_mode<synchronous>, transform_indices = @transform_5, window_bounds = array<i64: 16, 16>}, {pipeline_mode = #tpu.pipeline_mode<synchronous>, transform_indices = @transform_6, window_bounds = array<i64: 16, 1>}, {pipeline_mode = #tpu.pipeline_mode<synchronous>, transform_indices = @transform_7, window_bounds = array<i64: 16, 1>}, {pipeline_mode = #tpu.pipeline_mode<synchronous>, transform_indices = @transform_8, window_bounds = array<i64: 16, 1>}, {pipeline_mode = #tpu.pipeline_mode<synchronous>, transform_indices = @transform_9, window_bounds = array<i64: 16, 1>}, {pipeline_mode = #tpu.pipeline_mode<synchronous>, transform_indices = @transform_10, window_bounds = array<i64: 16, 1>}, {pipeline_mode = #tpu.pipeline_mode<synchronous>, transform_indices = @transform_11, window_bounds = array<i64: 8, 16>}, {pipeline_mode = #tpu.pipeline_mode<synchronous>, transform_indices = @transform_12, window_bounds = array<i64: 8, 1>}, {pipeline_mode = #tpu.pipeline_mode<synchronous>, transform_indices = @transform_13, window_bounds = array<i64: 8, 1>}, {pipeline_mode = #tpu.pipeline_mode<synchronous>, transform_indices = @transform_14, window_bounds = array<i64: 16, 144>}, {pipeline_mode = #tpu.pipeline_mode<synchronous>, transform_indices = @transform_15, window_bounds = array<i64: 16, 1>}, {pipeline_mode = #tpu.pipeline_mode<synchronous>, transform_indices = @transform_16, window_bounds = array<i64: 16, 1>}, {pipeline_mode = #tpu.pipeline_mode<synchronous>, transform_indices = @transform_17, window_bounds = array<i64: 8, 144>}, {pipeline_mode = #tpu.pipeline_mode<synchronous>, transform_indices = @transform_18, window_bounds = array<i64: 8, 1>}, {pipeline_mode = #tpu.pipeline_mode<synchronous>, transform_indices = @transform_19, window_bounds = array<i64: 8, 1>}, {transform_indices = @transform_20, window_bounds = array<i64: 1, 16, 256>}, {transform_indices = @transform_21, window_bounds = array<i64: 1, 8, 256>}, {transform_indices = @transform_22, window_bounds = array<i64: 1, 8, 256>}]} {
    %0 = tpu.iota {dimensions = array<i32: 1>} : vector<1x256xi32>
    %c16_i32 = arith.constant 16 : i32
    %c0_i32 = arith.constant 0 : i32
    %1 = arith.cmpi eq, %c16_i32, %c0_i32 : i32
    %c1_i32 = arith.constant 1 : i32
    %2 = arith.select %1, %c1_i32, %c16_i32 : i32
    %3 = vector.broadcast %2 : i32 to vector<1x256xi32>
    %4 = arith.remsi %0, %3 : vector<1x256xi32>
    %c0_i32_0 = arith.constant 0 : i32
    %5 = vector.broadcast %c0_i32_0 : i32 to vector<1x256xi32>
    %6 = arith.cmpi ne, %4, %5 : vector<1x256xi32>
    %c0_i32_1 = arith.constant 0 : i32
    %7 = vector.broadcast %c0_i32_1 : i32 to vector<1x256xi32>
    %8 = arith.cmpi slt, %4, %7 : vector<1x256xi32>
    %c0_i32_2 = arith.constant 0 : i32
    %9 = arith.cmpi slt, %2, %c0_i32_2 : i32
    %10 = vector.broadcast %9 : i1 to vector<1x256xi1>
    %11 = vector.broadcast %10 : vector<1x256xi1> to vector<1x256xi1>
    %12 = arith.xori %8, %11 : vector<1x256xi1>
    %13 = arith.andi %12, %6 : vector<1x256xi1>
    %14 = vector.broadcast %2 : i32 to vector<1x256xi32>
    %15 = arith.addi %4, %14 : vector<1x256xi32>
    %16 = arith.select %13, %15, %4 : vector<1x256xi1>, vector<1x256xi32>
    %c0 = arith.constant 0 : index
    %c0_3 = arith.constant 0 : index
    %c0_4 = arith.constant 0 : index
    %17 = vector.load %arg1[%c0, %c0_3, %c0_4] : memref<1x8x256xf32, #tpu.memory_space<vmem>>, vector<1x8x256xf32>
    %18 = vector.shape_cast %17 : vector<1x8x256xf32> to vector<8x256xf32>
    %c0_5 = arith.constant 0 : index
    %c0_6 = arith.constant 0 : index
    %c0_7 = arith.constant 0 : index
    %19 = vector.load %arg2[%c0_5, %c0_6, %c0_7] : memref<1x8x256xf32, #tpu.memory_space<vmem>>, vector<1x8x256xf32>
    %20 = vector.shape_cast %19 : vector<1x8x256xf32> to vector<8x256xf32>
    %21 = tpu.concatenate %18, %20 in 0 : vector<8x256xf32>, vector<8x256xf32> -> vector<16x256xf32>
    %22 = arith.truncf %21 : vector<16x256xf32> to vector<16x256xbf16>
    %c0_8 = arith.constant 0 : index
    %c0_9 = arith.constant 0 : index
    %23 = vector.load %arg3[%c0_8, %c0_9] : memref<16x144xbf16, #tpu.memory_space<vmem>>, vector<16x144xbf16>
    %cst = arith.constant 0.000000e+00 : bf16
    %24 = vector.broadcast %cst : bf16 to vector<16x1xbf16>
    %25 = vector.extract_strided_slice %22 {offsets = [0, 16], sizes = [16, 16], strides = [1, 1]} : vector<16x256xbf16> to vector<16x16xbf16>
    %26 = vector.extract_strided_slice %22 {offsets = [0, 224], sizes = [16, 16], strides = [1, 1]} : vector<16x256xbf16> to vector<16x16xbf16>
    %27 = tpu.concatenate %24, %25, %22, %26, %24 in 1 : vector<16x1xbf16>, vector<16x16xbf16>, vector<16x256xbf16>, vector<16x16xbf16>, vector<16x1xbf16> -> vector<16x290xbf16>
    %28 = vector.extract_strided_slice %27 {offsets = [0, 0], sizes = [16, 256], strides = [1, 1]} : vector<16x290xbf16> to vector<16x256xbf16>
    %29 = vector.extract_strided_slice %27 {offsets = [0, 2], sizes = [16, 256], strides = [1, 1]} : vector<16x290xbf16> to vector<16x256xbf16>
    %c0_i32_10 = arith.constant 0 : i32
    %30 = vector.broadcast %c0_i32_10 : i32 to vector<1x256xi32>
    %31 = arith.cmpi eq, %16, %30 : vector<1x256xi32>
    %32 = vector.shape_cast %31 : vector<1x256xi1> to vector<1x256xi1>
    %33 = vector.broadcast %32 : vector<1x256xi1> to vector<16x256xi1>
    %34 = arith.select %33, %29, %28 : vector<16x256xi1>, vector<16x256xbf16>
    %35 = vector.extract_strided_slice %27 {offsets = [0, 1], sizes = [16, 256], strides = [1, 1]} : vector<16x290xbf16> to vector<16x256xbf16>
    %36 = vector.extract_strided_slice %27 {offsets = [0, 2], sizes = [16, 256], strides = [1, 1]} : vector<16x290xbf16> to vector<16x256xbf16>
    %37 = vector.extract_strided_slice %27 {offsets = [0, 0], sizes = [16, 256], strides = [1, 1]} : vector<16x290xbf16> to vector<16x256xbf16>
    %c15_i32 = arith.constant 15 : i32
    %38 = vector.broadcast %c15_i32 : i32 to vector<1x256xi32>
    %39 = arith.cmpi eq, %16, %38 : vector<1x256xi32>
    %40 = vector.shape_cast %39 : vector<1x256xi1> to vector<1x256xi1>
    %41 = vector.broadcast %40 : vector<1x256xi1> to vector<16x256xi1>
    %42 = arith.select %41, %37, %36 : vector<16x256xi1>, vector<16x256xbf16>
    %43 = vector.extract_strided_slice %27 {offsets = [0, 16], sizes = [16, 256], strides = [1, 1]} : vector<16x290xbf16> to vector<16x256xbf16>
    %44 = vector.extract_strided_slice %27 {offsets = [0, 18], sizes = [16, 256], strides = [1, 1]} : vector<16x290xbf16> to vector<16x256xbf16>
    %c0_i32_11 = arith.constant 0 : i32
    %45 = vector.broadcast %c0_i32_11 : i32 to vector<1x256xi32>
    %46 = arith.cmpi eq, %16, %45 : vector<1x256xi32>
    %47 = vector.shape_cast %46 : vector<1x256xi1> to vector<1x256xi1>
    %48 = vector.broadcast %47 : vector<1x256xi1> to vector<16x256xi1>
    %49 = arith.select %48, %44, %43 : vector<16x256xi1>, vector<16x256xbf16>
    %50 = vector.extract_strided_slice %27 {offsets = [0, 17], sizes = [16, 256], strides = [1, 1]} : vector<16x290xbf16> to vector<16x256xbf16>
    %51 = vector.extract_strided_slice %27 {offsets = [0, 18], sizes = [16, 256], strides = [1, 1]} : vector<16x290xbf16> to vector<16x256xbf16>
    %52 = vector.extract_strided_slice %27 {offsets = [0, 16], sizes = [16, 256], strides = [1, 1]} : vector<16x290xbf16> to vector<16x256xbf16>
    %c15_i32_12 = arith.constant 15 : i32
    %53 = vector.broadcast %c15_i32_12 : i32 to vector<1x256xi32>
    %54 = arith.cmpi eq, %16, %53 : vector<1x256xi32>
    %55 = vector.shape_cast %54 : vector<1x256xi1> to vector<1x256xi1>
    %56 = vector.broadcast %55 : vector<1x256xi1> to vector<16x256xi1>
    %57 = arith.select %56, %52, %51 : vector<16x256xi1>, vector<16x256xbf16>
    %58 = vector.extract_strided_slice %27 {offsets = [0, 32], sizes = [16, 256], strides = [1, 1]} : vector<16x290xbf16> to vector<16x256xbf16>
    %59 = vector.extract_strided_slice %27 {offsets = [0, 34], sizes = [16, 256], strides = [1, 1]} : vector<16x290xbf16> to vector<16x256xbf16>
    %c0_i32_13 = arith.constant 0 : i32
    %60 = vector.broadcast %c0_i32_13 : i32 to vector<1x256xi32>
    %61 = arith.cmpi eq, %16, %60 : vector<1x256xi32>
    %62 = vector.shape_cast %61 : vector<1x256xi1> to vector<1x256xi1>
    %63 = vector.broadcast %62 : vector<1x256xi1> to vector<16x256xi1>
    %64 = arith.select %63, %59, %58 : vector<16x256xi1>, vector<16x256xbf16>
    %65 = vector.extract_strided_slice %27 {offsets = [0, 33], sizes = [16, 256], strides = [1, 1]} : vector<16x290xbf16> to vector<16x256xbf16>
    %66 = vector.extract_strided_slice %27 {offsets = [0, 34], sizes = [16, 256], strides = [1, 1]} : vector<16x290xbf16> to vector<16x256xbf16>
    %67 = vector.extract_strided_slice %27 {offsets = [0, 32], sizes = [16, 256], strides = [1, 1]} : vector<16x290xbf16> to vector<16x256xbf16>
    %c15_i32_14 = arith.constant 15 : i32
    %68 = vector.broadcast %c15_i32_14 : i32 to vector<1x256xi32>
    %69 = arith.cmpi eq, %16, %68 : vector<1x256xi32>
    %70 = vector.shape_cast %69 : vector<1x256xi1> to vector<1x256xi1>
    %71 = vector.broadcast %70 : vector<1x256xi1> to vector<16x256xi1>
    %72 = arith.select %71, %67, %66 : vector<16x256xi1>, vector<16x256xbf16>
    %73 = tpu.concatenate %34, %35, %42, %49, %50, %57, %64, %65, %72 in 0 : vector<16x256xbf16>, vector<16x256xbf16>, vector<16x256xbf16>, vector<16x256xbf16>, vector<16x256xbf16>, vector<16x256xbf16>, vector<16x256xbf16>, vector<16x256xbf16>, vector<16x256xbf16> -> vector<144x256xbf16>
    %cst_15 = arith.constant dense<0.000000e+00> : vector<16x256xf32>
    %74 = tpu.matmul %23, %73, %cst_15 {dimension_numbers = #tpu.dot_dimension_numbers<[1], [0], [0], [1], [0, 0, 1, 1], [], []>} : vector<16x144xbf16>, vector<144x256xbf16>, vector<16x256xf32> -> vector<16x256xf32>
    %c0_16 = arith.constant 0 : index
    %c0_17 = arith.constant 0 : index
    %75 = vector.load %arg4[%c0_16, %c0_17] : memref<16x1xf32, #tpu.memory_space<vmem>>, vector<16x1xf32>
    %76 = vector.broadcast %75 : vector<16x1xf32> to vector<16x256xf32>
    %77 = arith.mulf %74, %76 : vector<16x256xf32>
    %c0_18 = arith.constant 0 : index
    %c0_19 = arith.constant 0 : index
    %78 = vector.load %arg5[%c0_18, %c0_19] : memref<16x1xf32, #tpu.memory_space<vmem>>, vector<16x1xf32>
    %79 = vector.broadcast %78 : vector<16x1xf32> to vector<16x256xf32>
    %80 = arith.addf %77, %79 : vector<16x256xf32>
    %cst_20 = arith.constant 0.000000e+00 : f32
    %81 = vector.broadcast %cst_20 : f32 to vector<16x256xf32>
    %82 = arith.cmpf oge, %80, %81 : vector<16x256xf32>
    %cst_21 = arith.constant 2.000000e-01 : f32
    %83 = vector.broadcast %cst_21 : f32 to vector<16x256xf32>
    %84 = arith.mulf %83, %80 : vector<16x256xf32>
    %85 = arith.select %82, %80, %84 : vector<16x256xi1>, vector<16x256xf32>
    %c0_22 = arith.constant 0 : index
    %c0_23 = arith.constant 0 : index
    %86 = vector.load %arg6[%c0_22, %c0_23] : memref<16x16xbf16, #tpu.memory_space<vmem>>, vector<16x16xbf16>
    %87 = arith.truncf %85 : vector<16x256xf32> to vector<16x256xbf16>
    %cst_24 = arith.constant dense<0.000000e+00> : vector<16x256xf32>
    %88 = tpu.matmul %86, %87, %cst_24 {dimension_numbers = #tpu.dot_dimension_numbers<[1], [0], [0], [1], [0, 0, 1, 1], [], []>} : vector<16x16xbf16>, vector<16x256xbf16>, vector<16x256xf32> -> vector<16x256xf32>
    %c0_25 = arith.constant 0 : index
    %c0_26 = arith.constant 0 : index
    %89 = vector.load %arg7[%c0_25, %c0_26] : memref<16x1xf32, #tpu.memory_space<vmem>>, vector<16x1xf32>
    %90 = vector.broadcast %89 : vector<16x1xf32> to vector<16x256xf32>
    %91 = arith.mulf %88, %90 : vector<16x256xf32>
    %c0_27 = arith.constant 0 : index
    %c0_28 = arith.constant 0 : index
    %92 = vector.load %arg8[%c0_27, %c0_28] : memref<16x1xf32, #tpu.memory_space<vmem>>, vector<16x1xf32>
    %93 = vector.broadcast %92 : vector<16x1xf32> to vector<16x256xf32>
    %94 = arith.addf %91, %93 : vector<16x256xf32>
    %cst_29 = arith.constant 0.000000e+00 : f32
    %95 = vector.broadcast %cst_29 : f32 to vector<16x256xf32>
    %96 = arith.cmpf oge, %94, %95 : vector<16x256xf32>
    %cst_30 = arith.constant 2.000000e-01 : f32
    %97 = vector.broadcast %cst_30 : f32 to vector<16x256xf32>
    %98 = arith.mulf %97, %94 : vector<16x256xf32>
    %99 = arith.select %96, %94, %98 : vector<16x256xi1>, vector<16x256xf32>
    %c0_31 = arith.constant 0 : index
    %c0_32 = arith.constant 0 : index
    %c0_33 = arith.constant 0 : index
    %100 = vector.load %arg21[%c0_31, %c0_32, %c0_33] : memref<1x16x256xf32, #tpu.memory_space<vmem>>, vector<1x16x256xf32>
    %101 = vector.shape_cast %100 : vector<1x16x256xf32> to vector<16x256xf32>
    %102 = vector.shape_cast %99 : vector<16x256xf32> to vector<1x16x256xf32>
    tpu.vector_store %arg21[%c0_31, %c0_32, %c0_33], %102 {strides = array<i32>} : memref<1x16x256xf32, #tpu.memory_space<vmem>>, vector<1x16x256xf32>,
    %cst_34 = arith.constant dense<0.000000e+00> : vector<16xf32>
    %103 = vector.multi_reduction <add>, %99, %cst_34 [1] : vector<16x256xf32> to vector<16xf32>
    %104 = vector.shape_cast %103 : vector<16xf32> to vector<16x1xf32>
    %cst_35 = arith.constant 2.560000e+02 : f32
    %105 = vector.broadcast %cst_35 : f32 to vector<16x1xf32>
    %106 = arith.divf %104, %105 : vector<16x1xf32>
    %c0_36 = arith.constant 0 : index
    %c0_37 = arith.constant 0 : index
    %107 = vector.load %arg9[%c0_36, %c0_37] : memref<16x1xf32, #tpu.memory_space<vmem>>, vector<16x1xf32>
    %108 = arith.mulf %106, %107 : vector<16x1xf32>
    %cst_38 = arith.constant dense<0.000000e+00> : vector<1xf32>
    %109 = vector.multi_reduction <add>, %108, %cst_38 [0] : vector<16x1xf32> to vector<1xf32>
    %110 = vector.shape_cast %109 : vector<1xf32> to vector<1x1xf32>
    %cst_39 = arith.constant 0.000000e+00 : f32
    %111 = vector.broadcast %cst_39 : f32 to vector<1x1xf32>
    %112 = arith.cmpf oge, %110, %111 : vector<1x1xf32>
    %cst_40 = arith.constant 2.000000e-01 : f32
    %113 = vector.broadcast %cst_40 : f32 to vector<1x1xf32>
    %114 = arith.mulf %113, %110 : vector<1x1xf32>
    %115 = arith.select %112, %110, %114 : vector<1x1xi1>, vector<1x1xf32>
    %c0_41 = arith.constant 0 : index
    %c0_42 = arith.constant 0 : index
    %116 = vector.load %arg10[%c0_41, %c0_42] : memref<16x1xf32, #tpu.memory_space<vmem>>, vector<16x1xf32>
    %117 = vector.broadcast %115 : vector<1x1xf32> to vector<16x1xf32>
    %118 = arith.mulf %117, %116 : vector<16x1xf32>
    %cst_43 = arith.constant dense<0.000000e+00> : vector<16xf32>
    %119 = vector.multi_reduction <add>, %118, %cst_43 [1] : vector<16x1xf32> to vector<16xf32>
    %120 = vector.shape_cast %119 : vector<16xf32> to vector<16x1xf32>
    %cst_44 = arith.constant 0.000000e+00 : f32
    %121 = vector.broadcast %cst_44 : f32 to vector<16x1xf32>
    %122 = arith.subf %121, %120 : vector<16x1xf32>
    %123 = math.exp %122 : vector<16x1xf32>
    %cst_45 = arith.constant 1.000000e+00 : f32
    %124 = vector.broadcast %cst_45 : f32 to vector<16x1xf32>
    %125 = arith.addf %124, %123 : vector<16x1xf32>
    %126 = tpu.reciprocal %125 {approx = true} : vector<16x1xf32> -> vector<16x1xf32>
    %c0_46 = arith.constant 0 : index
    %c0_47 = arith.constant 0 : index
    %127 = vector.load %arg11[%c0_46, %c0_47] : memref<16x1xf32, #tpu.memory_space<vmem>>, vector<16x1xf32>
    %128 = vector.broadcast %115 : vector<1x1xf32> to vector<16x1xf32>
    %129 = arith.mulf %128, %127 : vector<16x1xf32>
    %cst_48 = arith.constant dense<0.000000e+00> : vector<16xf32>
    %130 = vector.multi_reduction <add>, %129, %cst_48 [1] : vector<16x1xf32> to vector<16xf32>
    %131 = vector.shape_cast %130 : vector<16xf32> to vector<16x1xf32>
    %cst_49 = arith.constant 0.000000e+00 : f32
    %132 = vector.broadcast %cst_49 : f32 to vector<16x1xf32>
    %133 = arith.subf %132, %131 : vector<16x1xf32>
    %134 = math.exp %133 : vector<16x1xf32>
    %cst_50 = arith.constant 1.000000e+00 : f32
    %135 = vector.broadcast %cst_50 : f32 to vector<16x1xf32>
    %136 = arith.addf %135, %134 : vector<16x1xf32>
    %137 = tpu.reciprocal %136 {approx = true} : vector<16x1xf32> -> vector<16x1xf32>
    %138 = vector.broadcast %126 : vector<16x1xf32> to vector<16x256xf32>
    %139 = arith.mulf %99, %138 : vector<16x256xf32>
    %140 = arith.truncf %139 : vector<16x256xf32> to vector<16x256xbf16>
    %c0_51 = arith.constant 0 : index
    %c0_52 = arith.constant 0 : index
    %141 = vector.load %arg12[%c0_51, %c0_52] : memref<8x16xbf16, #tpu.memory_space<vmem>>, vector<8x16xbf16>
    %cst_53 = arith.constant dense<0.000000e+00> : vector<8x256xf32>
    %142 = tpu.matmul %141, %140, %cst_53 {dimension_numbers = #tpu.dot_dimension_numbers<[1], [0], [0], [1], [0, 0, 1, 1], [], []>} : vector<8x16xbf16>, vector<16x256xbf16>, vector<8x256xf32> -> vector<8x256xf32>
    %c0_54 = arith.constant 0 : index
    %c0_55 = arith.constant 0 : index
    %143 = vector.load %arg13[%c0_54, %c0_55] : memref<8x1xf32, #tpu.memory_space<vmem>>, vector<8x1xf32>
    %144 = vector.broadcast %143 : vector<8x1xf32> to vector<8x256xf32>
    %145 = arith.mulf %142, %144 : vector<8x256xf32>
    %c0_56 = arith.constant 0 : index
    %c0_57 = arith.constant 0 : index
    %146 = vector.load %arg14[%c0_56, %c0_57] : memref<8x1xf32, #tpu.memory_space<vmem>>, vector<8x1xf32>
    %147 = vector.broadcast %146 : vector<8x1xf32> to vector<8x256xf32>
    %148 = arith.addf %145, %147 : vector<8x256xf32>
    %cst_58 = arith.constant 0.000000e+00 : f32
    %149 = vector.broadcast %cst_58 : f32 to vector<8x256xf32>
    %150 = arith.cmpf oge, %148, %149 : vector<8x256xf32>
    %cst_59 = arith.constant 2.000000e-01 : f32
    %151 = vector.broadcast %cst_59 : f32 to vector<8x256xf32>
    %152 = arith.mulf %151, %148 : vector<8x256xf32>
    %153 = arith.select %150, %148, %152 : vector<8x256xi1>, vector<8x256xf32>
    %c0_60 = arith.constant 0 : index
    %c0_61 = arith.constant 0 : index
    %c0_62 = arith.constant 0 : index
    %154 = vector.load %arg22[%c0_60, %c0_61, %c0_62] : memref<1x8x256xf32, #tpu.memory_space<vmem>>, vector<1x8x256xf32>
    %155 = vector.shape_cast %154 : vector<1x8x256xf32> to vector<8x256xf32>
    %156 = vector.shape_cast %153 : vector<8x256xf32> to vector<1x8x256xf32>
    tpu.vector_store %arg22[%c0_60, %c0_61, %c0_62], %156 {strides = array<i32>} : memref<1x8x256xf32, #tpu.memory_space<vmem>>, vector<1x8x256xf32>,
    %157 = vector.broadcast %137 : vector<16x1xf32> to vector<16x256xf32>
    %158 = arith.mulf %99, %157 : vector<16x256xf32>
    %159 = arith.truncf %158 : vector<16x256xf32> to vector<16x256xbf16>
    %c0_63 = arith.constant 0 : index
    %c0_64 = arith.constant 0 : index
    %160 = vector.load %arg15[%c0_63, %c0_64] : memref<16x144xbf16, #tpu.memory_space<vmem>>, vector<16x144xbf16>
    %cst_65 = arith.constant 0.000000e+00 : bf16
    %161 = vector.broadcast %cst_65 : bf16 to vector<16x1xbf16>
    %162 = vector.extract_strided_slice %159 {offsets = [0, 16], sizes = [16, 16], strides = [1, 1]} : vector<16x256xbf16> to vector<16x16xbf16>
    %163 = vector.extract_strided_slice %159 {offsets = [0, 224], sizes = [16, 16], strides = [1, 1]} : vector<16x256xbf16> to vector<16x16xbf16>
    %164 = tpu.concatenate %161, %162, %159, %163, %161 in 1 : vector<16x1xbf16>, vector<16x16xbf16>, vector<16x256xbf16>, vector<16x16xbf16>, vector<16x1xbf16> -> vector<16x290xbf16>
    %165 = vector.extract_strided_slice %164 {offsets = [0, 0], sizes = [16, 256], strides = [1, 1]} : vector<16x290xbf16> to vector<16x256xbf16>
    %166 = vector.extract_strided_slice %164 {offsets = [0, 2], sizes = [16, 256], strides = [1, 1]} : vector<16x290xbf16> to vector<16x256xbf16>
    %c0_i32_66 = arith.constant 0 : i32
    %167 = vector.broadcast %c0_i32_66 : i32 to vector<1x256xi32>
    %168 = arith.cmpi eq, %16, %167 : vector<1x256xi32>
    %169 = vector.shape_cast %168 : vector<1x256xi1> to vector<1x256xi1>
    %170 = vector.broadcast %169 : vector<1x256xi1> to vector<16x256xi1>
    %171 = arith.select %170, %166, %165 : vector<16x256xi1>, vector<16x256xbf16>
    %172 = vector.extract_strided_slice %164 {offsets = [0, 1], sizes = [16, 256], strides = [1, 1]} : vector<16x290xbf16> to vector<16x256xbf16>
    %173 = vector.extract_strided_slice %164 {offsets = [0, 2], sizes = [16, 256], strides = [1, 1]} : vector<16x290xbf16> to vector<16x256xbf16>
    %174 = vector.extract_strided_slice %164 {offsets = [0, 0], sizes = [16, 256], strides = [1, 1]} : vector<16x290xbf16> to vector<16x256xbf16>
    %c15_i32_67 = arith.constant 15 : i32
    %175 = vector.broadcast %c15_i32_67 : i32 to vector<1x256xi32>
    %176 = arith.cmpi eq, %16, %175 : vector<1x256xi32>
    %177 = vector.shape_cast %176 : vector<1x256xi1> to vector<1x256xi1>
    %178 = vector.broadcast %177 : vector<1x256xi1> to vector<16x256xi1>
    %179 = arith.select %178, %174, %173 : vector<16x256xi1>, vector<16x256xbf16>
    %180 = vector.extract_strided_slice %164 {offsets = [0, 16], sizes = [16, 256], strides = [1, 1]} : vector<16x290xbf16> to vector<16x256xbf16>
    %181 = vector.extract_strided_slice %164 {offsets = [0, 18], sizes = [16, 256], strides = [1, 1]} : vector<16x290xbf16> to vector<16x256xbf16>
    %c0_i32_68 = arith.constant 0 : i32
    %182 = vector.broadcast %c0_i32_68 : i32 to vector<1x256xi32>
    %183 = arith.cmpi eq, %16, %182 : vector<1x256xi32>
    %184 = vector.shape_cast %183 : vector<1x256xi1> to vector<1x256xi1>
    %185 = vector.broadcast %184 : vector<1x256xi1> to vector<16x256xi1>
    %186 = arith.select %185, %181, %180 : vector<16x256xi1>, vector<16x256xbf16>
    %187 = vector.extract_strided_slice %164 {offsets = [0, 17], sizes = [16, 256], strides = [1, 1]} : vector<16x290xbf16> to vector<16x256xbf16>
    %188 = vector.extract_strided_slice %164 {offsets = [0, 18], sizes = [16, 256], strides = [1, 1]} : vector<16x290xbf16> to vector<16x256xbf16>
    %189 = vector.extract_strided_slice %164 {offsets = [0, 16], sizes = [16, 256], strides = [1, 1]} : vector<16x290xbf16> to vector<16x256xbf16>
    %c15_i32_69 = arith.constant 15 : i32
    %190 = vector.broadcast %c15_i32_69 : i32 to vector<1x256xi32>
    %191 = arith.cmpi eq, %16, %190 : vector<1x256xi32>
    %192 = vector.shape_cast %191 : vector<1x256xi1> to vector<1x256xi1>
    %193 = vector.broadcast %192 : vector<1x256xi1> to vector<16x256xi1>
    %194 = arith.select %193, %189, %188 : vector<16x256xi1>, vector<16x256xbf16>
    %195 = vector.extract_strided_slice %164 {offsets = [0, 32], sizes = [16, 256], strides = [1, 1]} : vector<16x290xbf16> to vector<16x256xbf16>
    %196 = vector.extract_strided_slice %164 {offsets = [0, 34], sizes = [16, 256], strides = [1, 1]} : vector<16x290xbf16> to vector<16x256xbf16>
    %c0_i32_70 = arith.constant 0 : i32
    %197 = vector.broadcast %c0_i32_70 : i32 to vector<1x256xi32>
    %198 = arith.cmpi eq, %16, %197 : vector<1x256xi32>
    %199 = vector.shape_cast %198 : vector<1x256xi1> to vector<1x256xi1>
    %200 = vector.broadcast %199 : vector<1x256xi1> to vector<16x256xi1>
    %201 = arith.select %200, %196, %195 : vector<16x256xi1>, vector<16x256xbf16>
    %202 = vector.extract_strided_slice %164 {offsets = [0, 33], sizes = [16, 256], strides = [1, 1]} : vector<16x290xbf16> to vector<16x256xbf16>
    %203 = vector.extract_strided_slice %164 {offsets = [0, 34], sizes = [16, 256], strides = [1, 1]} : vector<16x290xbf16> to vector<16x256xbf16>
    %204 = vector.extract_strided_slice %164 {offsets = [0, 32], sizes = [16, 256], strides = [1, 1]} : vector<16x290xbf16> to vector<16x256xbf16>
    %c15_i32_71 = arith.constant 15 : i32
    %205 = vector.broadcast %c15_i32_71 : i32 to vector<1x256xi32>
    %206 = arith.cmpi eq, %16, %205 : vector<1x256xi32>
    %207 = vector.shape_cast %206 : vector<1x256xi1> to vector<1x256xi1>
    %208 = vector.broadcast %207 : vector<1x256xi1> to vector<16x256xi1>
    %209 = arith.select %208, %204, %203 : vector<16x256xi1>, vector<16x256xbf16>
    %210 = tpu.concatenate %171, %172, %179, %186, %187, %194, %201, %202, %209 in 0 : vector<16x256xbf16>, vector<16x256xbf16>, vector<16x256xbf16>, vector<16x256xbf16>, vector<16x256xbf16>, vector<16x256xbf16>, vector<16x256xbf16>, vector<16x256xbf16>, vector<16x256xbf16> -> vector<144x256xbf16>
    %cst_72 = arith.constant dense<0.000000e+00> : vector<16x256xf32>
    %211 = tpu.matmul %160, %210, %cst_72 {dimension_numbers = #tpu.dot_dimension_numbers<[1], [0], [0], [1], [0, 0, 1, 1], [], []>} : vector<16x144xbf16>, vector<144x256xbf16>, vector<16x256xf32> -> vector<16x256xf32>
    %c0_73 = arith.constant 0 : index
    %c0_74 = arith.constant 0 : index
    %212 = vector.load %arg16[%c0_73, %c0_74] : memref<16x1xf32, #tpu.memory_space<vmem>>, vector<16x1xf32>
    %213 = vector.broadcast %212 : vector<16x1xf32> to vector<16x256xf32>
    %214 = arith.mulf %211, %213 : vector<16x256xf32>
    %c0_75 = arith.constant 0 : index
    %c0_76 = arith.constant 0 : index
    %215 = vector.load %arg17[%c0_75, %c0_76] : memref<16x1xf32, #tpu.memory_space<vmem>>, vector<16x1xf32>
    %216 = vector.broadcast %215 : vector<16x1xf32> to vector<16x256xf32>
    %217 = arith.addf %214, %216 : vector<16x256xf32>
    %cst_77 = arith.constant 0.000000e+00 : f32
    %218 = vector.broadcast %cst_77 : f32 to vector<16x256xf32>
    %219 = arith.cmpf oge, %217, %218 : vector<16x256xf32>
    %cst_78 = arith.constant 2.000000e-01 : f32
    %220 = vector.broadcast %cst_78 : f32 to vector<16x256xf32>
    %221 = arith.mulf %220, %217 : vector<16x256xf32>
    %222 = arith.select %219, %217, %221 : vector<16x256xi1>, vector<16x256xf32>
    %223 = arith.truncf %222 : vector<16x256xf32> to vector<16x256xbf16>
    %c0_79 = arith.constant 0 : index
    %c0_80 = arith.constant 0 : index
    %224 = vector.load %arg18[%c0_79, %c0_80] : memref<8x144xbf16, #tpu.memory_space<vmem>>, vector<8x144xbf16>
    %cst_81 = arith.constant 0.000000e+00 : bf16
    %225 = vector.broadcast %cst_81 : bf16 to vector<16x1xbf16>
    %226 = vector.extract_strided_slice %223 {offsets = [0, 16], sizes = [16, 16], strides = [1, 1]} : vector<16x256xbf16> to vector<16x16xbf16>
    %227 = vector.extract_strided_slice %223 {offsets = [0, 224], sizes = [16, 16], strides = [1, 1]} : vector<16x256xbf16> to vector<16x16xbf16>
    %228 = tpu.concatenate %225, %226, %223, %227, %225 in 1 : vector<16x1xbf16>, vector<16x16xbf16>, vector<16x256xbf16>, vector<16x16xbf16>, vector<16x1xbf16> -> vector<16x290xbf16>
    %229 = vector.extract_strided_slice %228 {offsets = [0, 0], sizes = [16, 256], strides = [1, 1]} : vector<16x290xbf16> to vector<16x256xbf16>
    %230 = vector.extract_strided_slice %228 {offsets = [0, 2], sizes = [16, 256], strides = [1, 1]} : vector<16x290xbf16> to vector<16x256xbf16>
    %c0_i32_82 = arith.constant 0 : i32
    %231 = vector.broadcast %c0_i32_82 : i32 to vector<1x256xi32>
    %232 = arith.cmpi eq, %16, %231 : vector<1x256xi32>
    %233 = vector.shape_cast %232 : vector<1x256xi1> to vector<1x256xi1>
    %234 = vector.broadcast %233 : vector<1x256xi1> to vector<16x256xi1>
    %235 = arith.select %234, %230, %229 : vector<16x256xi1>, vector<16x256xbf16>
    %236 = vector.extract_strided_slice %228 {offsets = [0, 1], sizes = [16, 256], strides = [1, 1]} : vector<16x290xbf16> to vector<16x256xbf16>
    %237 = vector.extract_strided_slice %228 {offsets = [0, 2], sizes = [16, 256], strides = [1, 1]} : vector<16x290xbf16> to vector<16x256xbf16>
    %238 = vector.extract_strided_slice %228 {offsets = [0, 0], sizes = [16, 256], strides = [1, 1]} : vector<16x290xbf16> to vector<16x256xbf16>
    %c15_i32_83 = arith.constant 15 : i32
    %239 = vector.broadcast %c15_i32_83 : i32 to vector<1x256xi32>
    %240 = arith.cmpi eq, %16, %239 : vector<1x256xi32>
    %241 = vector.shape_cast %240 : vector<1x256xi1> to vector<1x256xi1>
    %242 = vector.broadcast %241 : vector<1x256xi1> to vector<16x256xi1>
    %243 = arith.select %242, %238, %237 : vector<16x256xi1>, vector<16x256xbf16>
    %244 = vector.extract_strided_slice %228 {offsets = [0, 16], sizes = [16, 256], strides = [1, 1]} : vector<16x290xbf16> to vector<16x256xbf16>
    %245 = vector.extract_strided_slice %228 {offsets = [0, 18], sizes = [16, 256], strides = [1, 1]} : vector<16x290xbf16> to vector<16x256xbf16>
    %c0_i32_84 = arith.constant 0 : i32
    %246 = vector.broadcast %c0_i32_84 : i32 to vector<1x256xi32>
    %247 = arith.cmpi eq, %16, %246 : vector<1x256xi32>
    %248 = vector.shape_cast %247 : vector<1x256xi1> to vector<1x256xi1>
    %249 = vector.broadcast %248 : vector<1x256xi1> to vector<16x256xi1>
    %250 = arith.select %249, %245, %244 : vector<16x256xi1>, vector<16x256xbf16>
    %251 = vector.extract_strided_slice %228 {offsets = [0, 17], sizes = [16, 256], strides = [1, 1]} : vector<16x290xbf16> to vector<16x256xbf16>
    %252 = vector.extract_strided_slice %228 {offsets = [0, 18], sizes = [16, 256], strides = [1, 1]} : vector<16x290xbf16> to vector<16x256xbf16>
    %253 = vector.extract_strided_slice %228 {offsets = [0, 16], sizes = [16, 256], strides = [1, 1]} : vector<16x290xbf16> to vector<16x256xbf16>
    %c15_i32_85 = arith.constant 15 : i32
    %254 = vector.broadcast %c15_i32_85 : i32 to vector<1x256xi32>
    %255 = arith.cmpi eq, %16, %254 : vector<1x256xi32>
    %256 = vector.shape_cast %255 : vector<1x256xi1> to vector<1x256xi1>
    %257 = vector.broadcast %256 : vector<1x256xi1> to vector<16x256xi1>
    %258 = arith.select %257, %253, %252 : vector<16x256xi1>, vector<16x256xbf16>
    %259 = vector.extract_strided_slice %228 {offsets = [0, 32], sizes = [16, 256], strides = [1, 1]} : vector<16x290xbf16> to vector<16x256xbf16>
    %260 = vector.extract_strided_slice %228 {offsets = [0, 34], sizes = [16, 256], strides = [1, 1]} : vector<16x290xbf16> to vector<16x256xbf16>
    %c0_i32_86 = arith.constant 0 : i32
    %261 = vector.broadcast %c0_i32_86 : i32 to vector<1x256xi32>
    %262 = arith.cmpi eq, %16, %261 : vector<1x256xi32>
    %263 = vector.shape_cast %262 : vector<1x256xi1> to vector<1x256xi1>
    %264 = vector.broadcast %263 : vector<1x256xi1> to vector<16x256xi1>
    %265 = arith.select %264, %260, %259 : vector<16x256xi1>, vector<16x256xbf16>
    %266 = vector.extract_strided_slice %228 {offsets = [0, 33], sizes = [16, 256], strides = [1, 1]} : vector<16x290xbf16> to vector<16x256xbf16>
    %267 = vector.extract_strided_slice %228 {offsets = [0, 34], sizes = [16, 256], strides = [1, 1]} : vector<16x290xbf16> to vector<16x256xbf16>
    %268 = vector.extract_strided_slice %228 {offsets = [0, 32], sizes = [16, 256], strides = [1, 1]} : vector<16x290xbf16> to vector<16x256xbf16>
    %c15_i32_87 = arith.constant 15 : i32
    %269 = vector.broadcast %c15_i32_87 : i32 to vector<1x256xi32>
    %270 = arith.cmpi eq, %16, %269 : vector<1x256xi32>
    %271 = vector.shape_cast %270 : vector<1x256xi1> to vector<1x256xi1>
    %272 = vector.broadcast %271 : vector<1x256xi1> to vector<16x256xi1>
    %273 = arith.select %272, %268, %267 : vector<16x256xi1>, vector<16x256xbf16>
    %274 = tpu.concatenate %235, %236, %243, %250, %251, %258, %265, %266, %273 in 0 : vector<16x256xbf16>, vector<16x256xbf16>, vector<16x256xbf16>, vector<16x256xbf16>, vector<16x256xbf16>, vector<16x256xbf16>, vector<16x256xbf16>, vector<16x256xbf16>, vector<16x256xbf16> -> vector<144x256xbf16>
    %cst_88 = arith.constant dense<0.000000e+00> : vector<8x256xf32>
    %275 = tpu.matmul %224, %274, %cst_88 {dimension_numbers = #tpu.dot_dimension_numbers<[1], [0], [0], [1], [0, 0, 1, 1], [], []>} : vector<8x144xbf16>, vector<144x256xbf16>, vector<8x256xf32> -> vector<8x256xf32>
    %c0_89 = arith.constant 0 : index
    %c0_90 = arith.constant 0 : index
    %276 = vector.load %arg19[%c0_89, %c0_90] : memref<8x1xf32, #tpu.memory_space<vmem>>, vector<8x1xf32>
    %277 = vector.broadcast %276 : vector<8x1xf32> to vector<8x256xf32>
    %278 = arith.mulf %275, %277 : vector<8x256xf32>
    %c0_91 = arith.constant 0 : index
    %c0_92 = arith.constant 0 : index
    %279 = vector.load %arg20[%c0_91, %c0_92] : memref<8x1xf32, #tpu.memory_space<vmem>>, vector<8x1xf32>
    %280 = vector.broadcast %279 : vector<8x1xf32> to vector<8x256xf32>
    %281 = arith.addf %278, %280 : vector<8x256xf32>
    %cst_93 = arith.constant 0.000000e+00 : f32
    %282 = vector.broadcast %cst_93 : f32 to vector<8x256xf32>
    %283 = arith.cmpf oge, %281, %282 : vector<8x256xf32>
    %cst_94 = arith.constant 2.000000e-01 : f32
    %284 = vector.broadcast %cst_94 : f32 to vector<8x256xf32>
    %285 = arith.mulf %284, %281 : vector<8x256xf32>
    %286 = arith.select %283, %281, %285 : vector<8x256xi1>, vector<8x256xf32>
    %c0_95 = arith.constant 0 : index
    %c0_96 = arith.constant 0 : index
    %c0_97 = arith.constant 0 : index
    %287 = vector.load %arg23[%c0_95, %c0_96, %c0_97] : memref<1x8x256xf32, #tpu.memory_space<vmem>>, vector<1x8x256xf32>
    %288 = vector.shape_cast %287 : vector<1x8x256xf32> to vector<8x256xf32>
    %289 = vector.shape_cast %286 : vector<8x256xf32> to vector<1x8x256xf32>
    tpu.vector_store %arg23[%c0_95, %c0_96, %c0_97], %289 {strides = array<i32>} : memref<1x8x256xf32, #tpu.memory_space<vmem>>, vector<1x8x256xf32>,
    return
  }
  func.func @transform_0(%arg0: i32) -> (i32, i32, i32) {
    %c0_i32 = arith.constant 0 : i32
    %c0_i32_0 = arith.constant 0 : i32
    %c0_i32_1 = arith.constant 0 : i32
    return %arg0, %c0_i32, %c0_i32_0 : i32, i32, i32
  }
  func.func @transform_1(%arg0: i32) -> (i32, i32, i32) {
    %c0_i32 = arith.constant 0 : i32
    %c0_i32_0 = arith.constant 0 : i32
    %c0_i32_1 = arith.constant 0 : i32
    return %arg0, %c0_i32, %c0_i32_0 : i32, i32, i32
  }
  func.func @transform_2(%arg0: i32) -> (i32, i32) {
    %c0_i32 = arith.constant 0 : i32
    %c0_i32_0 = arith.constant 0 : i32
    %c0_i32_1 = arith.constant 0 : i32
    return %c0_i32, %c0_i32_0 : i32, i32
  }
  func.func @transform_3(%arg0: i32) -> (i32, i32) {
    %c0_i32 = arith.constant 0 : i32
    %c0_i32_0 = arith.constant 0 : i32
    %c0_i32_1 = arith.constant 0 : i32
    return %c0_i32, %c0_i32_0 : i32, i32
  }
  func.func @transform_4(%arg0: i32) -> (i32, i32) {
    %c0_i32 = arith.constant 0 : i32
    %c0_i32_0 = arith.constant 0 : i32
    %c0_i32_1 = arith.constant 0 : i32
    return %c0_i32, %c0_i32_0 : i32, i32
  }
  func.func @transform_5(%arg0: i32) -> (i32, i32) {
    %c0_i32 = arith.constant 0 : i32
    %c0_i32_0 = arith.constant 0 : i32
    %c0_i32_1 = arith.constant 0 : i32
    return %c0_i32, %c0_i32_0 : i32, i32
  }
  func.func @transform_6(%arg0: i32) -> (i32, i32) {
    %c0_i32 = arith.constant 0 : i32
    %c0_i32_0 = arith.constant 0 : i32
    %c0_i32_1 = arith.constant 0 : i32
    return %c0_i32, %c0_i32_0 : i32, i32
  }
  func.func @transform_7(%arg0: i32) -> (i32, i32) {
    %c0_i32 = arith.constant 0 : i32
    %c0_i32_0 = arith.constant 0 : i32
    %c0_i32_1 = arith.constant 0 : i32
    return %c0_i32, %c0_i32_0 : i32, i32
  }
  func.func @transform_8(%arg0: i32) -> (i32, i32) {
    %c0_i32 = arith.constant 0 : i32
    %c0_i32_0 = arith.constant 0 : i32
    %c0_i32_1 = arith.constant 0 : i32
    return %c0_i32, %c0_i32_0 : i32, i32
  }
  func.func @transform_9(%arg0: i32) -> (i32, i32) {
    %c0_i32 = arith.constant 0 : i32
    %c0_i32_0 = arith.constant 0 : i32
    %c0_i32_1 = arith.constant 0 : i32
    return %c0_i32, %c0_i32_0 : i32, i32
  }
  func.func @transform_10(%arg0: i32) -> (i32, i32) {
    %c0_i32 = arith.constant 0 : i32
    %c0_i32_0 = arith.constant 0 : i32
    %c0_i32_1 = arith.constant 0 : i32
    return %c0_i32, %c0_i32_0 : i32, i32
  }
  func.func @transform_11(%arg0: i32) -> (i32, i32) {
    %c0_i32 = arith.constant 0 : i32
    %c0_i32_0 = arith.constant 0 : i32
    %c0_i32_1 = arith.constant 0 : i32
    return %c0_i32, %c0_i32_0 : i32, i32
  }
  func.func @transform_12(%arg0: i32) -> (i32, i32) {
    %c0_i32 = arith.constant 0 : i32
    %c0_i32_0 = arith.constant 0 : i32
    %c0_i32_1 = arith.constant 0 : i32
    return %c0_i32, %c0_i32_0 : i32, i32
  }
  func.func @transform_13(%arg0: i32) -> (i32, i32) {
    %c0_i32 = arith.constant 0 : i32
    %c0_i32_0 = arith.constant 0 : i32
    %c0_i32_1 = arith.constant 0 : i32
    return %c0_i32, %c0_i32_0 : i32, i32
  }
  func.func @transform_14(%arg0: i32) -> (i32, i32) {
    %c0_i32 = arith.constant 0 : i32
    %c0_i32_0 = arith.constant 0 : i32
    %c0_i32_1 = arith.constant 0 : i32
    return %c0_i32, %c0_i32_0 : i32, i32
  }
  func.func @transform_15(%arg0: i32) -> (i32, i32) {
    %c0_i32 = arith.constant 0 : i32
    %c0_i32_0 = arith.constant 0 : i32
    %c0_i32_1 = arith.constant 0 : i32
    return %c0_i32, %c0_i32_0 : i32, i32
  }
  func.func @transform_16(%arg0: i32) -> (i32, i32) {
    %c0_i32 = arith.constant 0 : i32
    %c0_i32_0 = arith.constant 0 : i32
    %c0_i32_1 = arith.constant 0 : i32
    return %c0_i32, %c0_i32_0 : i32, i32
  }
  func.func @transform_17(%arg0: i32) -> (i32, i32) {
    %c0_i32 = arith.constant 0 : i32
    %c0_i32_0 = arith.constant 0 : i32
    %c0_i32_1 = arith.constant 0 : i32
    return %c0_i32, %c0_i32_0 : i32, i32
  }
  func.func @transform_18(%arg0: i32) -> (i32, i32) {
    %c0_i32 = arith.constant 0 : i32
    %c0_i32_0 = arith.constant 0 : i32
    %c0_i32_1 = arith.constant 0 : i32
    return %c0_i32, %c0_i32_0 : i32, i32
  }
  func.func @transform_19(%arg0: i32) -> (i32, i32) {
    %c0_i32 = arith.constant 0 : i32
    %c0_i32_0 = arith.constant 0 : i32
    %c0_i32_1 = arith.constant 0 : i32
    return %c0_i32, %c0_i32_0 : i32, i32
  }
  func.func @transform_20(%arg0: i32) -> (i32, i32, i32) {
    %c0_i32 = arith.constant 0 : i32
    %c0_i32_0 = arith.constant 0 : i32
    %c0_i32_1 = arith.constant 0 : i32
    return %arg0, %c0_i32, %c0_i32_0 : i32, i32, i32
  }
  func.func @transform_21(%arg0: i32) -> (i32, i32, i32) {
    %c0_i32 = arith.constant 0 : i32
    %c0_i32_0 = arith.constant 0 : i32
    %c0_i32_1 = arith.constant 0 : i32
    return %arg0, %c0_i32, %c0_i32_0 : i32, i32, i32
  }
  func.func @transform_22(%arg0: i32) -> (i32, i32, i32) {
    %c0_i32 = arith.constant 0 : i32
    %c0_i32_0 = arith.constant 0 : i32
    %c0_i32_1 = arith.constant 0 : i32
    return %arg0, %c0_i32, %c0_i32_0 : i32, i32, i32
  }
}

module attributes {stable_mosaic.version = 11 : i64} {
  func.func @_freq_kernel(%arg0: i32, %arg1: memref<1x8x144xf32, #tpu.memory_space<vmem>>, %arg2: memref<1x8x144xf32, #tpu.memory_space<vmem>>, %arg3: memref<16x16xf32, #tpu.memory_space<vmem>>, %arg4: memref<16x1xf32, #tpu.memory_space<vmem>>, %arg5: memref<16x1xf32, #tpu.memory_space<vmem>>, %arg6: memref<1x8x144xf32, #tpu.memory_space<vmem>>, %arg7: memref<1x8x144xf32, #tpu.memory_space<vmem>>) attributes {dimension_semantics = [#tpu.dimension_semantics<parallel>], iteration_bounds = array<i64: 2>, scalar_prefetch = 0 : i64, scratch_operands = 0 : i64, tpu.core_type = #tpu.core_type<tc>, window_params = [{transform_indices = @transform_0, window_bounds = array<i64: 1, 8, 144>}, {transform_indices = @transform_1, window_bounds = array<i64: 1, 8, 144>}, {pipeline_mode = #tpu.pipeline_mode<synchronous>, transform_indices = @transform_2, window_bounds = array<i64: 16, 16>}, {pipeline_mode = #tpu.pipeline_mode<synchronous>, transform_indices = @transform_3, window_bounds = array<i64: 16, 1>}, {pipeline_mode = #tpu.pipeline_mode<synchronous>, transform_indices = @transform_4, window_bounds = array<i64: 16, 1>}, {transform_indices = @transform_5, window_bounds = array<i64: 1, 8, 144>}, {transform_indices = @transform_6, window_bounds = array<i64: 1, 8, 144>}]} {
    %c0 = arith.constant 0 : index
    %c0_0 = arith.constant 0 : index
    %c0_1 = arith.constant 0 : index
    %0 = vector.load %arg1[%c0, %c0_0, %c0_1] : memref<1x8x144xf32, #tpu.memory_space<vmem>>, vector<1x8x144xf32>
    %1 = vector.shape_cast %0 : vector<1x8x144xf32> to vector<8x144xf32>
    %c0_2 = arith.constant 0 : index
    %c0_3 = arith.constant 0 : index
    %c0_4 = arith.constant 0 : index
    %2 = vector.load %arg2[%c0_2, %c0_3, %c0_4] : memref<1x8x144xf32, #tpu.memory_space<vmem>>, vector<1x8x144xf32>
    %3 = vector.shape_cast %2 : vector<1x8x144xf32> to vector<8x144xf32>
    %4 = tpu.concatenate %1, %3 in 0 : vector<8x144xf32>, vector<8x144xf32> -> vector<16x144xf32>
    %c0_5 = arith.constant 0 : index
    %c0_6 = arith.constant 0 : index
    %5 = vector.load %arg3[%c0_5, %c0_6] : memref<16x16xf32, #tpu.memory_space<vmem>>, vector<16x16xf32>
    %cst = arith.constant dense<0.000000e+00> : vector<16x144xf32>
    %6 = tpu.matmul %5, %4, %cst {dimension_numbers = #tpu.dot_dimension_numbers<[1], [0], [0], [1], [0, 0, 1, 1], [], []>} : vector<16x16xf32>, vector<16x144xf32>, vector<16x144xf32> -> vector<16x144xf32>
    %c0_7 = arith.constant 0 : index
    %c0_8 = arith.constant 0 : index
    %7 = vector.load %arg4[%c0_7, %c0_8] : memref<16x1xf32, #tpu.memory_space<vmem>>, vector<16x1xf32>
    %8 = vector.broadcast %7 : vector<16x1xf32> to vector<16x144xf32>
    %9 = arith.mulf %6, %8 : vector<16x144xf32>
    %c0_9 = arith.constant 0 : index
    %c0_10 = arith.constant 0 : index
    %10 = vector.load %arg5[%c0_9, %c0_10] : memref<16x1xf32, #tpu.memory_space<vmem>>, vector<16x1xf32>
    %11 = vector.broadcast %10 : vector<16x1xf32> to vector<16x144xf32>
    %12 = arith.addf %9, %11 : vector<16x144xf32>
    %cst_11 = arith.constant 0.000000e+00 : f32
    %13 = vector.broadcast %cst_11 : f32 to vector<16x144xf32>
    %14 = arith.cmpf oge, %12, %13 : vector<16x144xf32>
    %cst_12 = arith.constant 2.000000e-01 : f32
    %15 = vector.broadcast %cst_12 : f32 to vector<16x144xf32>
    %16 = arith.mulf %15, %12 : vector<16x144xf32>
    %17 = arith.select %14, %12, %16 : vector<16x144xi1>, vector<16x144xf32>
    %18 = vector.extract_strided_slice %17 {offsets = [0, 0], sizes = [8, 144], strides = [1, 1]} : vector<16x144xf32> to vector<8x144xf32>
    %c0_13 = arith.constant 0 : index
    %c0_14 = arith.constant 0 : index
    %c0_15 = arith.constant 0 : index
    %19 = vector.load %arg6[%c0_13, %c0_14, %c0_15] : memref<1x8x144xf32, #tpu.memory_space<vmem>>, vector<1x8x144xf32>
    %20 = vector.shape_cast %19 : vector<1x8x144xf32> to vector<8x144xf32>
    %21 = vector.shape_cast %18 : vector<8x144xf32> to vector<1x8x144xf32>
    tpu.vector_store %arg6[%c0_13, %c0_14, %c0_15], %21 {strides = array<i32>} : memref<1x8x144xf32, #tpu.memory_space<vmem>>, vector<1x8x144xf32>,
    %22 = vector.extract_strided_slice %17 {offsets = [8, 0], sizes = [8, 144], strides = [1, 1]} : vector<16x144xf32> to vector<8x144xf32>
    %c0_16 = arith.constant 0 : index
    %c0_17 = arith.constant 0 : index
    %c0_18 = arith.constant 0 : index
    %23 = vector.load %arg7[%c0_16, %c0_17, %c0_18] : memref<1x8x144xf32, #tpu.memory_space<vmem>>, vector<1x8x144xf32>
    %24 = vector.shape_cast %23 : vector<1x8x144xf32> to vector<8x144xf32>
    %25 = vector.shape_cast %22 : vector<8x144xf32> to vector<1x8x144xf32>
    tpu.vector_store %arg7[%c0_16, %c0_17, %c0_18], %25 {strides = array<i32>} : memref<1x8x144xf32, #tpu.memory_space<vmem>>, vector<1x8x144xf32>,
    return
  }
  func.func @transform_0(%arg0: i32) -> (i32, i32, i32) {
    %c0_i32 = arith.constant 0 : i32
    %c0_i32_0 = arith.constant 0 : i32
    %c0_i32_1 = arith.constant 0 : i32
    return %arg0, %c0_i32, %c0_i32_0 : i32, i32, i32
  }
  func.func @transform_1(%arg0: i32) -> (i32, i32, i32) {
    %c0_i32 = arith.constant 0 : i32
    %c0_i32_0 = arith.constant 0 : i32
    %c0_i32_1 = arith.constant 0 : i32
    return %arg0, %c0_i32, %c0_i32_0 : i32, i32, i32
  }
  func.func @transform_2(%arg0: i32) -> (i32, i32) {
    %c0_i32 = arith.constant 0 : i32
    %c0_i32_0 = arith.constant 0 : i32
    %c0_i32_1 = arith.constant 0 : i32
    return %c0_i32, %c0_i32_0 : i32, i32
  }
  func.func @transform_3(%arg0: i32) -> (i32, i32) {
    %c0_i32 = arith.constant 0 : i32
    %c0_i32_0 = arith.constant 0 : i32
    %c0_i32_1 = arith.constant 0 : i32
    return %c0_i32, %c0_i32_0 : i32, i32
  }
  func.func @transform_4(%arg0: i32) -> (i32, i32) {
    %c0_i32 = arith.constant 0 : i32
    %c0_i32_0 = arith.constant 0 : i32
    %c0_i32_1 = arith.constant 0 : i32
    return %c0_i32, %c0_i32_0 : i32, i32
  }
  func.func @transform_5(%arg0: i32) -> (i32, i32, i32) {
    %c0_i32 = arith.constant 0 : i32
    %c0_i32_0 = arith.constant 0 : i32
    %c0_i32_1 = arith.constant 0 : i32
    return %arg0, %c0_i32, %c0_i32_0 : i32, i32, i32
  }
  func.func @transform_6(%arg0: i32) -> (i32, i32, i32) {
    %c0_i32 = arith.constant 0 : i32
    %c0_i32_0 = arith.constant 0 : i32
    %c0_i32_1 = arith.constant 0 : i32
    return %arg0, %c0_i32, %c0_i32_0 : i32, i32, i32
  }
}

module attributes {stable_mosaic.version = 11 : i64} {
  func.func @_texture_kernel(%arg0: i32, %arg1: memref<1x8x256xf32, #tpu.memory_space<vmem>>, %arg2: memref<1x8x256xf32, #tpu.memory_space<vmem>>, %arg3: memref<1x8x256xf32, #tpu.memory_space<vmem>>, %arg4: memref<1x8x256xf32, #tpu.memory_space<vmem>>, %arg5: memref<1x8x256xf32, #tpu.memory_space<vmem>>, %arg6: memref<16x216xbf16, #tpu.memory_space<vmem>>, %arg7: memref<16x1xf32, #tpu.memory_space<vmem>>, %arg8: memref<16x1xf32, #tpu.memory_space<vmem>>, %arg9: memref<16x16xbf16, #tpu.memory_space<vmem>>, %arg10: memref<16x1xf32, #tpu.memory_space<vmem>>, %arg11: memref<16x1xf32, #tpu.memory_space<vmem>>, %arg12: memref<1x16x256xf32, #tpu.memory_space<vmem>>) attributes {dimension_semantics = [#tpu.dimension_semantics<parallel>], iteration_bounds = array<i64: 2>, scalar_prefetch = 0 : i64, scratch_operands = 0 : i64, tpu.core_type = #tpu.core_type<tc>, window_params = [{transform_indices = @transform_0, window_bounds = array<i64: 1, 8, 256>}, {transform_indices = @transform_1, window_bounds = array<i64: 1, 8, 256>}, {transform_indices = @transform_2, window_bounds = array<i64: 1, 8, 256>}, {transform_indices = @transform_3, window_bounds = array<i64: 1, 8, 256>}, {transform_indices = @transform_4, window_bounds = array<i64: 1, 8, 256>}, {pipeline_mode = #tpu.pipeline_mode<synchronous>, transform_indices = @transform_5, window_bounds = array<i64: 16, 216>}, {pipeline_mode = #tpu.pipeline_mode<synchronous>, transform_indices = @transform_6, window_bounds = array<i64: 16, 1>}, {pipeline_mode = #tpu.pipeline_mode<synchronous>, transform_indices = @transform_7, window_bounds = array<i64: 16, 1>}, {pipeline_mode = #tpu.pipeline_mode<synchronous>, transform_indices = @transform_8, window_bounds = array<i64: 16, 16>}, {pipeline_mode = #tpu.pipeline_mode<synchronous>, transform_indices = @transform_9, window_bounds = array<i64: 16, 1>}, {pipeline_mode = #tpu.pipeline_mode<synchronous>, transform_indices = @transform_10, window_bounds = array<i64: 16, 1>}, {transform_indices = @transform_11, window_bounds = array<i64: 1, 16, 256>}]} {
    %0 = tpu.iota {dimensions = array<i32: 1>} : vector<1x256xi32>
    %c16_i32 = arith.constant 16 : i32
    %c0_i32 = arith.constant 0 : i32
    %1 = arith.cmpi eq, %c16_i32, %c0_i32 : i32
    %c1_i32 = arith.constant 1 : i32
    %2 = arith.select %1, %c1_i32, %c16_i32 : i32
    %3 = vector.broadcast %2 : i32 to vector<1x256xi32>
    %4 = arith.remsi %0, %3 : vector<1x256xi32>
    %c0_i32_0 = arith.constant 0 : i32
    %5 = vector.broadcast %c0_i32_0 : i32 to vector<1x256xi32>
    %6 = arith.cmpi ne, %4, %5 : vector<1x256xi32>
    %c0_i32_1 = arith.constant 0 : i32
    %7 = vector.broadcast %c0_i32_1 : i32 to vector<1x256xi32>
    %8 = arith.cmpi slt, %4, %7 : vector<1x256xi32>
    %c0_i32_2 = arith.constant 0 : i32
    %9 = arith.cmpi slt, %2, %c0_i32_2 : i32
    %10 = vector.broadcast %9 : i1 to vector<1x256xi1>
    %11 = vector.broadcast %10 : vector<1x256xi1> to vector<1x256xi1>
    %12 = arith.xori %8, %11 : vector<1x256xi1>
    %13 = arith.andi %12, %6 : vector<1x256xi1>
    %14 = vector.broadcast %2 : i32 to vector<1x256xi32>
    %15 = arith.addi %4, %14 : vector<1x256xi32>
    %16 = arith.select %13, %15, %4 : vector<1x256xi1>, vector<1x256xi32>
    %c0 = arith.constant 0 : index
    %c0_3 = arith.constant 0 : index
    %c0_4 = arith.constant 0 : index
    %17 = vector.load %arg3[%c0, %c0_3, %c0_4] : memref<1x8x256xf32, #tpu.memory_space<vmem>>, vector<1x8x256xf32>
    %18 = vector.shape_cast %17 : vector<1x8x256xf32> to vector<8x256xf32>
    %c0_5 = arith.constant 0 : index
    %c0_6 = arith.constant 0 : index
    %c0_7 = arith.constant 0 : index
    %19 = vector.load %arg4[%c0_5, %c0_6, %c0_7] : memref<1x8x256xf32, #tpu.memory_space<vmem>>, vector<1x8x256xf32>
    %20 = vector.shape_cast %19 : vector<1x8x256xf32> to vector<8x256xf32>
    %21 = arith.addf %18, %20 : vector<8x256xf32>
    %c0_8 = arith.constant 0 : index
    %c0_9 = arith.constant 0 : index
    %c0_10 = arith.constant 0 : index
    %22 = vector.load %arg5[%c0_8, %c0_9, %c0_10] : memref<1x8x256xf32, #tpu.memory_space<vmem>>, vector<1x8x256xf32>
    %23 = vector.shape_cast %22 : vector<1x8x256xf32> to vector<8x256xf32>
    %24 = arith.addf %21, %23 : vector<8x256xf32>
    %c0_11 = arith.constant 0 : index
    %c0_12 = arith.constant 0 : index
    %c0_13 = arith.constant 0 : index
    %25 = vector.load %arg1[%c0_11, %c0_12, %c0_13] : memref<1x8x256xf32, #tpu.memory_space<vmem>>, vector<1x8x256xf32>
    %26 = vector.shape_cast %25 : vector<1x8x256xf32> to vector<8x256xf32>
    %c0_14 = arith.constant 0 : index
    %c0_15 = arith.constant 0 : index
    %c0_16 = arith.constant 0 : index
    %27 = vector.load %arg2[%c0_14, %c0_15, %c0_16] : memref<1x8x256xf32, #tpu.memory_space<vmem>>, vector<1x8x256xf32>
    %28 = vector.shape_cast %27 : vector<1x8x256xf32> to vector<8x256xf32>
    %29 = tpu.concatenate %26, %28, %24 in 0 : vector<8x256xf32>, vector<8x256xf32>, vector<8x256xf32> -> vector<24x256xf32>
    %30 = arith.truncf %29 : vector<24x256xf32> to vector<24x256xbf16>
    %c0_17 = arith.constant 0 : index
    %c0_18 = arith.constant 0 : index
    %31 = vector.load %arg6[%c0_17, %c0_18] : memref<16x216xbf16, #tpu.memory_space<vmem>>, vector<16x216xbf16>
    %cst = arith.constant 0.000000e+00 : bf16
    %32 = vector.broadcast %cst : bf16 to vector<24x1xbf16>
    %33 = vector.extract_strided_slice %30 {offsets = [0, 16], sizes = [24, 16], strides = [1, 1]} : vector<24x256xbf16> to vector<24x16xbf16>
    %34 = vector.extract_strided_slice %30 {offsets = [0, 224], sizes = [24, 16], strides = [1, 1]} : vector<24x256xbf16> to vector<24x16xbf16>
    %35 = tpu.concatenate %32, %33, %30, %34, %32 in 1 : vector<24x1xbf16>, vector<24x16xbf16>, vector<24x256xbf16>, vector<24x16xbf16>, vector<24x1xbf16> -> vector<24x290xbf16>
    %36 = vector.extract_strided_slice %35 {offsets = [0, 0], sizes = [24, 256], strides = [1, 1]} : vector<24x290xbf16> to vector<24x256xbf16>
    %37 = vector.extract_strided_slice %35 {offsets = [0, 2], sizes = [24, 256], strides = [1, 1]} : vector<24x290xbf16> to vector<24x256xbf16>
    %c0_i32_19 = arith.constant 0 : i32
    %38 = vector.broadcast %c0_i32_19 : i32 to vector<1x256xi32>
    %39 = arith.cmpi eq, %16, %38 : vector<1x256xi32>
    %40 = vector.shape_cast %39 : vector<1x256xi1> to vector<1x256xi1>
    %41 = vector.broadcast %40 : vector<1x256xi1> to vector<24x256xi1>
    %42 = arith.select %41, %37, %36 : vector<24x256xi1>, vector<24x256xbf16>
    %43 = vector.extract_strided_slice %35 {offsets = [0, 1], sizes = [24, 256], strides = [1, 1]} : vector<24x290xbf16> to vector<24x256xbf16>
    %44 = vector.extract_strided_slice %35 {offsets = [0, 2], sizes = [24, 256], strides = [1, 1]} : vector<24x290xbf16> to vector<24x256xbf16>
    %45 = vector.extract_strided_slice %35 {offsets = [0, 0], sizes = [24, 256], strides = [1, 1]} : vector<24x290xbf16> to vector<24x256xbf16>
    %c15_i32 = arith.constant 15 : i32
    %46 = vector.broadcast %c15_i32 : i32 to vector<1x256xi32>
    %47 = arith.cmpi eq, %16, %46 : vector<1x256xi32>
    %48 = vector.shape_cast %47 : vector<1x256xi1> to vector<1x256xi1>
    %49 = vector.broadcast %48 : vector<1x256xi1> to vector<24x256xi1>
    %50 = arith.select %49, %45, %44 : vector<24x256xi1>, vector<24x256xbf16>
    %51 = vector.extract_strided_slice %35 {offsets = [0, 16], sizes = [24, 256], strides = [1, 1]} : vector<24x290xbf16> to vector<24x256xbf16>
    %52 = vector.extract_strided_slice %35 {offsets = [0, 18], sizes = [24, 256], strides = [1, 1]} : vector<24x290xbf16> to vector<24x256xbf16>
    %c0_i32_20 = arith.constant 0 : i32
    %53 = vector.broadcast %c0_i32_20 : i32 to vector<1x256xi32>
    %54 = arith.cmpi eq, %16, %53 : vector<1x256xi32>
    %55 = vector.shape_cast %54 : vector<1x256xi1> to vector<1x256xi1>
    %56 = vector.broadcast %55 : vector<1x256xi1> to vector<24x256xi1>
    %57 = arith.select %56, %52, %51 : vector<24x256xi1>, vector<24x256xbf16>
    %58 = vector.extract_strided_slice %35 {offsets = [0, 17], sizes = [24, 256], strides = [1, 1]} : vector<24x290xbf16> to vector<24x256xbf16>
    %59 = vector.extract_strided_slice %35 {offsets = [0, 18], sizes = [24, 256], strides = [1, 1]} : vector<24x290xbf16> to vector<24x256xbf16>
    %60 = vector.extract_strided_slice %35 {offsets = [0, 16], sizes = [24, 256], strides = [1, 1]} : vector<24x290xbf16> to vector<24x256xbf16>
    %c15_i32_21 = arith.constant 15 : i32
    %61 = vector.broadcast %c15_i32_21 : i32 to vector<1x256xi32>
    %62 = arith.cmpi eq, %16, %61 : vector<1x256xi32>
    %63 = vector.shape_cast %62 : vector<1x256xi1> to vector<1x256xi1>
    %64 = vector.broadcast %63 : vector<1x256xi1> to vector<24x256xi1>
    %65 = arith.select %64, %60, %59 : vector<24x256xi1>, vector<24x256xbf16>
    %66 = vector.extract_strided_slice %35 {offsets = [0, 32], sizes = [24, 256], strides = [1, 1]} : vector<24x290xbf16> to vector<24x256xbf16>
    %67 = vector.extract_strided_slice %35 {offsets = [0, 34], sizes = [24, 256], strides = [1, 1]} : vector<24x290xbf16> to vector<24x256xbf16>
    %c0_i32_22 = arith.constant 0 : i32
    %68 = vector.broadcast %c0_i32_22 : i32 to vector<1x256xi32>
    %69 = arith.cmpi eq, %16, %68 : vector<1x256xi32>
    %70 = vector.shape_cast %69 : vector<1x256xi1> to vector<1x256xi1>
    %71 = vector.broadcast %70 : vector<1x256xi1> to vector<24x256xi1>
    %72 = arith.select %71, %67, %66 : vector<24x256xi1>, vector<24x256xbf16>
    %73 = vector.extract_strided_slice %35 {offsets = [0, 33], sizes = [24, 256], strides = [1, 1]} : vector<24x290xbf16> to vector<24x256xbf16>
    %74 = vector.extract_strided_slice %35 {offsets = [0, 34], sizes = [24, 256], strides = [1, 1]} : vector<24x290xbf16> to vector<24x256xbf16>
    %75 = vector.extract_strided_slice %35 {offsets = [0, 32], sizes = [24, 256], strides = [1, 1]} : vector<24x290xbf16> to vector<24x256xbf16>
    %c15_i32_23 = arith.constant 15 : i32
    %76 = vector.broadcast %c15_i32_23 : i32 to vector<1x256xi32>
    %77 = arith.cmpi eq, %16, %76 : vector<1x256xi32>
    %78 = vector.shape_cast %77 : vector<1x256xi1> to vector<1x256xi1>
    %79 = vector.broadcast %78 : vector<1x256xi1> to vector<24x256xi1>
    %80 = arith.select %79, %75, %74 : vector<24x256xi1>, vector<24x256xbf16>
    %81 = tpu.concatenate %42, %43, %50, %57, %58, %65, %72, %73, %80 in 0 : vector<24x256xbf16>, vector<24x256xbf16>, vector<24x256xbf16>, vector<24x256xbf16>, vector<24x256xbf16>, vector<24x256xbf16>, vector<24x256xbf16>, vector<24x256xbf16>, vector<24x256xbf16> -> vector<216x256xbf16>
    %cst_24 = arith.constant dense<0.000000e+00> : vector<16x256xf32>
    %82 = tpu.matmul %31, %81, %cst_24 {dimension_numbers = #tpu.dot_dimension_numbers<[1], [0], [0], [1], [0, 0, 1, 1], [], []>} : vector<16x216xbf16>, vector<216x256xbf16>, vector<16x256xf32> -> vector<16x256xf32>
    %c0_25 = arith.constant 0 : index
    %c0_26 = arith.constant 0 : index
    %83 = vector.load %arg7[%c0_25, %c0_26] : memref<16x1xf32, #tpu.memory_space<vmem>>, vector<16x1xf32>
    %84 = vector.broadcast %83 : vector<16x1xf32> to vector<16x256xf32>
    %85 = arith.mulf %82, %84 : vector<16x256xf32>
    %c0_27 = arith.constant 0 : index
    %c0_28 = arith.constant 0 : index
    %86 = vector.load %arg8[%c0_27, %c0_28] : memref<16x1xf32, #tpu.memory_space<vmem>>, vector<16x1xf32>
    %87 = vector.broadcast %86 : vector<16x1xf32> to vector<16x256xf32>
    %88 = arith.addf %85, %87 : vector<16x256xf32>
    %cst_29 = arith.constant 0.000000e+00 : f32
    %89 = vector.broadcast %cst_29 : f32 to vector<16x256xf32>
    %90 = arith.cmpf oge, %88, %89 : vector<16x256xf32>
    %cst_30 = arith.constant 2.000000e-01 : f32
    %91 = vector.broadcast %cst_30 : f32 to vector<16x256xf32>
    %92 = arith.mulf %91, %88 : vector<16x256xf32>
    %93 = arith.select %90, %88, %92 : vector<16x256xi1>, vector<16x256xf32>
    %c0_31 = arith.constant 0 : index
    %c0_32 = arith.constant 0 : index
    %94 = vector.load %arg9[%c0_31, %c0_32] : memref<16x16xbf16, #tpu.memory_space<vmem>>, vector<16x16xbf16>
    %95 = arith.truncf %93 : vector<16x256xf32> to vector<16x256xbf16>
    %cst_33 = arith.constant dense<0.000000e+00> : vector<16x256xf32>
    %96 = tpu.matmul %94, %95, %cst_33 {dimension_numbers = #tpu.dot_dimension_numbers<[1], [0], [0], [1], [0, 0, 1, 1], [], []>} : vector<16x16xbf16>, vector<16x256xbf16>, vector<16x256xf32> -> vector<16x256xf32>
    %c0_34 = arith.constant 0 : index
    %c0_35 = arith.constant 0 : index
    %97 = vector.load %arg10[%c0_34, %c0_35] : memref<16x1xf32, #tpu.memory_space<vmem>>, vector<16x1xf32>
    %98 = vector.broadcast %97 : vector<16x1xf32> to vector<16x256xf32>
    %99 = arith.mulf %96, %98 : vector<16x256xf32>
    %c0_36 = arith.constant 0 : index
    %c0_37 = arith.constant 0 : index
    %100 = vector.load %arg11[%c0_36, %c0_37] : memref<16x1xf32, #tpu.memory_space<vmem>>, vector<16x1xf32>
    %101 = vector.broadcast %100 : vector<16x1xf32> to vector<16x256xf32>
    %102 = arith.addf %99, %101 : vector<16x256xf32>
    %cst_38 = arith.constant 0.000000e+00 : f32
    %103 = vector.broadcast %cst_38 : f32 to vector<16x256xf32>
    %104 = arith.cmpf oge, %102, %103 : vector<16x256xf32>
    %cst_39 = arith.constant 2.000000e-01 : f32
    %105 = vector.broadcast %cst_39 : f32 to vector<16x256xf32>
    %106 = arith.mulf %105, %102 : vector<16x256xf32>
    %107 = arith.select %104, %102, %106 : vector<16x256xi1>, vector<16x256xf32>
    %c0_40 = arith.constant 0 : index
    %c0_41 = arith.constant 0 : index
    %c0_42 = arith.constant 0 : index
    %108 = vector.load %arg12[%c0_40, %c0_41, %c0_42] : memref<1x16x256xf32, #tpu.memory_space<vmem>>, vector<1x16x256xf32>
    %109 = vector.shape_cast %108 : vector<1x16x256xf32> to vector<16x256xf32>
    %110 = vector.shape_cast %107 : vector<16x256xf32> to vector<1x16x256xf32>
    tpu.vector_store %arg12[%c0_40, %c0_41, %c0_42], %110 {strides = array<i32>} : memref<1x16x256xf32, #tpu.memory_space<vmem>>, vector<1x16x256xf32>,
    return
  }
  func.func @transform_0(%arg0: i32) -> (i32, i32, i32) {
    %c0_i32 = arith.constant 0 : i32
    %c0_i32_0 = arith.constant 0 : i32
    %c0_i32_1 = arith.constant 0 : i32
    return %arg0, %c0_i32, %c0_i32_0 : i32, i32, i32
  }
  func.func @transform_1(%arg0: i32) -> (i32, i32, i32) {
    %c0_i32 = arith.constant 0 : i32
    %c0_i32_0 = arith.constant 0 : i32
    %c0_i32_1 = arith.constant 0 : i32
    return %arg0, %c0_i32, %c0_i32_0 : i32, i32, i32
  }
  func.func @transform_2(%arg0: i32) -> (i32, i32, i32) {
    %c0_i32 = arith.constant 0 : i32
    %c0_i32_0 = arith.constant 0 : i32
    %c0_i32_1 = arith.constant 0 : i32
    return %arg0, %c0_i32, %c0_i32_0 : i32, i32, i32
  }
  func.func @transform_3(%arg0: i32) -> (i32, i32, i32) {
    %c0_i32 = arith.constant 0 : i32
    %c0_i32_0 = arith.constant 0 : i32
    %c0_i32_1 = arith.constant 0 : i32
    return %arg0, %c0_i32, %c0_i32_0 : i32, i32, i32
  }
  func.func @transform_4(%arg0: i32) -> (i32, i32, i32) {
    %c0_i32 = arith.constant 0 : i32
    %c0_i32_0 = arith.constant 0 : i32
    %c0_i32_1 = arith.constant 0 : i32
    return %arg0, %c0_i32, %c0_i32_0 : i32, i32, i32
  }
  func.func @transform_5(%arg0: i32) -> (i32, i32) {
    %c0_i32 = arith.constant 0 : i32
    %c0_i32_0 = arith.constant 0 : i32
    %c0_i32_1 = arith.constant 0 : i32
    return %c0_i32, %c0_i32_0 : i32, i32
  }
  func.func @transform_6(%arg0: i32) -> (i32, i32) {
    %c0_i32 = arith.constant 0 : i32
    %c0_i32_0 = arith.constant 0 : i32
    %c0_i32_1 = arith.constant 0 : i32
    return %c0_i32, %c0_i32_0 : i32, i32
  }
  func.func @transform_7(%arg0: i32) -> (i32, i32) {
    %c0_i32 = arith.constant 0 : i32
    %c0_i32_0 = arith.constant 0 : i32
    %c0_i32_1 = arith.constant 0 : i32
    return %c0_i32, %c0_i32_0 : i32, i32
  }
  func.func @transform_8(%arg0: i32) -> (i32, i32) {
    %c0_i32 = arith.constant 0 : i32
    %c0_i32_0 = arith.constant 0 : i32
    %c0_i32_1 = arith.constant 0 : i32
    return %c0_i32, %c0_i32_0 : i32, i32
  }
  func.func @transform_9(%arg0: i32) -> (i32, i32) {
    %c0_i32 = arith.constant 0 : i32
    %c0_i32_0 = arith.constant 0 : i32
    %c0_i32_1 = arith.constant 0 : i32
    return %c0_i32, %c0_i32_0 : i32, i32
  }
  func.func @transform_10(%arg0: i32) -> (i32, i32) {
    %c0_i32 = arith.constant 0 : i32
    %c0_i32_0 = arith.constant 0 : i32
    %c0_i32_1 = arith.constant 0 : i32
    return %c0_i32, %c0_i32_0 : i32, i32
  }
  func.func @transform_11(%arg0: i32) -> (i32, i32, i32) {
    %c0_i32 = arith.constant 0 : i32
    %c0_i32_0 = arith.constant 0 : i32
    %c0_i32_1 = arith.constant 0 : i32
    return %arg0, %c0_i32, %c0_i32_0 : i32, i32, i32
  }
}

</mosaic_0001>

<bundles_post_ra>
// kernel: decoder_forward.3
= control target key start
LH: loop header
LB: loop body
LE: loop exit
PB: predicated region body
PF: predicated region fallthrough
CT: control target
= control target key end

     0   :  { %s3284_s0 = inlined_call_operand.vmem [shape: f32[2,8,256], index: 0, kind: input, shape index: {}]   ;;  %s3285_s1 = inlined_call_operand.vmem [shape: f32[2,8,256], index: 1, kind: input, shape index: {}]   ;;  %s3286_s2 = inlined_call_operand.vmem [shape: bf16[16,144], index: 2, kind: input, shape index: {}]   ;;  %s3287_s3 = inlined_call_operand.vmem [shape: f32[16,1], index: 3, kind: input, shape index: {}]   ;;  %s3288_s4 = inlined_call_operand.vmem [shape: f32[16,1], index: 4, kind: input, shape index: {}]   ;;  %s3289_s5 = inlined_call_operand.vmem [shape: bf16[16,16], index: 5, kind: input, shape index: {}]   ;;  %s3290_s6 = inlined_call_operand.vmem [shape: f32[16,1], index: 6, kind: input, shape index: {}]   ;;  %s3291_s7 = inlined_call_operand.vmem [shape: f32[16,1], index: 7, kind: input, shape index: {}]   ;;  %s3292_s8 = inlined_call_operand.vmem [shape: f32[16,1], index: 8, kind: input, shape index: {}]   ;;  %s3293_s9 = inlined_call_operand.vmem [shape: f32[16,1], index: 9, kind: input, shape index: {}]   ;;  %s3294_s10 = inlined_call_operand.vmem [shape: f32[16,1], index: 10, kind: input, shape index: {}]   ;;  %s3295_s11 = inlined_call_operand.vmem [shape: bf16[8,16], index: 11, kind: input, shape index: {}]   ;;  %s3296_s12 = inlined_call_operand.vmem [shape: f32[8,1], index: 12, kind: input, shape index: {}]   ;;  %s3297_s13 = inlined_call_operand.vmem [shape: f32[8,1], index: 13, kind: input, shape index: {}]   ;;  %s3298_s14 = inlined_call_operand.vmem [shape: bf16[16,144], index: 14, kind: input, shape index: {}]   ;;  %s3299_s15 = inlined_call_operand.vmem [shape: f32[16,1], index: 15, kind: input, shape index: {}]   ;;  %s3300_s16 = inlined_call_operand.vmem [shape: f32[16,1], index: 16, kind: input, shape index: {}]   ;;  %s3301_s17 = inlined_call_operand.vmem [shape: bf16[8,144], index: 17, kind: input, shape index: {}]   ;;  %s3302_s18 = inlined_call_operand.vmem [shape: f32[8,1], index: 18, kind: input, shape index: {}]   ;;  %s3303_s19 = inlined_call_operand.vmem [shape: f32[8,1], index: 19, kind: input, shape index: {}]   ;;  %s3304_s20 = inlined_call_operand.vmem [shape: f32[2,16,256], index: 20, kind: output, shape index: {0}]   ;;  %s3305_s21 = inlined_call_operand.vmem [shape: f32[2,8,256], index: 21, kind: output, shape index: {1}]   ;;  %s3306_s22 = inlined_call_operand.vmem [shape: f32[2,8,256], index: 22, kind: output, shape index: {2}]  }
   0x1   :  { %3352 = sst [smem:[#allocation3_spill]] %s3284_s0 }
   0x2   :  { %3353 = sst [smem:[#allocation4_spill]] %s3285_s1 }
   0x3   :  { %3354 = sst [smem:[#allocation5_spill]] %s3286_s2 }
   0x4   :  { %3355 = sst [smem:[#allocation6_spill]] %s3287_s3  ;;  %s2451_s3 = smov 0  }
   0x5   :  { %3356 = sst [smem:[#allocation7_spill]] %s3288_s4 }
   0x6   :  { %3357 = sst [smem:[#allocation8_spill]] %s3289_s5 }
   0x7   :  { %3358 = sst [smem:[#allocation9_spill]] %s3290_s6 }
   0x8   :  { %3359 = sst [smem:[#allocation10_spill]] %s3291_s7 }
   0x9   :  { %3360 = sst [smem:[#allocation11_spill]] %s3292_s8 }
   0xa   :  { %3361 = sst [smem:[#allocation12_spill]] %s3293_s9 }
   0xb   :  { %3362 = sst [smem:[#allocation13_spill]] %s3294_s10 }
   0xc   :  { %3363 = sst [smem:[#allocation14_spill]] %s3304_s20 }
   0xd   :  { %3364 = sst [smem:[#allocation15_spill]] %s3306_s22 }
   0xe LB: > { %3365 = sst [smem:[#allocation2_spill]] %s2318_s3  ;;  %s2227_s28 = sadd.s32 4294967295, %s2318_s3   ;;  %s2318_s3 = sphi %s2451_s3, %s33_s3  }
   0xf   : > { %p2231_p0 = scmp.ge.s32.totalorder %s2318_s3, 1  ;;  %p627_p1 = scmp.lt.s32.totalorder %s2318_s3, 3 }
  0x11   : > { %p628_p2 = pnand %p2231_p0, %p627_p1 }
  0x12   : > { %p704_p3 = scmp.lt.s32.totalorder (!%p628_p2), %s2227_s28, 1  ;;  %s3366_s0 = sld [smem:[#allocation3_spill]] (!%p628_p2) }
  0x13   : > { %631 = sbr.rel (%p628_p2) target bundleno = 2791 (0xae7), region = 100  ;;  %s3367_s24 = sld [smem:[#allocation4_spill]] (!%p628_p2) }
  0x14   : > { %s3338_s25 = smov (!%p628_p2), 49   ;;  %s3340_s26 = smov (!%p628_p2), 113  }
  0x15   : > { %s3342_s2 = smov (!%p628_p2), 17   ;;  %s2324_s27 = smov (!%p628_p2), 34  }
  0x16   : > { %s2325_s30 = smov (!%p628_p2), 16   ;;  %s3336_s4 = smov (!%p628_p2), 2  }
  0x17   : > { %s2329_s1 = smov (!%p628_p2), 32   ;;  %s3334_s5 = smov (!%p628_p2), 97  }
  0x18   : > { %v732_v0 = vlaneseq  ;;  %v2320_v1 = vmov 0   ;;  %s3442_s28 = smov (!%p704_p3, %s2227_s28), 1  ;;  %vm780_vm6 = vcmask 7168   ;;  %vm775_vm7 = vcmask 138240   ;;  %s3376_s7 = sld [smem:[#allocation10_spill]] }
  0x19   : > { %2286 = vset.pattern.permute.xlu1 %v2320_v1  ;;  %2285 = vset.pattern.permute.xlu0 %v2320_v1  ;;  %s2465_s29 = sshll.u32 %s3442_s28, 4  ;;  %vm791_vm8 = vcmask 269312   ;;  %vm896_vm10 = vcmask 277504   ;;  %vm814_vm11 = vcmask 15360   ;;  %s3378_s20 = sld [smem:[#allocation14_spill]] }
  0x1a   : > { %v733_v2 = vand.u32 127, %v732_v0  ;;  %1235 = vmatprep.mubr.bf16.mxu1 %v2320_v1  ;;  %s708_s23 = scalar_lea.vmem %s3366_s0, %s2465_s29  ;;  %s713_s6 = scalar_lea.vmem %s3367_s24, %s2465_s29  ;;  %v803_v5 = vshrl.u32 %v732_v0, 7 }
  0x1b   : > { %v760_v6 = vld [vmem:[%s708_s23 + $0x8] sm:$0xff]  ;;  %v759_v8 = vld [vmem:[%s708_s23] sm:$0xff]  ;;  %s3345_s0 = smov 126   ;;  %s2328_s23 = smov 18  }
  0x1c   : > { %v734_v3 = vadd.s32 128, %v733_v2  ;;  %v739_v4 = vand.u32 15, %v733_v2  ;;  %v762_v7 = vld [vmem:[%s713_s6 + $0x8] sm:$0xff]  ;;  %v761_v11 = vld [vmem:[%s713_s6] sm:$0xff]  ;;  %v808_v15 = vsub.s32 4, %v803_v5  ;;  %v804_v17 = vsub.s32 0, %v803_v5 }
  0x1d   : > { %v764_v10 = vpack.c.bf16 %v762_v7, %v760_v6  ;;  %v763_v12 = vpack.c.bf16 %v761_v11, %v759_v8  ;;  %s3331_s24 = smov 96   ;;  %s3329_s6 = smov 114  }
  0x1e   : > { %v746_v9 = vand.u32 15, %v734_v3  ;;  %vm794_vm0 = vcmp.eq.s32.totalorder %v739_v4, 0  ;;  %vm2475_vm2 = vcmp.eq.s32.totalorder %v739_v4, 15  ;;  %s3379_s8 = sld [smem:[#allocation11_spill]]  ;;  %s3386_s22 = smov 97  }
  0x1f   : > { %778 = vrot.lane.b32.xlu1 %v764_v10, %s3338_s25  ;;  %768 = vrot.lane.b32.xlu0 %v763_v12, %s3340_s26  ;;  %s3374_s25 = sld [smem:[#allocation7_spill]]  ;;  %s3389_s3 = smov 114  }
  0x20   : > { %vm795_vm1 = vcmp.eq.s32.totalorder %v746_v9, 0  ;;  %vm2479_vm3 = vcmp.eq.s32.totalorder %v746_v9, 15  ;;  %s3380_s10 = sld [smem:[#allocation13_spill]] }
  0x21   : > { %vm800_vm4 = vmpackc.low %vm795_vm1, %vm794_vm0  ;;  %vm883_vm0 = vcmask 130048   ;;  %vm856_vm1 = vcmask 1031168   ;;  %s3387_s9 = sld [smem:[#allocation12_spill]] }
  0x22   : > { %v801_v16 = vsel %vm800_vm4, 65537, %v2320_v1  ;;  %vm837_vm5 = vmpackc.low %vm2479_vm3, %vm2475_vm2  ;;  %vm867_vm3 = vcmask 146432  }
  0x23   : > { %771 = vrot.lane.b32.xlu1 %v763_v12, %s3342_s2  ;;  %v2491_v18 = vrot.slane %v801_v16, %v808_v15  ;;  %773 = vrot.lane.b32.xlu0 %v764_v10, %s3342_s2  ;;  %v2494_v19 = vrot.slane %v801_v16, %v804_v17  ;;  %v838_v20 = vsel %vm837_vm5, 65537, %v2320_v1  ;;  %s3391_s2 = smov 112  }
  0x24   : > { %v2498_v21 = vrot.slane %v838_v20, %v804_v17  ;;  %v2501_v22 = vrot.slane %v838_v20, %v808_v15 }
  0x27   : > { %894 = vrot.lane.b32.xlu1 %v2491_v18, %s2324_s27  ;;  %892 = vrot.lane.b32.xlu0 %v2494_v19, %s2324_s27  ;;  %s3327_s27 = smov 112  }
  0x2b   : > { %879 = vrot.lane.b32.xlu1 %v2498_v21, %s2325_s30  ;;  %881 = vrot.lane.b32.xlu0 %v2501_v22, %s2325_s30  ;;  %s3325_s30 = smov 1  }
  0x91   : > { %v779_v23 = vpop.permute.xlu1 %778  ;;  %v769_v24 = vpop.permute.xlu0 %768 }
  0x92   : > { %v783_v25 = vsel %vm780_vm6, 0, %v769_v24 }
  0x95   : > { %v772_v26 = vpop.permute.xlu1 %771  ;;  %v774_v28 = vpop.permute.xlu0 %773 }
  0x96   : > { %v2507_v27 = vsel %vm775_vm7, %v783_v25, %v772_v26  ;;  %v2510_v29 = vsel %vm775_vm7, %v772_v26, %v774_v28  ;;  %v790_v30 = vsel %vm775_vm7, %v774_v28, %v779_v23 }
  0x97   : > { %820 = vrot.lane.b32.xlu0 %v2507_v27, %s3336_s4  ;;  %822 = vrot.lane.b32.xlu1 %v2510_v29, %s3336_s4  ;;  %v2518_v31 = vsel %vm791_vm8, %v790_v30, 0 }
  0x99   : > { %v2542_v32 = vpop.permute.xlu0 %892  ;;  %v2544_v33 = vpop.permute.xlu1 %894 }
  0x9a   : > { %vm898_vm9 = vcmp.ne.s16.totalorder %v2542_v32, 0  ;;  %v2563_v42 = vsel %vm896_vm10, %v2542_v32, %v2544_v33  ;;  %vm900_vm15 = vcmp.ne.s16.totalorder %v2544_v33, 0  ;;  %vm3312_vm10 = vcmp.ne.s16.totalorder %v2498_v21, 0 }
  0x9b   : > { %872 = vrot.lane.b32.xlu0 %v2518_v31, %s3336_s4  ;;  %852 = vrot.lane.b32.xlu1 %v2510_v29, %s3345_s0  ;;  %vm899_vm13 = vcmp.ne.s16.totalorder %v2563_v42, 0 }
  0x9d   : > { %v2546_v34 = vpop.permute.xlu0 %881  ;;  %v2548_v35 = vpop.permute.xlu1 %879 }
  0x9e   : > { %vm887_vm12 = vcmp.ne.s16.totalorder %v2546_v34, 0  ;;  %v2594_v50 = vsel %vm883_vm0, %v2548_v35, %v2546_v34  ;;  %vm885_vm5 = vcmp.ne.s16.totalorder %v2548_v35, 0 }
  0x9f   : > { %854 = vrot.lane.b32.xlu0 %v2518_v31, %s3345_s0  ;;  %850 = vrot.lane.b32.xlu1 %v2507_v27, %s3345_s0  ;;  %vm886_vm2 = vcmp.ne.s16.totalorder %v2594_v50, 0 }
  0xa3   : > { %863 = vrot.lane.b32.xlu0 %v2494_v19, %s2328_s23  ;;  %865 = vrot.lane.b32.xlu1 %v2491_v18, %s2328_s23  ;;  %s3323_s23 = smov 98  }
  0xa7   : > { %904 = vrot.lane.b32.xlu0 %v2498_v21, %s2329_s1  ;;  %906 = vrot.lane.b32.xlu1 %v2501_v22, %s2329_s1  ;;  %s3385_s1 = smov 126  }
  0xab   : > { %979 = vrot.lane.b32.xlu0 %v2510_v29, %s3334_s5  ;;  %946 = vrot.lane.b32.xlu1 %v2510_v29, %s3340_s26 }
  0xaf   : > { %977 = vrot.lane.b32.xlu0 %v2507_v27, %s3334_s5  ;;  %981 = vrot.lane.b32.xlu1 %v2518_v31, %s3334_s5  ;;  %s3382_s5 = smov 113  }
  0xb3   : > { %948 = vrot.lane.b32.xlu0 %v2518_v31, %s3340_s26 }
 0x109   : > { %v2551_v36 = vpop.permute.xlu0 %820  ;;  %v2553_v37 = vpop.permute.xlu1 %822 }
 0x10a   : > { %v901_v38 = vsel %vm898_vm9, %v2507_v27, %v2551_v36  ;;  %v2572_v44 = vsel %vm814_vm11, %v2551_v36, %v2553_v37 }
 0x10b   : > { %968 = vrot.lane.b32.xlu1 %v901_v38, %s3331_s24  ;;  %v902_v47 = vsel %vm899_vm13, %v2510_v29, %v2572_v44 }
 0x10d   : > { %v873_v39 = vpop.permute.xlu0 %872  ;;  %v853_v40 = vpop.permute.xlu1 %852 }
 0x10e   : > { %v874_v49 = vsel %vm814_vm11, %v2553_v37, %v873_v39 }
 0x10f   : > { %v903_v51 = vsel %vm900_vm15, %v2518_v31, %v874_v49 }
 0x111   : > { %v855_v41 = vpop.permute.xlu0 %854  ;;  %v851_v46 = vpop.permute.xlu1 %850 }
 0x112   : > { %v891_v43 = vsel %vm887_vm12, %v2518_v31, %v855_v41  ;;  %v858_v53 = vsel %vm856_vm1, %v853_v40, %v855_v41  ;;  %v857_v55 = vsel %vm856_vm1, %v851_v46, %v853_v40 }
 0x113   : > { %960 = vrot.lane.b32.xlu1 %v891_v43, %s3329_s6  ;;  %v890_v54 = vsel %vm886_vm2, %v2510_v29, %v858_v53  ;;  %v889_v58 = vsel %vm885_vm5, %v2507_v27, %v857_v55  ;;  %v861_v59 = vsel %vm3312_vm10, %v2507_v27, %v857_v55  ;;  %vm908_vm10 = vcmask 261120  }
 0x115   : > { %v2575_v45 = vpop.permute.xlu0 %863  ;;  %v2601_v52 = vpop.permute.xlu1 %865 }
 0x116   : > { %vm3311_vm14 = vcmp.ne.s16.totalorder %v2575_v45, 0  ;;  %vm3313_vm4 = vcmp.ne.s16.totalorder %v2601_v52, 0  ;;  %v2617_v56 = vsel %vm867_vm3, %v2575_v45, %v2601_v52  ;;  %vm3314_vm3 = vcmp.ne.s16.totalorder %v2501_v22, 0 }
 0x117   : > { %970 = vrot.lane.b32.xlu1 %v902_v47, %s3331_s24  ;;  %v876_v48 = vsel %vm3311_vm14, %v2507_v27, %v2551_v36  ;;  %v878_v57 = vsel %vm3313_vm4, %v2518_v31, %v874_v49  ;;  %vm3315_vm14 = vcmp.ne.s16.totalorder %v2617_v56, 0  ;;  %v862_v63 = vsel %vm3314_vm3, %v2510_v29, %v858_v53 }
 0x118   : > { %935 = vrot.lane.b32.xlu0 %v876_v48, %s3327_s27  ;;  %v877_v61 = vsel %vm3315_vm14, %v2510_v29, %v2572_v44  ;;  %vm3317_vm3 = vcmask 793600  }
 0x119   : > { %v2632_v60 = vpop.permute.xlu1 %906  ;;  %v2641_v62 = vpop.permute.xlu0 %904 }
 0x11a   : > { %vm3316_vm4 = vcmp.ne.s16.totalorder %v2632_v60, 0  ;;  %v2656_v2 = vsel %vm908_vm10, %v2641_v62, %v2632_v60  ;;  %vm3320_vm10 = vcmp.ne.s16.totalorder %v2641_v62, 0 }
 0x11b   : > { %944 = vrot.lane.b32.xlu1 %v2507_v27, %s3340_s26  ;;  %v915_v4 = vsel %vm3316_vm4, %v2518_v31, %v855_v41  ;;  %vm3321_vm14 = vcmp.ne.s16.totalorder %v2656_v2, 0  ;;  %v913_v10 = vsel %vm3320_vm10, %v2507_v27, %v857_v55  ;;  %vm3318_vm4 = vcmask 924672   ;;  %s3375_s26 = sld [smem:[#allocation9_spill]] }
 0x11c   : > { %972 = vrot.lane.b32.xlu0 %v903_v51, %s3331_s24  ;;  %v914_v8 = vsel %vm3321_vm14, %v2510_v29, %v858_v53  ;;  %vm3349_vm10 = vcmask 916480   ;;  %s3373_s24 = sld [smem:[#allocation6_spill]] }
 0x11d   : > { %v947_v0 = vpop.permute.xlu1 %946  ;;  %v980_v3 = vpop.permute.xlu0 %979 }
 0x11f   : > { %916 = vrot.lane.b32.xlu1 %v2507_v27, %s3325_s30 }
 0x120   : > { %958 = vrot.lane.b32.xlu0 %v890_v54, %s3329_s6 }
 0x121   : > { %v982_v5 = vpop.permute.xlu1 %981  ;;  %v978_v7 = vpop.permute.xlu0 %977 }
 0x122   : > { %v985_v6 = vsel %vm3317_vm3, %v980_v3, %v982_v5  ;;  %v984_v9 = vsel %vm3317_vm3, %v978_v7, %v980_v3  ;;  %vm3319_vm3 = vcmask 785408   ;;  %v1164_v7 = vld [vmem:[%s3374_s25 + $0x8] sm:$0xff] }
 0x123   : > { %939 = vrot.lane.b32.xlu1 %v878_v57, %s3327_s27 }
 0x124   : > { %956 = vrot.lane.b32.xlu0 %v889_v58, %s3329_s6  ;;  %s3377_s6 = sld [smem:[#allocation8_spill]] }
 0x125   : > { %v949_v11 = vpop.permute.xlu0 %948 }
 0x126   : > { %v952_v12 = vsel %vm3318_vm4, %v947_v0, %v949_v11 }
 0x127   : > { %927 = vrot.lane.b32.xlu1 %v861_v59, %s3336_s4 }
 0x128   : > { %937 = vrot.lane.b32.xlu0 %v877_v61, %s3327_s27  ;;  %s2258_s27 = sshll.u32 %s3442_s28, 5  ;;  %s3384_s28 = smov 2  }
 0x12b   : > { %920 = vrot.lane.b32.xlu1 %v2518_v31, %s3325_s30 }
 0x12c   : > { %929 = vrot.lane.b32.xlu0 %v862_v63, %s3336_s4 }
 0x12f   : > { %812 = vrot.lane.b32.xlu1 %v2491_v18, %s3336_s4 }
 0x130   : > { %918 = vrot.lane.b32.xlu0 %v2510_v29, %s3325_s30  ;;  %s3372_s30 = sld [smem:[#allocation5_spill]] }
 0x133   : > { %993 = vrot.lane.b32.xlu1 %v915_v4, %s3323_s23 }
 0x134   : > { %810 = vrot.lane.b32.xlu0 %v2494_v19, %s3336_s4  ;;  %s3381_s4 = smov 17  }
 0x137   : > { %1054 = vrot.lane.b32.xlu1 %v985_v6, %s3345_s0  ;;  %v1147_v6 = vld [vmem:[%s3373_s24] sm:$0xff] }
 0x138   : > { %991 = vrot.lane.b32.xlu0 %v914_v8, %s3323_s23 }
 0x13b   : > { %1052 = vrot.lane.b32.xlu1 %v984_v9, %s3345_s0  ;;  %v1148_v9 = vld [vmem:[%s3373_s24 + $0x8] sm:$0xff] }
 0x13c   : > { %989 = vrot.lane.b32.xlu0 %v913_v10, %s3323_s23  ;;  %v1263_v10 = vld [vmem:[%s3376_s7 + $0x8] sm:$0xff]  ;;  %s718_s23 = scalar_lea.vmem %s3378_s20, %s2258_s27  ;;  %s3388_s27 = smov 96  }
 0x13f   : > { %1038 = vrot.lane.b32.xlu1 %v949_v11, %s3345_s0  ;;  %v1163_v11 = vld [vmem:[%s3374_s25] sm:$0xff] }
 0x140   : > { %1056 = vrot.lane.b32.xlu0 %v982_v5, %s3345_s0 }
 0x144   : > { %1036 = vrot.lane.b32.xlu0 %v952_v12, %s3345_s0  ;;  %v1246_v12 = vld [vmem:[%s3375_s26] sm:$0xff] }
 0x17d   : > { %v969_v13 = vpop.permute.xlu1 %968 }
 0x185   : > { %v961_v14 = vpop.permute.xlu1 %960 }
 0x189   : > { %v971_v15 = vpop.permute.xlu1 %970 }
 0x18a   : > { %v936_v16 = vpop.permute.xlu0 %935  ;;  %v975_v38 = vsel %vm3319_vm3, %v969_v13, %v971_v15  ;;  %v1262_v13 = vld [vmem:[%s3376_s7] sm:$0xff]  ;;  %s3439_s7 = sld [smem:[#allocation15_spill]] }
 0x18d   : > { %v945_v17 = vpop.permute.xlu1 %944 }
 0x18e   : > { %v973_v18 = vpop.permute.xlu0 %972  ;;  %v951_v19 = vsel %vm3318_vm4, %v945_v17, %v947_v0  ;;  %vm3350_vm4 = vcmask 932864  }
 0x18f   : > { %1034 = vrot.lane.b32.xlu0 %v951_v19, %s3345_s0  ;;  %1050 = vrot.lane.b32.xlu1 %v973_v18, %s3345_s0  ;;  %v976_v26 = vsel %vm3319_vm3, %v971_v15, %v973_v18 }
 0x191   : > { %v917_v20 = vpop.permute.xlu1 %916 }
 0x192   : > { %v959_v23 = vpop.permute.xlu0 %958 }
 0x193   : > { %1044 = vrot.lane.b32.xlu0 %v961_v14, %s3345_s0  ;;  %v964_v51 = vsel %vm3350_vm4, %v959_v23, %v961_v14 }
 0x195   : > { %v940_v24 = vpop.permute.xlu1 %939 }
 0x196   : > { %v957_v25 = vpop.permute.xlu0 %956 }
 0x197   : > { %1048 = vrot.lane.b32.xlu0 %v976_v26, %s3345_s0  ;;  %v963_v58 = vsel %vm3350_vm4, %v957_v25, %v959_v23 }
 0x199   : > { %v928_v28 = vpop.permute.xlu1 %927 }
 0x19a   : > { %v938_v30 = vpop.permute.xlu0 %937 }
 0x19b   : > { %1046 = vrot.lane.b32.xlu0 %v975_v38, %s3345_s0  ;;  %v943_v63 = vsel %vm3349_vm10, %v938_v30, %v940_v24  ;;  %v942_v5 = vsel %vm3349_vm10, %v936_v16, %v938_v30 }
 0x19d   : > { %v921_v39 = vpop.permute.xlu1 %920 }
 0x19e   : > { %v930_v40 = vpop.permute.xlu0 %929 }
 0x19f   : > { %1032 = vrot.lane.b32.xlu0 %v940_v24, %s3345_s0  ;;  %1026 = vrot.lane.b32.xlu1 %v930_v40, %s3345_s0  ;;  %v931_v55 = vsel %vm814_vm11, %v928_v28, %v930_v40 }
 0x1a1   : > { %v2692_v41 = vpop.permute.xlu1 %812 }
 0x1a2   : > { %v919_v43 = vpop.permute.xlu0 %918 }
 0x1a3   : > { %1022 = vrot.lane.b32.xlu0 %v928_v28, %s3345_s0  ;;  %v923_v46 = vsel %vm780_vm6, %v917_v20, %v919_v43  ;;  %v924_v49 = vsel %vm780_vm6, %v919_v43, %v921_v39 }
 0x1a4   : > { %1018 = vrot.lane.b32.xlu1 %v923_v46, %s3345_s0 }
 0x1a5   : > { %v994_v47 = vpop.permute.xlu1 %993 }
 0x1a6   : > { %v2697_v48 = vpop.permute.xlu0 %810 }
 0x1a7   : > { %1020 = vrot.lane.b32.xlu0 %v924_v49, %s3345_s0  ;;  %v2705_v53 = vsel %vm814_vm11, %v2697_v48, %v2692_v41  ;;  %vm3333_vm14 = vcmp.ne.s16.totalorder %v2697_v48, 0 }
 0x1a8   : > { %1042 = vrot.lane.b32.xlu1 %v964_v51, %s3345_s0  ;;  %vm3322_vm3 = vcmp.ne.s16.totalorder %v2705_v53, 0  ;;  %v828_v4 = vsel %vm3333_vm14, %v2507_v27, %v2551_v36  ;;  %v2289_v27 = vld [vmem:[%s3372_s30 + $0x4] ss:$8 sps:$4 sm:$0xff]   ;;  %vm3347_vm14 = vcmask 801792  }
 0x1a9   : > { %v1055_v57 = vpop.permute.xlu1 %1054  ;;  %v829_v61 = vsel %vm3322_vm3, %v2510_v29, %v2572_v44  ;;  %vm3348_vm3 = vcmp.ne.s16.totalorder %v2692_v41, 0  ;;  %2244 = vmatprep.mubr.msk.bf16.mxu0 %vm883_vm0, %v2289_v27 }
 0x1aa   : > { %v992_v54 = vpop.permute.xlu0 %991  ;;  %v830_v36 = vsel %vm3348_vm3, %v2518_v31, %v2553_v37  ;;  %v1247_v31 = vld [vmem:[%s3375_s26 + $0x8] sm:$0xff] }
 0x1ab   : > { %1024 = vrot.lane.b32.xlu0 %v931_v55, %s3345_s0  ;;  %v997_v8 = vsel %vm3347_vm14, %v992_v54, %v994_v47 }
 0x1ac   : > { %1040 = vrot.lane.b32.xlu1 %v963_v58, %s3345_s0 }
 0x1ad   : > { %v1053_v0 = vpop.permute.xlu1 %1052 }
 0x1ae   : > { %v990_v59 = vpop.permute.xlu0 %989  ;;  %v1078_v44 = vsel %vm856_vm1, %v1053_v0, %v1055_v57 }
 0x1af   : > { %1012 = vrot.lane.b32.xlu0 %v829_v61, %s3345_s0  ;;  %v996_v37 = vsel %vm3347_vm14, %v990_v59, %v992_v54 }
 0x1b0   : > { %1030 = vrot.lane.b32.xlu1 %v943_v63, %s3345_s0 }
 0x1b1   : > { %v1039_v16 = vpop.permute.xlu1 %1038 }
 0x1b2   : > { %v1057_v3 = vpop.permute.xlu0 %1056 }
 0x1b3   : > { %1010 = vrot.lane.b32.xlu0 %v828_v4, %s3345_s0  ;;  %v1079_v29 = vsel %vm856_vm1, %v1055_v57, %v1057_v3 }
 0x1b4   : > { %1028 = vrot.lane.b32.xlu1 %v942_v5, %s3345_s0  ;;  %1104 = vmatprep.subr.bf16.mxu0 %v1079_v29 }
 0x1b5   : > { %1105 = vmatpush1.bf16.msra.mxu0 %v1078_v44 }
 0x1b6   : > { %v1037_v14 = vpop.permute.xlu0 %1036 }
 0x1b7   : > { %1062 = vrot.lane.b32.xlu0 %v994_v47, %s3345_s0  ;;  %v1073_v49 = vsel %vm856_vm1, %v1037_v14, %v1039_v16 }
 0x1b8   : > { %1016 = vrot.lane.b32.xlu1 %v917_v20, %s3345_s0 }
 0x1bb   : > { %1151 = vperm.xlu0 %2285, %v1147_v6  }
 0x1bc   : > { %1014 = vrot.lane.b32.xlu1 %v830_v36, %s3345_s0 }
 0x1bf   : > { %1172 = vperm.xlu0 %2285, %v1164_v7  }
 0x1c0   : > { %1060 = vrot.lane.b32.xlu1 %v997_v8, %s3345_s0 }
 0x1c3   : > { %1255 = vperm.xlu0 %2285, %v1247_v31  }
 0x1c4   : > { %1058 = vrot.lane.b32.xlu1 %v996_v37, %s3345_s0  ;;  %v2287_v37 = vld [vmem:[%s3372_s30] ss:$8 sps:$4 sm:$0xff]   ;;  %s3392_s0 = smov 1  }
 0x1c7   : > { %1271 = vperm.xlu0 %2285, %v1263_v10  }
 0x1c8   : > { %1156 = vperm.xlu1 %2286, %v1148_v9  }
 0x1cc   : > { %1167 = vperm.xlu1 %2286, %v1163_v11  }
 0x1d0   : > { %1250 = vperm.xlu1 %2286, %v1246_v12  }
 0x1d4   : > { %1266 = vperm.xlu1 %2286, %v1262_v13  }
 0x201   : > { %v1035_v15 = vpop.permute.xlu0 %1034  ;;  %v1051_v18 = vpop.permute.xlu1 %1050 }
 0x202   : > { %v1072_v54 = vsel %vm856_vm1, %v1035_v15, %v1037_v14 }
 0x205   : > { %v1045_v17 = vpop.permute.xlu0 %1044 }
 0x209   : > { %v1049_v19 = vpop.permute.xlu0 %1048 }
 0x20a   : > { %v1077_v20 = vsel %vm856_vm1, %v1049_v19, %v1051_v18 }
 0x20b   : > { %1106 = vmatprep.subr.bf16.mxu0 %v1077_v20 }
 0x20d   : > { %v1047_v23 = vpop.permute.xlu0 %1046 }
 0x20e   : > { %v1076_v24 = vsel %vm856_vm1, %v1047_v23, %v1049_v19 }
 0x20f   : > { %1107 = vmatpush1.bf16.msra.mxu0 %v1076_v24 }
 0x211   : > { %v1027_v25 = vpop.permute.xlu1 %1026  ;;  %v1033_v26 = vpop.permute.xlu0 %1032 }
 0x215   : > { %v1023_v28 = vpop.permute.xlu0 %1022 }
 0x216   : > { %v1019_v30 = vpop.permute.xlu1 %1018 }
 0x219   : > { %v1021_v38 = vpop.permute.xlu0 %1020 }
 0x21a   : > { %v1043_v39 = vpop.permute.xlu1 %1042  ;;  %v1067_v4 = vsel %vm856_vm1, %v1019_v30, %v1021_v38 }
 0x21b   : > { %v1075_v40 = vsel %vm856_vm1, %v1043_v39, %v1045_v17 }
 0x21c   : > { %1108 = vmatprep.subr.bf16.mxu0 %v1075_v40 }
 0x21d   : > { %v1025_v47 = vpop.permute.xlu0 %1024 }
 0x21e   : > { %v1041_v43 = vpop.permute.xlu1 %1040  ;;  %v1069_v61 = vsel %vm856_vm1, %v1025_v47, %v1027_v25  ;;  %v1068_v0 = vsel %vm856_vm1, %v1023_v28, %v1025_v47 }
 0x21f   : > { %v1074_v46 = vsel %vm856_vm1, %v1041_v43, %v1043_v39 }
 0x220   : > { %1109 = vmatpush1.bf16.msra.mxu0 %v1074_v46 }
 0x221   : > { %1110 = vmatprep.subr.bf16.mxu0 %v1073_v49  ;;  %v1013_v57 = vpop.permute.xlu0 %1012 }
 0x222   : > { %v1031_v51 = vpop.permute.xlu1 %1030 }
 0x223   : > { %v1071_v55 = vsel %vm856_vm1, %v1031_v51, %v1033_v26 }
 0x224   : > { %1111 = vmatpush1.bf16.msra.mxu0 %v1072_v54  ;;  %v2290_v54 = vld [vmem:[%s3377_s6] sm:$0xff]   ;;  %s3398_s6 = smov 98  }
 0x225   : > { %1112 = vmatprep.subr.bf16.mxu0 %v1071_v55  ;;  %v1011_v3 = vpop.permute.xlu0 %1010 }
 0x226   : > { %v1029_v58 = vpop.permute.xlu1 %1028  ;;  %v1064_v6 = vsel %vm856_vm1, %v1011_v3, %v1013_v57 }
 0x227   : > { %v1070_v59 = vsel %vm856_vm1, %v1029_v58, %v1031_v51 }
 0x228   : > { %1113 = vmatpush1.bf16.msra.mxu0 %v1070_v59 }
 0x229   : > { %1114 = vmatprep.subr.bf16.mxu0 %v1069_v61  ;;  %v1063_v27 = vpop.permute.xlu0 %1062 }
 0x22a   : > { %v1017_v63 = vpop.permute.xlu1 %1016 }
 0x22b   : > { %v1066_v29 = vsel %vm856_vm1, %v1017_v63, %v1019_v30 }
 0x22c   : > { %1115 = vmatpush1.bf16.msra.mxu0 %v1068_v0 }
 0x22d   : > { %1116 = vmatprep.subr.bf16.mxu0 %v1067_v4 }
 0x22e   : > { %v1015_v5 = vpop.permute.xlu1 %1014 }
 0x22f   : > { %v1065_v44 = vsel %vm856_vm1, %v1013_v57, %v1015_v5 }
 0x230   : > { %1117 = vmatpush1.bf16.msra.mxu0 %v1066_v29 }
 0x231   : > { %1118 = vmatprep.subr.bf16.mxu0 %v1065_v44 }
 0x232   : > { %v1061_v36 = vpop.permute.xlu1 %1060 }
 0x233   : > { %v1081_v7 = vsel %vm856_vm1, %v1061_v36, %v1063_v27 }
 0x234   : > { %1119 = vmatpush1.bf16.msra.mxu0 %v1064_v6 }
 0x235   : > { %1134 = vmatprep.subr.bf16.mxu0 %v1081_v7 }
 0x236   : > { %v1059_v8 = vpop.permute.xlu1 %1058  ;;  %v1152_v10 = vpop.permute.xlu0 %1151 }
 0x237   : > { %v1080_v31 = vsel %vm856_vm1, %v1059_v8, %v1061_v36 }
 0x238   : > { %1135 = vmatpush2.bf16.msra.mxu0 %v1080_v31 }
 0x23a   : > { %v1173_v19 = vpop.permute.xlu0 %1172 }
 0x23b   : > { %1137 = vmatmul.mubr.bf16.vlgmr.msra.gmra.mxu0 %v2287_v37 }
 0x23e   : > { %v1256_v57 = vpop.permute.xlu0 %1255 }
 0x242   : > { %v1272_v27 = vpop.permute.xlu0 %1271 }
 0x243   : > { %v1157_v9 = vpop.permute.xlu1 %1156 }
 0x247   : > { %v1168_v15 = vpop.permute.xlu1 %1167 }
 0x24b   : > { %v1251_v55 = vpop.permute.xlu1 %1250 }
 0x24f   : > { %v1267_v61 = vpop.permute.xlu1 %1266 }
 0x2fb   : > { %v1138_v11 = vpop.f32.mrf.mxu0 }
 0x2fc   : > { %v1159_v12 = vmul.f32 %v1152_v10, %v1138_v11 }
 0x2fd   : > { %v1140_v13 = vpop.f32.mrf.mxu0 }
 0x2fe   : > { %v1160_v14 = vmul.f32 %v1152_v10, %v1140_v13  ;;  %v1175_v20 = vadd.f32 %v1168_v15, %v1159_v12 }
 0x2ff   : > { %v1142_v16 = vpop.f32.mrf.mxu0 }
 0x300   : > { %v1176_v17 = vadd.f32 %v1168_v15, %v1160_v14  ;;  %v1161_v18 = vmul.f32 %v1157_v9, %v1142_v16  ;;  %v1183_v38 = vmul.f32 0.2, %v1175_v20  ;;  %vm1179_vm4 = vcmp.ge.f32.partialorder %v1175_v20, 0.0 }
 0x301   : > { %v1144_v23 = vpop.f32.mrf.mxu0 }
 0x302   : > { %v1177_v24 = vadd.f32 %v1173_v19, %v1161_v18  ;;  %v1162_v25 = vmul.f32 %v1157_v9, %v1144_v23  ;;  %v1184_v28 = vmul.f32 0.2, %v1176_v17  ;;  %vm1180_vm3 = vcmp.ge.f32.partialorder %v1176_v17, 0.0  ;;  %v1304_v18 = vld [vmem:[%s3379_s8 + $0x8] sm:$0xff] }
 0x303   : > { %v1187_v49 = vsel %vm1179_vm4, %v1175_v20, %v1183_v38 }
 0x304   : > { %v1178_v26 = vadd.f32 %v1173_v19, %v1162_v25  ;;  %vm1181_vm14 = vcmp.ge.f32.partialorder %v1177_v24, 0.0  ;;  %v1185_v30 = vmul.f32 0.2, %v1177_v24  ;;  %v1188_v43 = vsel %vm1180_vm3, %v1176_v17, %v1184_v28  ;;  %v1303_v17 = vld [vmem:[%s3379_s8] sm:$0xff]  ;;  %s728_s8 = scalar_lea.vmem %s3439_s7, %s2465_s29 }
 0x306   : > { %vm1182_vm10 = vcmp.ge.f32.partialorder %v1178_v26, 0.0  ;;  %v1186_v39 = vmul.f32 0.2, %v1178_v26  ;;  %v1189_v40 = vsel %vm1181_vm14, %v1177_v24, %v1185_v30 }
 0x307   : > { %v1193_v51 = vpack.c.bf16 %v1189_v40, %v1187_v49  ;;  %v1336_v49 = vld [vmem:[%s3380_s10 + $0x8] sm:$0xff] }
 0x308   : > { %v1190_v46 = vsel %vm1182_vm10, %v1178_v26, %v1186_v39 }
 0x309   : > { %v1194_v47 = vpack.c.bf16 %v1190_v46, %v1188_v43 }
 0x30b   : > { %1217 = vmatprep.subr.bf16.mxu1 %v1194_v47  ;;  %v1335_v47 = vld [vmem:[%s3380_s10] sm:$0xff]  ;;  %s723_s10 = scalar_lea.vmem %s3305_s21, %s2465_s29 }
 0x30c   : > { %1218 = vmatpush1.bf16.msra.mxu1 %v1193_v51 }
 0x30f   : > { %2246 = vmatmul.mubr.msk.bf16.vlgmr.msra.gmra.mxu1 %vm883_vm0, %v2290_v54 }
 0x310   : > { %1403 = vmatprep.mubr.bf16.mxu1 %v2320_v1 }
 0x3cf   : > { %v1237_v58 = vpop.f32.mrf.mxu1 }
 0x3d0   : > { %v1258_v59 = vmul.f32 %v1251_v55, %v1237_v58 }
 0x3d1   : > { %v1239_v63 = vpop.f32.mrf.mxu1 }
 0x3d2   : > { %v1274_v0 = vadd.f32 %v1267_v61, %v1258_v59  ;;  %v1259_v3 = vmul.f32 %v1251_v55, %v1239_v63 }
 0x3d3   : > { %v1241_v4 = vpop.f32.mrf.mxu1 }
 0x3d4   : > { %vm1278_vm14 = vcmp.ge.f32.partialorder %v1274_v0, 0.0  ;;  %v1282_v5 = vmul.f32 0.2, %v1274_v0  ;;  %v1275_v29 = vadd.f32 %v1267_v61, %v1259_v3  ;;  %v1260_v44 = vmul.f32 %v1256_v57, %v1241_v4 }
 0x3d5   : > { %v1243_v1 = vpop.f32.mrf.mxu1 }
 0x3d6   : > { %vm1279_vm4 = vcmp.ge.f32.partialorder %v1275_v29, 0.0  ;;  %v1283_v36 = vmul.f32 0.2, %v1275_v29  ;;  %v1276_v6 = vadd.f32 %v1272_v27, %v1260_v44  ;;  %v1261_v7 = vmul.f32 %v1256_v57, %v1243_v1 }
 0x3d7   : > { %v2798_v8 = vsel %vm1278_vm14, %v1274_v0, %v1282_v5 }
 0x3d8   : > { %vm1280_vm3 = vcmp.ge.f32.partialorder %v1276_v6, 0.0  ;;  %v1284_v31 = vmul.f32 0.2, %v1276_v6  ;;  %v1277_v37 = vadd.f32 %v1272_v27, %v1261_v7  ;;  %v2800_v9 = vsel %vm1279_vm4, %v1275_v29, %v1283_v36  ;;  %1290 = vst [vmem:[%s718_s23] sm:$0xff] %v2798_v8 }
 0x3d9   : > { %v1294_v10 = vadd.f32 %v2800_v9, %v2798_v8  ;;  %1291 = vst [vmem:[%s718_s23 + $0x8] sm:$0xff] %v2800_v9  ;;  %vm3390_vm4 = vcmp.ne.s16.totalorder %v2575_v45, 0 }
 0x3da   : > { %vm1281_vm10 = vcmp.ge.f32.partialorder %v1277_v37, 0.0  ;;  %v1285_v11 = vmul.f32 0.2, %v1277_v37  ;;  %v2806_v12 = vsel %vm1280_vm3, %v1276_v6, %v1284_v31  ;;  %vm3393_vm3 = vcmp.ne.s16.totalorder %v2617_v56, 0 }
 0x3db   : > { %1295 = vadd.xlane.f32.xlu1 %v1294_v10  ;;  %1292 = vst [vmem:[%s718_s23 + $0x10] sm:$0xff] %v2806_v12 }
 0x3dc   : > { %v2809_v13 = vsel %vm1281_vm10, %v1277_v37, %v1285_v11  ;;  %vm3394_vm10 = vcmp.ne.s16.totalorder %v2601_v52, 0 }
 0x3dd   : > { %1293 = vst [vmem:[%s718_s23 + $0x18] sm:$0xff] %v2809_v13  ;;  %v1297_v14 = vadd.f32 %v2809_v13, %v2806_v12  ;;  %s3383_s23 = smov 49  }
 0x3df   : > { %1298 = vadd.xlane.f32.xlu0 %v1297_v14 }
 0x464   : > { %v1296_v15 = vpop.xlane.xlu1 %1295 }
 0x465   : > { %v1301_v16 = vmul.f32 0.00390625, %v1296_v15 }
 0x467   : > { %v1305_v20 = vmul.f32 %v1303_v17, %v1301_v16 }
 0x468   : > { %v1299_v19 = vpop.xlane.xlu0 %1298 }
 0x469   : > { %v1302_v23 = vmul.f32 0.00390625, %v1299_v19  ;;  %v1307_v25 = vsel %vm780_vm6, %v1305_v20, 0.0 }
 0x46b   : > { %v1306_v24 = vmul.f32 %v1304_v18, %v1302_v23 }
 0x46d   : > { %v1308_v26 = vsel %vm780_vm6, %v1306_v24, 0.0  ;;  %v1319_v24 = vld [vmem:[%s3387_s9] sm:$0xff] }
 0x46e   : > { %v1309_v28 = vadd.f32 %v1308_v26, %v1307_v25  ;;  %v1320_v25 = vld [vmem:[%s3387_s9 + $0x8] sm:$0xff] }
 0x470   : > { %v1310_v30 = vrot.slane %v1309_v28, 4 }
 0x472   : > { %v1311_v38 = vadd.f32 %v1310_v30, %v1309_v28 }
 0x474   : > { %v1312_v39 = vrot.slane %v1311_v38, 2 }
 0x476   : > { %v1313_v40 = vadd.f32 %v1312_v39, %v1311_v38 }
 0x478   : > { %v1314_v43 = vrot.slane %v1313_v40, 1 }
 0x47a   : > { %v1315_v46 = vadd.f32 %v1314_v43, %v1313_v40 }
 0x47c   : > { %vm1316_vm14 = vcmp.ge.f32.partialorder %v1315_v46, 0.0  ;;  %v1317_v51 = vmul.f32 0.2, %v1315_v46 }
 0x47e   : > { %v1318_v54 = vsel %vm1316_vm14, %v1315_v46, %v1317_v51  ;;  %vm3395_vm14 = vcmp.ne.s16.totalorder %v2501_v22, 0 }
 0x47f   : > { %v1337_v55 = vmul.f32 %v1335_v47, %v1318_v54  ;;  %v1338_v57 = vmul.f32 %v1336_v49, %v1318_v54  ;;  %v1321_v26 = vmul.f32 %v1319_v24, %v1318_v54  ;;  %v1322_v28 = vmul.f32 %v1320_v25, %v1318_v54 }
 0x481   : > { %v1341_v58 = vsub.f32 0.0, %v1337_v55  ;;  %v1342_v59 = vsub.f32 0.0, %v1338_v57  ;;  %v1325_v30 = vsub.f32 0.0, %v1321_v26  ;;  %v1326_v40 = vsub.f32 0.0, %v1322_v28 }
 0x483   : > { %v1343_v61 = vmul.f32 1.442695, %v1341_v58  ;;  %v1345_v63 = vmul.f32 1.442695, %v1342_v59  ;;  %v1327_v46 = vmul.f32 1.442695, %v1325_v30 }
 0x484   : > { %v1329_v51 = vmul.f32 1.442695, %v1326_v40 }
 0x485   : > { %2296 = vpow2.f32 %v1343_v61 }
 0x486   : > { %2298 = vpow2.f32 %v1345_v63 }
 0x492   : > { %v2297_v0 = vpop.eup %2296 }
 0x493   : > { %v2299_v3 = vpop.eup %2298  ;;  %v1347_v4 = vadd.f32 1.0, %v2297_v0 }
 0x494   : > { %v1348_v5 = vadd.f32 1.0, %v2299_v3 }
 0x495   : > { %2300 = vrcp.f32 %v1347_v4 }
 0x496   : > { %2302 = vrcp.f32 %v1348_v5 }
 0x497   : > { %2304 = vpow2.f32 %v1327_v46 }
 0x498   : > { %2306 = vpow2.f32 %v1329_v51 }
 0x4a2   : > { %v2301_v29 = vpop.eup %2300 }
 0x4a3   : > { %v2303_v44 = vpop.eup %2302  ;;  %1438 = vperm.xlu0 %2285, %v2301_v29  }
 0x4a4   : > { %1443 = vperm.xlu1 %2286, %v2303_v44   ;;  %v2305_v44 = vpop.eup %2304 }
 0x51e   : > { %v1439_v27 = vpop.permute.xlu0 %1438 }
 0x51f   : > { %v1444_v1 = vpop.permute.xlu1 %1443  ;;  %v1446_v36 = vmul.f32 %v1439_v27, %v2798_v8  ;;  %v1447_v6 = vmul.f32 %v1439_v27, %v2800_v9  ;;  %v2307_v27 = vpop.eup %2306 }
 0x520   : > { %v1448_v7 = vmul.f32 %v1444_v1, %v2806_v12  ;;  %v1449_v31 = vmul.f32 %v1444_v1, %v2809_v13 }
 0x522   : > { %v1451_v37 = vpack.c.bf16 %v1449_v31, %v1447_v6  ;;  %v1450_v10 = vpack.c.bf16 %v1448_v7, %v1446_v36  ;;  %v1331_v36 = vadd.f32 1.0, %v2305_v44  ;;  %v1332_v6 = vadd.f32 1.0, %v2307_v27 }
 0x524   : > { %1460 = vrot.lane.b32.xlu0 %v1451_v37, %s3381_s4  ;;  %1455 = vrot.lane.b32.xlu1 %v1450_v10, %s3382_s5  ;;  %2308 = vrcp.f32 %v1331_v36 }
 0x525   : > { %2310 = vrcp.f32 %v1332_v6 }
 0x528   : > { %1458 = vrot.lane.b32.xlu0 %v1450_v10, %s3381_s4  ;;  %1464 = vrot.lane.b32.xlu1 %v1451_v37, %s3383_s23 }
 0x596   : > { %v1461_v11 = vpop.permute.xlu0 %1460  ;;  %v1456_v14 = vpop.permute.xlu1 %1455 }
 0x597   : > { %v1467_v15 = vsel %vm780_vm6, 0, %v1456_v14 }
 0x59a   : > { %v1459_v16 = vpop.permute.xlu0 %1458  ;;  %v1465_v17 = vpop.permute.xlu1 %1464 }
 0x59b   : > { %v2838_v18 = vsel %vm775_vm7, %v1459_v16, %v1461_v11  ;;  %v2841_v19 = vsel %vm775_vm7, %v1467_v15, %v1459_v16  ;;  %v1473_v20 = vsel %vm775_vm7, %v1461_v11, %v1465_v17  ;;  %v2309_v17 = vpop.eup %2308 }
 0x59c   : > { %1479 = vrot.lane.b32.xlu0 %v2838_v18, %s3384_s28  ;;  %1477 = vrot.lane.b32.xlu1 %v2841_v19, %s3384_s28  ;;  %v2849_v23 = vsel %vm791_vm8, %v1473_v20, 0  ;;  %v2311_v24 = vpop.eup %2310 }
 0x5a0   : > { %1491 = vrot.lane.b32.xlu0 %v2838_v18, %s3385_s1  ;;  %1501 = vrot.lane.b32.xlu1 %v2849_v23, %s3384_s28 }
 0x5a4   : > { %1489 = vrot.lane.b32.xlu0 %v2841_v19, %s3385_s1  ;;  %1493 = vrot.lane.b32.xlu1 %v2849_v23, %s3385_s1 }
 0x5a8   : > { %1546 = vrot.lane.b32.xlu0 %v2838_v18, %s3382_s5  ;;  %1576 = vrot.lane.b32.xlu1 %v2838_v18, %s3386_s22 }
 0x5ac   : > { %1578 = vrot.lane.b32.xlu0 %v2849_v23, %s3386_s22  ;;  %1574 = vrot.lane.b32.xlu1 %v2841_v19, %s3386_s22 }
 0x5b0   : > { %1548 = vrot.lane.b32.xlu1 %v2849_v23, %s3382_s5 }
 0x60e   : > { %v2875_v38 = vpop.permute.xlu0 %1479  ;;  %v2877_v39 = vpop.permute.xlu1 %1477 }
 0x60f   : > { %v1512_v43 = vsel %vm898_vm9, %v2841_v19, %v2877_v39  ;;  %v2901_v0 = vsel %vm814_vm11, %v2877_v39, %v2875_v38  ;;  %v1505_v29 = vsel %vm3390_vm4, %v2841_v19, %v2877_v39  ;;  %vm3396_vm4 = vcmp.ne.s16.totalorder %v2498_v21, 0 }
 0x610   : > { %1566 = vrot.lane.b32.xlu0 %v1512_v43, %s3388_s27  ;;  %v1513_v4 = vsel %vm899_vm13, %v2838_v18, %v2901_v0  ;;  %v1506_v1 = vsel %vm3393_vm3, %v2838_v18, %v2901_v0  ;;  %vm3397_vm3 = vcmp.ne.s16.totalorder %v2656_v2, 0 }
 0x612   : > { %v1492_v47 = vpop.permute.xlu0 %1491  ;;  %v1502_v49 = vpop.permute.xlu1 %1501 }
 0x613   : > { %v1503_v54 = vsel %vm814_vm11, %v2875_v38, %v1502_v49 }
 0x614   : > { %v1514_v55 = vsel %vm900_vm15, %v2849_v23, %v1503_v54  ;;  %v1507_v7 = vsel %vm3394_vm10, %v2849_v23, %v1503_v54  ;;  %vm3399_vm10 = vcmp.ne.s16.totalorder %v2632_v60, 0 }
 0x615   : > { %1570 = vrot.lane.b32.xlu1 %v1514_v55, %s3388_s27 }
 0x616   : > { %v1490_v57 = vpop.permute.xlu0 %1489  ;;  %v1494_v58 = vpop.permute.xlu1 %1493 }
 0x617   : > { %v1511_v59 = vsel %vm887_vm12, %v2849_v23, %v1494_v58  ;;  %v1496_v61 = vsel %vm856_vm1, %v1492_v47, %v1494_v58  ;;  %v1495_v3 = vsel %vm856_vm1, %v1490_v57, %v1492_v47  ;;  %v1517_v15 = vsel %vm3399_vm10, %v2849_v23, %v1494_v58 }
 0x618   : > { %1559 = vrot.lane.b32.xlu0 %v1511_v59, %s3389_s3  ;;  %v1510_v63 = vsel %vm886_vm2, %v2838_v18, %v1496_v61  ;;  %v1509_v5 = vsel %vm885_vm5, %v2841_v19, %v1495_v3  ;;  %v1500_v31 = vsel %vm3395_vm14, %v2838_v18, %v1496_v61  ;;  %v1499_v37 = vsel %vm3396_vm4, %v2841_v19, %v1495_v3 }
 0x619   : > { %1557 = vrot.lane.b32.xlu1 %v1510_v63, %s3389_s3  ;;  %v1516_v10 = vsel %vm3397_vm3, %v2838_v18, %v1496_v61  ;;  %vm3400_vm14 = vcmp.ne.s16.totalorder %v2641_v62, 0  ;;  %vm3401_vm4 = vcmask 793600   ;;  %vm3403_vm10 = vcmask 924672  }
 0x61a   : > { %v1577_v11 = vpop.permute.xlu1 %1576  ;;  %v1547_v14 = vpop.permute.xlu0 %1546  ;;  %v1515_v16 = vsel %vm3400_vm14, %v2841_v19, %v1495_v3  ;;  %vm3402_vm3 = vmmov %vm3401_vm4 }
 0x61b   : > { %vm3404_vm14 = vmmov %vm3403_vm10 }
 0x61c   : > { %1568 = vrot.lane.b32.xlu0 %v1513_v4, %s3388_s27 }
 0x61d   : > { %1555 = vrot.lane.b32.xlu1 %v1509_v5, %s3389_s3 }
 0x61e   : > { %v1575_v20 = vpop.permute.xlu1 %1574  ;;  %v1579_v25 = vpop.permute.xlu0 %1578 }
 0x61f   : > { %v1581_v26 = vsel %vm3401_vm4, %v1577_v11, %v1579_v25  ;;  %v1580_v30 = vsel %vm3402_vm3, %v1575_v20, %v1577_v11  ;;  %vm3405_vm4 = vcmask 785408  }
 0x620   : > { %1544 = vrot.lane.b32.xlu0 %v2841_v19, %s3382_s5  ;;  %vm3406_vm3 = vmmov %vm3405_vm4 }
 0x621   : > { %1536 = vrot.lane.b32.xlu1 %v1505_v29, %s3391_s2 }
 0x622   : > { %v1549_v28 = vpop.permute.xlu1 %1548 }
 0x623   : > { %v1551_v40 = vsel %vm3403_vm10, %v1547_v14, %v1549_v28  ;;  %vm3407_vm10 = vcmask 932864  }
 0x624   : > { %1518 = vrot.lane.b32.xlu0 %v2841_v19, %s3392_s0 }
 0x625   : > { %1538 = vrot.lane.b32.xlu1 %v1506_v1, %s3391_s2 }
 0x628   : > { %1540 = vrot.lane.b32.xlu0 %v1507_v7, %s3391_s2 }
 0x629   : > { %1530 = vrot.lane.b32.xlu1 %v1500_v31, %s3384_s28 }
 0x62c   : > { %1528 = vrot.lane.b32.xlu0 %v1499_v37, %s3384_s28 }
 0x62d   : > { %1520 = vrot.lane.b32.xlu1 %v2838_v18, %s3392_s0 }
 0x630   : > { %1522 = vrot.lane.b32.xlu0 %v2849_v23, %s3392_s0 }
 0x631   : > { %1587 = vrot.lane.b32.xlu1 %v1516_v10, %s3398_s6 }
 0x634   : > { %1589 = vrot.lane.b32.xlu0 %v1517_v15, %s3398_s6 }
 0x635   : > { %1585 = vrot.lane.b32.xlu1 %v1515_v16, %s3398_s6 }
 0x638   : > { %1353 = vperm.xlu0 %2285, %v2309_v17  }
 0x639   : > { %1358 = vperm.xlu1 %2286, %v2311_v24  }
 0x63c   : > { %1649 = vrot.lane.b32.xlu0 %v1581_v26, %s3385_s1 }
 0x63d   : > { %1651 = vrot.lane.b32.xlu1 %v1579_v25, %s3385_s1 }
 0x640   : > { %1647 = vrot.lane.b32.xlu0 %v1580_v30, %s3385_s1 }
 0x641   : > { %1631 = vrot.lane.b32.xlu1 %v1551_v40, %s3385_s1 }
 0x644   : > { %1633 = vrot.lane.b32.xlu0 %v1549_v28, %s3385_s1 }
 0x682   : > { %v1567_v43 = vpop.permute.xlu0 %1566 }
 0x687   : > { %v1571_v46 = vpop.permute.xlu1 %1570 }
 0x688   : > { %1645 = vrot.lane.b32.xlu0 %v1571_v46, %s3385_s1 }
 0x68a   : > { %v1560_v47 = vpop.permute.xlu0 %1559 }
 0x68b   : > { %v1558_v49 = vpop.permute.xlu1 %1557 }
 0x68c   : > { %v1562_v1 = vsel %vm3407_vm10, %v1558_v49, %v1560_v47 }
 0x68e   : > { %v1569_v51 = vpop.permute.xlu0 %1568 }
 0x68f   : > { %v1556_v54 = vpop.permute.xlu1 %1555  ;;  %v1573_v3 = vsel %vm3405_vm4, %v1569_v51, %v1571_v46  ;;  %v1572_v29 = vsel %vm3406_vm3, %v1567_v43, %v1569_v51  ;;  %vm3409_vm4 = vcmask 916480   ;;  %v1758_v51 = vld [vmem:[%s3300_s16 + $0x8] sm:$0xff] }
 0x690   : > { %vm3410_vm3 = vmmov %vm3409_vm4 }
 0x692   : > { %v1545_v55 = vpop.permute.xlu0 %1544 }
 0x693   : > { %v1550_v57 = vsel %vm3404_vm14, %v1545_v55, %v1547_v14  ;;  %v1537_v58 = vpop.permute.xlu1 %1536  ;;  %vm3408_vm14 = vmmov %vm3407_vm10  ;;  %vm3411_vm10 = vcmp.ne.s16.totalorder %v2705_v53, 0 }
 0x694   : > { %1629 = vrot.lane.b32.xlu1 %v1550_v57, %s3385_s1  ;;  %v1561_v36 = vsel %vm3408_vm14, %v1556_v54, %v1558_v49  ;;  %v1486_v17 = vsel %vm3411_vm10, %v2838_v18, %v2901_v0  ;;  %vm3412_vm14 = vcmp.ne.s16.totalorder %v2697_v48, 0  ;;  %v1742_v49 = vld [vmem:[%s3299_s15 + $0x8] sm:$0xff] }
 0x695   : > { %v1485_v18 = vsel %vm3412_vm14, %v2841_v19, %v2877_v39  ;;  %v2291_v19 = vld [vmem:[%s3298_s14 + $0x4] ss:$8 sps:$4 sm:$0xff]  }
 0x696   : > { %v1519_v59 = vpop.permute.xlu0 %1518 }
 0x697   : > { %v1539_v61 = vpop.permute.xlu1 %1538 }
 0x698   : > { %1639 = vrot.lane.b32.xlu1 %v1560_v47, %s3385_s1  ;;  %v1542_v15 = vsel %vm3410_vm3, %v1537_v58, %v1539_v61  ;;  %vm3414_vm3 = vcmask 801792   ;;  %v1757_v47 = vld [vmem:[%s3300_s16] sm:$0xff] }
 0x699   : > { %vm3415_vm10 = vmmov %vm3414_vm3 }
 0x69a   : > { %v1541_v4 = vpop.permute.xlu0 %1540 }
 0x69b   : > { %v1531_v63 = vpop.permute.xlu1 %1530  ;;  %v1543_v37 = vsel %vm3409_vm4, %v1539_v61, %v1541_v4  ;;  %vm3413_vm4 = vcmp.ne.s16.totalorder %v2692_v41, 0 }
 0x69c   : > { %1643 = vrot.lane.b32.xlu1 %v1573_v3, %s3385_s1  ;;  %1621 = vrot.lane.b32.xlu0 %v1531_v63, %s3385_s1 }
 0x69e   : > { %v1529_v27 = vpop.permute.xlu0 %1528 }
 0x69f   : > { %v1521_v5 = vpop.permute.xlu1 %1520  ;;  %v1532_v11 = vsel %vm814_vm11, %v1529_v27, %v1531_v63 }
 0x6a0   : > { %1641 = vrot.lane.b32.xlu1 %v1572_v29, %s3385_s1  ;;  %v1524_v44 = vsel %vm780_vm6, %v1519_v59, %v1521_v5 }
 0x6a1   : > { %1613 = vrot.lane.b32.xlu0 %v1524_v44, %s3385_s1 }
 0x6a2   : > { %v1523_v6 = vpop.permute.xlu0 %1522 }
 0x6a3   : > { %v1588_v7 = vpop.permute.xlu1 %1587  ;;  %v1525_v31 = vsel %vm780_vm6, %v1521_v5, %v1523_v6 }
 0x6a4   : > { %1627 = vrot.lane.b32.xlu1 %v1541_v4, %s3385_s1 }
 0x6a5   : > { %1637 = vrot.lane.b32.xlu0 %v1562_v1, %s3385_s1 }
 0x6a6   : > { %v1590_v10 = vpop.permute.xlu0 %1589 }
 0x6a7   : > { %v1586_v14 = vpop.permute.xlu1 %1585 }
 0x6a8   : > { %1617 = vrot.lane.b32.xlu1 %v1529_v27, %s3385_s1  ;;  %v1591_v46 = vsel %vm3415_vm10, %v1586_v14, %v1588_v7 }
 0x6a9   : > { %1635 = vrot.lane.b32.xlu0 %v1561_v36, %s3385_s1 }
 0x6ac   : > { %1615 = vrot.lane.b32.xlu1 %v1525_v31, %s3385_s1 }
 0x6ad   : > { %1625 = vrot.lane.b32.xlu0 %v1543_v37, %s3385_s1 }
 0x6b0   : > { %1619 = vrot.lane.b32.xlu1 %v1532_v11, %s3385_s1 }
 0x6b1   : > { %1623 = vrot.lane.b32.xlu0 %v1542_v15, %s3385_s1 }
 0x6b3   : > { %v1354_v16 = vpop.permute.xlu0 %1353 }
 0x6b4   : > { %v1361_v20 = vmul.f32 %v1354_v16, %v2798_v8  ;;  %v1362_v24 = vmul.f32 %v1354_v16, %v2800_v9  ;;  %1607 = vrot.lane.b32.xlu1 %v1486_v17, %s3385_s1  ;;  %v1359_v25 = vpop.permute.xlu1 %1358  ;;  %v1487_v9 = vsel %vm3413_vm4, %v2849_v23, %v2875_v38  ;;  %v1592_v23 = vsel %vm3414_vm3, %v1588_v7, %v1590_v10  ;;  %v1741_v38 = vld [vmem:[%s3299_s15] sm:$0xff] }
 0x6b5   : > { %v1363_v26 = vmul.f32 %v1359_v25, %v2806_v12  ;;  %v1364_v28 = vmul.f32 %v1359_v25, %v2809_v13  ;;  %1611 = vrot.lane.b32.xlu0 %v1519_v59, %s3385_s1  ;;  %v1367_v13 = vld [vmem:[%s3295_s11] sm:$0xf] }
 0x6b7   : > { %v1365_v30 = vpack.c.bf16 %v1363_v26, %v1361_v20  ;;  %v1366_v40 = vpack.c.bf16 %v1364_v28, %v1362_v24  ;;  %v1650_v43 = vpop.permute.xlu0 %1649 }
 0x6b8   : > { %1605 = vrot.lane.b32.xlu1 %v1485_v18, %s3385_s1  ;;  %v1652_v8 = vpop.permute.xlu1 %1651 }
 0x6b9   : > { %1609 = vrot.lane.b32.xlu0 %v1487_v9, %s3385_s1  ;;  %1385 = vmatprep.subr.bf16.mxu1 %v1366_v40  ;;  %v1674_v12 = vsel %vm856_vm1, %v1650_v43, %v1652_v8 }
 0x6ba   : > { %1386 = vmatpush1.bf16.msra.mxu1 %v1365_v30 }
 0x6bb   : > { %1698 = vmatprep.subr.bf16.mxu1 %v1674_v12  ;;  %v1648_v39 = vpop.permute.xlu0 %1647 }
 0x6bc   : > { %v1673_v0 = vsel %vm856_vm1, %v1648_v39, %v1650_v43  ;;  %1657 = vrot.lane.b32.xlu1 %v1590_v10, %s3385_s1  ;;  %v1632_v54 = vpop.permute.xlu1 %1631 }
 0x6bd   : > { %1655 = vrot.lane.b32.xlu0 %v1592_v23, %s3385_s1  ;;  %2247 = vmatmul.mubr.msk.bf16.vlgmr.msra.gmra.mxu1 %vm883_vm0, %v1367_v13 }
 0x6be   : > { %1699 = vmatpush1.bf16.msra.mxu1 %v1673_v0  ;;  %2250 = vmatprep.mubr.msk.bf16.mxu1 %vm883_vm0, %v2291_v19  ;;  %v2293_v0 = vld [vmem:[%s3298_s14] ss:$8 sps:$4 sm:$0xff]  }
 0x6bf   : > { %v1634_v55 = vpop.permute.xlu0 %1633 }
 0x6c0   : > { %1745 = vperm.xlu1 %2286, %v1741_v38   ;;  %v1668_v31 = vsel %vm856_vm1, %v1632_v54, %v1634_v55 }
 0x6c1   : > { %1653 = vrot.lane.b32.xlu0 %v1591_v46, %s3385_s1 }
 0x6c4   : > { %1761 = vperm.xlu1 %2286, %v1757_v47  }
 0x6c5   : > { %1750 = vperm.xlu0 %2285, %v1742_v49  }
 0x6c9   : > { %1766 = vperm.xlu0 %2285, %v1758_v51  }
 0x6fa   : > { %v1646_v58 = vpop.permute.xlu0 %1645 }
 0x706   : > { %v1630_v57 = vpop.permute.xlu1 %1629 }
 0x707   : > { %v1667_v11 = vsel %vm856_vm1, %v1630_v57, %v1632_v54 }
 0x70a   : > { %v1640_v59 = vpop.permute.xlu1 %1639 }
 0x70e   : > { %v1644_v61 = vpop.permute.xlu1 %1643  ;;  %v1622_v63 = vpop.permute.xlu0 %1621 }
 0x70f   : > { %v1672_v3 = vsel %vm856_vm1, %v1644_v61, %v1646_v58 }
 0x710   : > { %1700 = vmatprep.subr.bf16.mxu1 %v1672_v3 }
 0x712   : > { %v1642_v4 = vpop.permute.xlu1 %1641 }
 0x713   : > { %v1671_v5 = vsel %vm856_vm1, %v1642_v4, %v1644_v61  ;;  %v1614_v29 = vpop.permute.xlu0 %1613 }
 0x714   : > { %1701 = vmatpush1.bf16.msra.mxu1 %v1671_v5 }
 0x716   : > { %v1628_v44 = vpop.permute.xlu1 %1627 }
 0x717   : > { %v1638_v27 = vpop.permute.xlu0 %1637 }
 0x718   : > { %v1670_v1 = vsel %vm856_vm1, %v1638_v27, %v1640_v59 }
 0x719   : > { %1702 = vmatprep.subr.bf16.mxu1 %v1670_v1 }
 0x71a   : > { %v1618_v36 = vpop.permute.xlu1 %1617 }
 0x71b   : > { %v1636_v6 = vpop.permute.xlu0 %1635 }
 0x71c   : > { %v1669_v7 = vsel %vm856_vm1, %v1636_v6, %v1638_v27 }
 0x71d   : > { %1703 = vmatpush1.bf16.msra.mxu1 %v1669_v7 }
 0x71e   : > { %v1616_v37 = vpop.permute.xlu1 %1615  ;;  %1704 = vmatprep.subr.bf16.mxu1 %v1668_v31 }
 0x71f   : > { %v1626_v10 = vpop.permute.xlu0 %1625  ;;  %v1662_v28 = vsel %vm856_vm1, %v1614_v29, %v1616_v37 }
 0x720   : > { %v1666_v14 = vsel %vm856_vm1, %v1626_v10, %v1628_v44 }
 0x721   : > { %1705 = vmatpush1.bf16.msra.mxu1 %v1667_v11 }
 0x722   : > { %v1620_v15 = vpop.permute.xlu1 %1619  ;;  %1706 = vmatprep.subr.bf16.mxu1 %v1666_v14 }
 0x723   : > { %v1624_v16 = vpop.permute.xlu0 %1623  ;;  %v1664_v20 = vsel %vm856_vm1, %v1620_v15, %v1622_v63  ;;  %v1663_v26 = vsel %vm856_vm1, %v1618_v36, %v1620_v15 }
 0x724   : > { %v1665_v17 = vsel %vm856_vm1, %v1624_v16, %v1626_v10 }
 0x725   : > { %1707 = vmatpush1.bf16.msra.mxu1 %v1665_v17 }
 0x726   : > { %v1608_v24 = vpop.permute.xlu1 %1607  ;;  %1708 = vmatprep.subr.bf16.mxu1 %v1664_v20 }
 0x727   : > { %v1612_v25 = vpop.permute.xlu0 %1611 }
 0x728   : > { %v1661_v43 = vsel %vm856_vm1, %v1612_v25, %v1614_v29 }
 0x729   : > { %1709 = vmatpush1.bf16.msra.mxu1 %v1663_v26 }
 0x72a   : > { %v1606_v30 = vpop.permute.xlu1 %1605  ;;  %1710 = vmatprep.subr.bf16.mxu1 %v1662_v28 }
 0x72b   : > { %v1610_v40 = vpop.permute.xlu0 %1609  ;;  %v1659_v12 = vsel %vm856_vm1, %v1606_v30, %v1608_v24 }
 0x72c   : > { %v1660_v18 = vsel %vm856_vm1, %v1608_v24, %v1610_v40 }
 0x72d   : > { %1711 = vmatpush1.bf16.msra.mxu1 %v1661_v43 }
 0x72e   : > { %v1658_v8 = vpop.permute.xlu1 %1657  ;;  %1712 = vmatprep.subr.bf16.mxu1 %v1660_v18 }
 0x72f   : > { %v1656_v9 = vpop.permute.xlu0 %1655 }
 0x730   : > { %v1676_v13 = vsel %vm856_vm1, %v1656_v9, %v1658_v8 }
 0x731   : > { %1713 = vmatpush1.bf16.msra.mxu1 %v1659_v12 }
 0x732   : > { %1728 = vmatprep.subr.bf16.mxu1 %v1676_v13 }
 0x733   : > { %v1654_v19 = vpop.permute.xlu0 %1653 }
 0x734   : > { %v1675_v39 = vsel %vm856_vm1, %v1654_v19, %v1656_v9 }
 0x735   : > { %1729 = vmatpush2.bf16.msra.mxu1 %v1675_v39 }
 0x738   : > { %1731 = vmatmul.mubr.bf16.vlgmr.msra.gmra.mxu1 %v2293_v0 }
 0x73b   : > { %v1746_v49 = vpop.permute.xlu1 %1745 }
 0x73f   : > { %v1762_v57 = vpop.permute.xlu1 %1761 }
 0x740   : > { %v1751_v51 = vpop.permute.xlu0 %1750 }
 0x744   : > { %v1767_v4 = vpop.permute.xlu0 %1766 }
 0x77d   : > { %v3055_v23 = vpop.f32.mrf.mxu1 }
 0x77f   : > { %v3057_v38 = vpop.f32.mrf.mxu1 }
 0x781   : > { %v1409_v46 = vpop.f32.mrf.mxu1 }
 0x783   : > { %v1410_v47 = vpop.f32.mrf.mxu1 }
 0x7f8   : > { %v1732_v54 = vpop.f32.mrf.mxu1 }
 0x7f9   : > { %v1753_v55 = vmul.f32 %v1746_v49, %v1732_v54 }
 0x7fa   : > { %v1734_v58 = vpop.f32.mrf.mxu1 }
 0x7fb   : > { %v1769_v59 = vadd.f32 %v1762_v57, %v1753_v55  ;;  %v1754_v61 = vmul.f32 %v1746_v49, %v1734_v58 }
 0x7fc   : > { %v1736_v63 = vpop.f32.mrf.mxu1 }
 0x7fd   : > { %v1755_v3 = vmul.f32 %v1751_v51, %v1736_v63  ;;  %v1770_v5 = vadd.f32 %v1762_v57, %v1754_v61  ;;  %v1777_v44 = vmul.f32 0.2, %v1769_v59  ;;  %vm1773_vm14 = vcmp.ge.f32.partialorder %v1769_v59, 0.0 }
 0x7fe   : > { %v1738_v29 = vpop.f32.mrf.mxu1 }
 0x7ff   : > { %v1771_v27 = vadd.f32 %v1767_v4, %v1755_v3  ;;  %v1756_v1 = vmul.f32 %v1751_v51, %v1738_v29  ;;  %v1778_v6 = vmul.f32 0.2, %v1770_v5  ;;  %v1781_v31 = vsel %vm1773_vm14, %v1769_v59, %v1777_v44 }
 0x800   : > { %vm1774_vm3 = vcmp.ge.f32.partialorder %v1770_v5, 0.0  ;;  %vm3424_vm14 = vcmp.ne.s16.totalorder %v2656_v2, 0 }
 0x801   : > { %vm1775_vm4 = vcmp.ge.f32.partialorder %v1771_v27, 0.0  ;;  %v1779_v36 = vmul.f32 0.2, %v1771_v27  ;;  %v1772_v7 = vadd.f32 %v1767_v4, %v1756_v1  ;;  %v1782_v14 = vsel %vm1774_vm3, %v1770_v5, %v1778_v6 }
 0x802   : > { %vm3426_vm3 = vcmask 924672  }
 0x803   : > { %v1783_v37 = vsel %vm1775_vm4, %v1771_v27, %v1779_v36  ;;  %vm1776_vm10 = vcmp.ge.f32.partialorder %v1772_v7, 0.0  ;;  %v1780_v10 = vmul.f32 0.2, %v1772_v7  ;;  %vm3425_vm4 = vcmp.ne.s16.totalorder %v2641_v62, 0 }
 0x804   : > { %v1785_v11 = vpack.c.bf16 %v1783_v37, %v1781_v31 }
 0x805   : > { %v1784_v15 = vsel %vm1776_vm10, %v1772_v7, %v1780_v10  ;;  %vm3427_vm10 = vmmov %vm3426_vm3 }
 0x806   : > { %1789 = vrot.lane.b32.xlu1 %v1785_v11, %s3382_s5  ;;  %v1786_v16 = vpack.c.bf16 %v1784_v15, %v1782_v14 }
 0x808   : > { %1794 = vrot.lane.b32.xlu0 %v1786_v16, %s3381_s4 }
 0x80a   : > { %1798 = vrot.lane.b32.xlu1 %v1786_v16, %s3383_s23 }
 0x80c   : > { %1792 = vrot.lane.b32.xlu0 %v1785_v11, %s3381_s4 }
 0x878   : > { %v1790_v17 = vpop.permute.xlu1 %1789 }
 0x879   : > { %v1801_v25 = vsel %vm780_vm6, 0, %v1790_v17 }
 0x87a   : > { %v1795_v20 = vpop.permute.xlu0 %1794 }
 0x87c   : > { %v1799_v24 = vpop.permute.xlu1 %1798 }
 0x87d   : > { %v1807_v40 = vsel %vm775_vm7, %v1795_v20, %v1799_v24 }
 0x87e   : > { %v1793_v26 = vpop.permute.xlu0 %1792  ;;  %v3076_v43 = vsel %vm791_vm8, %v1807_v40, 0  ;;  %vm3417_vm8 = vcmp.ne.s16.totalorder %v2601_v52, 0 }
 0x87f   : > { %v3065_v28 = vsel %vm775_vm7, %v1793_v26, %v1795_v20  ;;  %v3068_v30 = vsel %vm775_vm7, %v1801_v25, %v1793_v26  ;;  %vm3416_vm7 = vcmp.ne.s16.totalorder %v2498_v21, 0 }
 0x880   : > { %1813 = vrot.lane.b32.xlu0 %v3065_v28, %s3384_s28  ;;  %1811 = vrot.lane.b32.xlu1 %v3068_v30, %s3384_s28 }
 0x884   : > { %1825 = vrot.lane.b32.xlu0 %v3065_v28, %s3385_s1  ;;  %1835 = vrot.lane.b32.xlu1 %v3076_v43, %s3384_s28 }
 0x888   : > { %1823 = vrot.lane.b32.xlu0 %v3068_v30, %s3385_s1  ;;  %1827 = vrot.lane.b32.xlu1 %v3076_v43, %s3385_s1 }
 0x88c   : > { %1880 = vrot.lane.b32.xlu0 %v3065_v28, %s3382_s5  ;;  %1910 = vrot.lane.b32.xlu1 %v3065_v28, %s3386_s22 }
 0x890   : > { %1878 = vrot.lane.b32.xlu0 %v3068_v30, %s3382_s5  ;;  %1908 = vrot.lane.b32.xlu1 %v3068_v30, %s3386_s22 }
 0x894   : > { %1912 = vrot.lane.b32.xlu0 %v3076_v43, %s3386_s22  ;;  %1882 = vrot.lane.b32.xlu1 %v3076_v43, %s3382_s5 }
 0x8f2   : > { %v3098_v18 = vpop.permute.xlu0 %1813  ;;  %v3100_v8 = vpop.permute.xlu1 %1811 }
 0x8f3   : > { %v1846_v9 = vsel %vm898_vm9, %v3068_v30, %v3100_v8  ;;  %v3110_v12 = vsel %vm814_vm11, %v3100_v8, %v3098_v18  ;;  %vm3418_vm9 = vcmp.ne.s16.totalorder %v2617_v56, 0 }
 0x8f4   : > { %1900 = vrot.lane.b32.xlu0 %v1846_v9, %s3388_s27  ;;  %v1847_v39 = vsel %vm899_vm13, %v3065_v28, %v3110_v12  ;;  %v1840_v33 = vsel %vm3418_vm9, %v3065_v28, %v3110_v12  ;;  %vm3420_vm13 = vcmp.ne.s16.totalorder %v2632_v60, 0  ;;  %vm3430_vm9 = vcmask 916480  }
 0x8f6   : > { %v1826_v13 = vpop.permute.xlu0 %1825  ;;  %v1836_v19 = vpop.permute.xlu1 %1835 }
 0x8f7   : > { %v1837_v42 = vsel %vm814_vm11, %v3098_v18, %v1836_v19 }
 0x8f8   : > { %1902 = vrot.lane.b32.xlu0 %v1847_v39, %s3388_s27  ;;  %v1848_v34 = vsel %vm900_vm15, %v3076_v43, %v1837_v42  ;;  %v1841_v35 = vsel %vm3417_vm8, %v3076_v43, %v1837_v42  ;;  %vm3421_vm15 = vcmp.ne.s16.totalorder %v2501_v22, 0 }
 0x8fa   : > { %v1824_v0 = vpop.permute.xlu0 %1823  ;;  %v1828_v46 = vpop.permute.xlu1 %1827 }
 0x8fb   : > { %v1829_v32 = vsel %vm856_vm1, %v1824_v0, %v1826_v13  ;;  %v1845_v47 = vsel %vm887_vm12, %v3076_v43, %v1828_v46  ;;  %v1830_v54 = vsel %vm856_vm1, %v1826_v13, %v1828_v46  ;;  %vm3419_vm12 = vcmp.ne.s16.totalorder %v2575_v45, 0 }
 0x8fc   : > { %1893 = vrot.lane.b32.xlu0 %v1845_v47, %s3389_s3  ;;  %v1843_v49 = vsel %vm885_vm5, %v3068_v30, %v1829_v32  ;;  %v1833_v51 = vsel %vm3416_vm7, %v3068_v30, %v1829_v32  ;;  %v1844_v21 = vsel %vm886_vm2, %v3065_v28, %v1830_v54  ;;  %v1839_v50 = vsel %vm3419_vm12, %v3068_v30, %v3100_v8 }
 0x8fd   : > { %1889 = vrot.lane.b32.xlu1 %v1843_v49, %s3389_s3  ;;  %v1851_v58 = vsel %vm3420_vm13, %v3076_v43, %v1828_v46  ;;  %v1834_v59 = vsel %vm3421_vm15, %v3065_v28, %v1830_v54  ;;  %vm3422_vm2 = vcmask 793600   ;;  %v1850_v63 = vsel %vm3424_vm14, %v3065_v28, %v1830_v54  ;;  %vm3433_vm15 = vmmov %vm3430_vm9 }
 0x8fe   : > { %v1881_v55 = vpop.permute.xlu0 %1880  ;;  %v1911_v57 = vpop.permute.xlu1 %1910  ;;  %vm3423_vm5 = vmmov %vm3422_vm2  ;;  %v1849_v3 = vsel %vm3425_vm4, %v3068_v30, %v1829_v32  ;;  %vm3428_vm7 = vcmask 785408   ;;  %vm3431_vm12 = vcmask 932864  }
 0x8ff   : > { %vm3429_vm8 = vmmov %vm3428_vm7 }
 0x900   : > { %1862 = vrot.lane.b32.xlu0 %v1833_v51, %s3384_s28  ;;  %vm3432_vm13 = vmmov %vm3431_vm12 }
 0x901   : > { %1904 = vrot.lane.b32.xlu1 %v1848_v34, %s3388_s27 }
 0x902   : > { %v1879_v52 = vpop.permute.xlu0 %1878  ;;  %v1909_v45 = vpop.permute.xlu1 %1908 }
 0x903   : > { %v1914_v60 = vsel %vm3423_vm5, %v1909_v45, %v1911_v57  ;;  %v1884_v2 = vsel %vm3427_vm10, %v1879_v52, %v1881_v55  ;;  %vm3437_vm5 = vcmask 801792  }
 0x904   : > { %1874 = vrot.lane.b32.xlu0 %v1841_v35, %s3391_s2  ;;  %vm3438_vm14 = vmmov %vm3437_vm5 }
 0x905   : > { %1891 = vrot.lane.b32.xlu1 %v1844_v21, %s3389_s3 }
 0x906   : > { %v1913_v56 = vpop.permute.xlu0 %1912  ;;  %v1883_v22 = vpop.permute.xlu1 %1882 }
 0x907   : > { %v1915_v61 = vsel %vm3422_vm2, %v1911_v57, %v1913_v56  ;;  %v1885_v4 = vsel %vm3426_vm3, %v1881_v55, %v1883_v22  ;;  %vm3434_vm2 = vcmp.ne.s16.totalorder %v2705_v53, 0 }
 0x908   : > { %1852 = vrot.lane.b32.xlu0 %v3068_v30, %s3392_s0  ;;  %v1820_v0 = vsel %vm3434_vm2, %v3065_v28, %v3110_v12  ;;  %v1420_v12 = vld [vmem:[%s3297_s13] sm:$0xff] }
 0x909   : > { %1872 = vrot.lane.b32.xlu1 %v1840_v33, %s3391_s2 }
 0x90c   : > { %1856 = vrot.lane.b32.xlu0 %v3076_v43, %s3392_s0 }
 0x90d   : > { %1870 = vrot.lane.b32.xlu1 %v1839_v50, %s3391_s2 }
 0x910   : > { %1923 = vrot.lane.b32.xlu0 %v1851_v58, %s3398_s6 }
 0x911   : > { %1864 = vrot.lane.b32.xlu1 %v1834_v59, %s3384_s28 }
 0x914   : > { %1980 = vrot.lane.b32.xlu0 %v1915_v61, %s3385_s1 }
 0x915   : > { %1854 = vrot.lane.b32.xlu1 %v3065_v28, %s3392_s0  ;;  %v3227_v28 = vld [vmem:[%s3301_s17] sm:$0xff] }
 0x918   : > { %1978 = vrot.lane.b32.xlu0 %v1914_v60, %s3385_s1 }
 0x919   : > { %1921 = vrot.lane.b32.xlu1 %v1850_v63, %s3398_s6 }
 0x91c   : > { %1964 = vrot.lane.b32.xlu0 %v1883_v22, %s3385_s1 }
 0x91d   : > { %1919 = vrot.lane.b32.xlu1 %v1849_v3, %s3398_s6 }
 0x921   : > { %1982 = vrot.lane.b32.xlu1 %v1913_v56, %s3385_s1 }
 0x925   : > { %1962 = vrot.lane.b32.xlu1 %v1885_v4, %s3385_s1 }
 0x929   : > { %1960 = vrot.lane.b32.xlu1 %v1884_v2, %s3385_s1 }
 0x966   : > { %v1901_v5 = vpop.permute.xlu0 %1900 }
 0x96a   : > { %v1903_v29 = vpop.permute.xlu0 %1902 }
 0x96b   : > { %v1906_v62 = vsel %vm3428_vm7, %v1901_v5, %v1903_v29 }
 0x96e   : > { %v1894_v44 = vpop.permute.xlu0 %1893 }
 0x96f   : > { %1970 = vrot.lane.b32.xlu1 %v1894_v44, %s3385_s1  ;;  %v1890_v27 = vpop.permute.xlu1 %1889 }
 0x972   : > { %v1863_v1 = vpop.permute.xlu0 %1862 }
 0x973   : > { %1972 = vrot.lane.b32.xlu1 %v1906_v62, %s3385_s1  ;;  %v1905_v36 = vpop.permute.xlu1 %1904 }
 0x974   : > { %1976 = vrot.lane.b32.xlu0 %v1905_v36, %s3385_s1  ;;  %v1907_v6 = vsel %vm3429_vm8, %v1903_v29, %v1905_v36 }
 0x976   : > { %v1875_v7 = vpop.permute.xlu0 %1874 }
 0x977   : > { %1974 = vrot.lane.b32.xlu1 %v1907_v6, %s3385_s1  ;;  %v1892_v31 = vpop.permute.xlu1 %1891 }
 0x978   : > { %v1896_v24 = vsel %vm3431_vm12, %v1892_v31, %v1894_v44  ;;  %v1895_v40 = vsel %vm3432_vm13, %v1890_v27, %v1892_v31 }
 0x97a   : > { %v1853_v37 = vpop.permute.xlu0 %1852 }
 0x97b   : > { %1958 = vrot.lane.b32.xlu1 %v1875_v7, %s3385_s1  ;;  %v1873_v10 = vpop.permute.xlu1 %1872 }
 0x97c   : > { %v1877_v39 = vsel %vm3433_vm15, %v1873_v10, %v1875_v7 }
 0x97e   : > { %v1857_v15 = vpop.permute.xlu0 %1856 }
 0x97f   : > { %1948 = vrot.lane.b32.xlu1 %v1863_v1, %s3385_s1  ;;  %v1871_v11 = vpop.permute.xlu1 %1870 }
 0x980   : > { %v1876_v14 = vsel %vm3430_vm9, %v1871_v11, %v1873_v10 }
 0x981   : > { %1954 = vrot.lane.b32.xlu0 %v1876_v14, %s3385_s1 }
 0x982   : > { %v1924_v17 = vpop.permute.xlu0 %1923 }
 0x983   : > { %v1865_v16 = vpop.permute.xlu1 %1864 }
 0x984   : > { %v1866_v9 = vsel %vm814_vm11, %v1863_v1, %v1865_v16  ;;  %vm3435_vm11 = vcmp.ne.s16.totalorder %v2697_v48, 0  ;;  %v1412_v48 = vld [vmem:[%s3296_s12] sm:$0xff] }
 0x985   : > { %1952 = vrot.lane.b32.xlu0 %v1865_v16, %s3385_s1  ;;  %v1819_v49 = vsel %vm3435_vm11, %v3068_v30, %v3100_v8  ;;  %v2252_v30 = vcombine.high %v3227_v28, %v3227_v28 }
 0x986   : > { %v1981_v13 = vpop.permute.xlu0 %1980 }
 0x987   : > { %v1855_v20 = vpop.permute.xlu1 %1854  ;;  %2253 = vmatprep.mubr.msk.bf16.mxu0 %vm883_vm0, %v2252_v30 }
 0x988   : > { %v1859_v25 = vsel %vm780_vm6, %v1855_v20, %v1857_v15  ;;  %v1858_v47 = vsel %vm780_vm6, %v1853_v37, %v1855_v20  ;;  %vm3436_vm6 = vcmp.ne.s16.totalorder %v2692_v41, 0  ;;  %v2070_v41 = vld [vmem:[%s3302_s18] sm:$0xff] }
 0x989   : > { %1968 = vrot.lane.b32.xlu0 %v1896_v24, %s3385_s1  ;;  %1946 = vrot.lane.b32.xlu1 %v1859_v25, %s3385_s1  ;;  %v1821_v8 = vsel %vm3436_vm6, %v3076_v43, %v3098_v18  ;;  %v2078_v43 = vld [vmem:[%s3303_s19] sm:$0xff] }
 0x98a   : > { %v1979_v46 = vpop.permute.xlu0 %1978 }
 0x98b   : > { %v1922_v26 = vpop.permute.xlu1 %1921  ;;  %v2004_v53 = vsel %vm856_vm1, %v1979_v46, %v1981_v13 }
 0x98c   : > { %v1926_v51 = vsel %vm3437_vm5, %v1922_v26, %v1924_v17 }
 0x98d   : > { %1966 = vrot.lane.b32.xlu0 %v1895_v40, %s3385_s1  ;;  %1950 = vrot.lane.b32.xlu1 %v1866_v9, %s3385_s1  ;;  %v2251_v40 = vcombine.low %v3227_v28, %v3227_v28 }
 0x98e   : > { %v1965_v55 = vpop.permute.xlu0 %1964 }
 0x98f   : > { %v1920_v19 = vpop.permute.xlu1 %1919 }
 0x990   : > { %v1925_v34 = vsel %vm3438_vm14, %v1920_v19, %v1922_v26 }
 0x991   : > { %1956 = vrot.lane.b32.xlu0 %v1877_v39, %s3385_s1  ;;  %1938 = vrot.lane.b32.xlu1 %v1820_v0, %s3385_s1 }
 0x993   : > { %v1983_v32 = vpop.permute.xlu1 %1982 }
 0x994   : > { %v2005_v42 = vsel %vm856_vm1, %v1981_v13, %v1983_v32 }
 0x995   : > { %1936 = vrot.lane.b32.xlu1 %v1819_v49, %s3385_s1  ;;  %1944 = vrot.lane.b32.xlu0 %v1858_v47, %s3385_s1 }
 0x996   : > { %2029 = vmatprep.subr.bf16.mxu0 %v2005_v42 }
 0x997   : > { %2030 = vmatpush1.bf16.msra.mxu0 %v2004_v53  ;;  %v1963_v18 = vpop.permute.xlu1 %1962 }
 0x998   : > { %v1999_v2 = vsel %vm856_vm1, %v1963_v18, %v1965_v55 }
 0x999   : > { %1988 = vrot.lane.b32.xlu1 %v1924_v17, %s3385_s1  ;;  %1942 = vrot.lane.b32.xlu0 %v1853_v37, %s3385_s1 }
 0x99b   : > { %v1961_v54 = vpop.permute.xlu1 %1960 }
 0x99c   : > { %v1998_v29 = vsel %vm856_vm1, %v1961_v54, %v1963_v18 }
 0x99d   : > { %1415 = vperm.xlu1 %2286, %v1412_v48   ;;  %1940 = vrot.lane.b32.xlu0 %v1821_v8, %s3385_s1 }
 0x9a1   : > { %1423 = vperm.xlu1 %2286, %v1420_v12   ;;  %1986 = vrot.lane.b32.xlu0 %v1926_v51, %s3385_s1 }
 0x9a5   : > { %1984 = vrot.lane.b32.xlu0 %v1925_v34, %s3385_s1 }
 0x9a9   : > { %2073 = vperm.xlu0 %2285, %v2070_v41  }
 0x9ad   : > { %2081 = vperm.xlu0 %2285, %v2078_v43  }
 0x9e1   : > { %v1971_v35 = vpop.permute.xlu1 %1970 }
 0x9e5   : > { %v1973_v21 = vpop.permute.xlu1 %1972 }
 0x9e6   : > { %v1977_v33 = vpop.permute.xlu0 %1976 }
 0x9e9   : > { %v1975_v52 = vpop.permute.xlu1 %1974 }
 0x9ea   : > { %v2002_v50 = vsel %vm856_vm1, %v1973_v21, %v1975_v52  ;;  %v2003_v57 = vsel %vm856_vm1, %v1975_v52, %v1977_v33 }
 0x9eb   : > { %2031 = vmatprep.subr.bf16.mxu0 %v2003_v57 }
 0x9ec   : > { %2032 = vmatpush1.bf16.msra.mxu0 %v2002_v50 }
 0x9ed   : > { %v1959_v58 = vpop.permute.xlu1 %1958 }
 0x9f1   : > { %v1949_v59 = vpop.permute.xlu1 %1948 }
 0x9f3   : > { %v1955_v56 = vpop.permute.xlu0 %1954 }
 0x9f7   : > { %v1953_v61 = vpop.permute.xlu0 %1952 }
 0x9fb   : > { %v1969_v45 = vpop.permute.xlu0 %1968  ;;  %v1947_v60 = vpop.permute.xlu1 %1946 }
 0x9fc   : > { %v2001_v63 = vsel %vm856_vm1, %v1969_v45, %v1971_v35 }
 0x9fd   : > { %2033 = vmatprep.subr.bf16.mxu0 %v2001_v63 }
 0x9ff   : > { %v1967_v22 = vpop.permute.xlu0 %1966  ;;  %v1951_v4 = vpop.permute.xlu1 %1950 }
 0xa00   : > { %v2000_v3 = vsel %vm856_vm1, %v1967_v22, %v1969_v45  ;;  %v1995_v36 = vsel %vm856_vm1, %v1951_v4, %v1953_v61  ;;  %v1994_v7 = vsel %vm856_vm1, %v1949_v59, %v1951_v4 }
 0xa01   : > { %2034 = vmatpush1.bf16.msra.mxu0 %v2000_v3 }
 0xa02   : > { %2035 = vmatprep.subr.bf16.mxu0 %v1999_v2 }
 0xa03   : > { %v1957_v5 = vpop.permute.xlu0 %1956  ;;  %v1939_v27 = vpop.permute.xlu1 %1938 }
 0xa04   : > { %v1997_v44 = vsel %vm856_vm1, %v1957_v5, %v1959_v58  ;;  %v1996_v1 = vsel %vm856_vm1, %v1955_v56, %v1957_v5 }
 0xa05   : > { %2036 = vmatpush1.bf16.msra.mxu0 %v1998_v29 }
 0xa06   : > { %2037 = vmatprep.subr.bf16.mxu0 %v1997_v44 }
 0xa07   : > { %v1945_v62 = vpop.permute.xlu0 %1944  ;;  %v1937_v31 = vpop.permute.xlu1 %1936 }
 0xa08   : > { %v1993_v37 = vsel %vm856_vm1, %v1945_v62, %v1947_v60  ;;  %v1990_v17 = vsel %vm856_vm1, %v1937_v31, %v1939_v27 }
 0xa09   : > { %2038 = vmatpush1.bf16.msra.mxu0 %v1996_v1 }
 0xa0a   : > { %2039 = vmatprep.subr.bf16.mxu0 %v1995_v36 }
 0xa0b   : > { %v1943_v6 = vpop.permute.xlu0 %1942  ;;  %v1989_v15 = vpop.permute.xlu1 %1988 }
 0xa0c   : > { %v1992_v11 = vsel %vm856_vm1, %v1943_v6, %v1945_v62 }
 0xa0d   : > { %2040 = vmatpush1.bf16.msra.mxu0 %v1994_v7 }
 0xa0e   : > { %2041 = vmatprep.subr.bf16.mxu0 %v1993_v37 }
 0xa0f   : > { %v1941_v10 = vpop.permute.xlu0 %1940 }
 0xa10   : > { %v1991_v14 = vsel %vm856_vm1, %v1939_v27, %v1941_v10 }
 0xa11   : > { %2042 = vmatpush1.bf16.msra.mxu0 %v1992_v11 }
 0xa12   : > { %2043 = vmatprep.subr.bf16.mxu0 %v1991_v14 }
 0xa13   : > { %v1987_v16 = vpop.permute.xlu0 %1986 }
 0xa14   : > { %v2007_v20 = vsel %vm856_vm1, %v1987_v16, %v1989_v15 }
 0xa15   : > { %2044 = vmatpush1.bf16.msra.mxu0 %v1990_v17 }
 0xa16   : > { %2059 = vmatprep.subr.bf16.mxu0 %v2007_v20 }
 0xa17   : > { %v1985_v24 = vpop.permute.xlu0 %1984 }
 0xa18   : > { %v2006_v25 = vsel %vm856_vm1, %v1985_v24, %v1987_v16  ;;  %v1416_v26 = vpop.permute.xlu1 %1415 }
 0xa19   : > { %2060 = vmatpush2.bf16.msra.mxu0 %v2006_v25  ;;  %v1418_v9 = vmul.f32 %v1416_v26, %v3055_v23  ;;  %v1419_v13 = vmul.f32 %v1416_v26, %v3057_v38 }
 0xa1c   : > { %2062 = vmatmul.mubr.bf16.vlgmr.msra.gmra.mxu0 %v2251_v40  ;;  %v1424_v19 = vpop.permute.xlu1 %1423 }
 0xa1d   : > { %v1426_v39 = vadd.f32 %v1424_v19, %v1418_v9  ;;  %v1427_v0 = vadd.f32 %v1424_v19, %v1419_v13 }
 0xa1f   : > { %vm1428_vm0 = vcmp.ge.f32.partialorder %v1426_v39, 0.0  ;;  %vm1429_vm1 = vcmp.ge.f32.partialorder %v1427_v0, 0.0  ;;  %v1430_v46 = vmul.f32 0.2, %v1426_v39  ;;  %v1431_v32 = vmul.f32 0.2, %v1427_v0 }
 0xa21   : > { %v1432_v47 = vsel %vm1428_vm0, %v1426_v39, %v1430_v46  ;;  %v1433_v49 = vsel %vm1429_vm1, %v1427_v0, %v1431_v32 }
 0xa22   : > { %1434 = vst [vmem:[%s723_s10] sm:$0xff] %v1432_v47  ;;  %1435 = vst [vmem:[%s723_s10 + $0x8] sm:$0xff] %v1433_v49 }
 0xa24   : > { %v2074_v23 = vpop.permute.xlu0 %2073 }
 0xa28   : > { %v2082_v53 = vpop.permute.xlu0 %2081 }
 0xadc   : > { %v2063_v42 = vpop.f32.mrf.mxu0 }
 0xadd   : > { %v2076_v38 = vmul.f32 %v2074_v23, %v2063_v42 }
 0xade   : > { %v2065_v28 = vpop.f32.mrf.mxu0 }
 0xadf   : > { %v2084_v48 = vadd.f32 %v2082_v53, %v2076_v38  ;;  %v2077_v30 = vmul.f32 %v2074_v23, %v2065_v28 }
 0xae0   : > { %v2067_v8 = vpop.f32.mrf.mxu0 }
 0xae1   : > { %vm2086_vm4 = vcmp.ge.f32.partialorder %v2084_v48, 0.0  ;;  %v2088_v12 = vmul.f32 0.2, %v2084_v48  ;;  %v2085_v51 = vadd.f32 %v2082_v53, %v2077_v30 }
 0xae2   : > { %v2068_v34 = vpop.f32.mrf.mxu0 }
 0xae3   : > { %v2090_v41 = vsel %vm2086_vm4, %v2084_v48, %v2088_v12  ;;  %vm2087_vm3 = vcmp.ge.f32.partialorder %v2085_v51, 0.0  ;;  %v2089_v43 = vmul.f32 0.2, %v2085_v51 }
 0xae4   : > { %2092 = vst [vmem:[%s728_s8] sm:$0xff] %v2090_v41 }
 0xae5   : > { %v2091_v18 = vsel %vm2087_vm3, %v2085_v51, %v2089_v43 }
 0xae6   : > { %2093 = vst [vmem:[%s728_s8 + $0x8] sm:$0xff] %v2091_v18 }
 0xae7 PF: > { %s3440_s4 = sld [smem:[#allocation2_spill]] }
 0xaed   : > { %s33_s3 = sadd.s32 1, %s3440_s4  }
 0xaee   : > { %p30_p4 = scmp.ge.s32.totalorder %s33_s3, 4  }
 0xaf0   :  { %32 = sbr.rel (!%p30_p4) target bundleno = 14 (0xe), region = 157 }

// kernel: decoder_forward.4
= control target key start
LH: loop header
LB: loop body
LE: loop exit
PB: predicated region body
PF: predicated region fallthrough
CT: control target
= control target key end

     0   :  { %s605_s21 = smov 0   ;;  %s656_s0 = inlined_call_operand.vmem [shape: f32[2,8,144], index: 0, kind: input, shape index: {}]   ;;  %s657_s1 = inlined_call_operand.vmem [shape: f32[2,8,144], index: 1, kind: input, shape index: {}]   ;;  %s658_s2 = inlined_call_operand.vmem [shape: f32[16,16], index: 2, kind: input, shape index: {}]   ;;  %s659_s3 = inlined_call_operand.vmem [shape: f32[16,1], index: 3, kind: input, shape index: {}]   ;;  %s660_s4 = inlined_call_operand.vmem [shape: f32[16,1], index: 4, kind: input, shape index: {}]   ;;  %s661_s5 = inlined_call_operand.vmem [shape: f32[2,8,144], index: 5, kind: output, shape index: {0}]   ;;  %s662_s6 = inlined_call_operand.vmem [shape: f32[2,8,144], index: 6, kind: output, shape index: {1}]  }
   0x1 LB: > { %s523_s22 = sadd.s32 4294967295, %s566_s21   ;;  %p527_p0 = scmp.ge.s32.totalorder %s566_s21, 1  ;;  %s566_s21 = sphi %s605_s21, %s17_s21  }
   0x2   : > { %p225_p1 = scmp.lt.s32.totalorder %s566_s21, 3 }
   0x4   : > { %p226_p2 = pnand %p527_p0, %p225_p1 }
   0x5   : > { %p265_p3 = scmp.lt.s32.totalorder (!%p226_p2), %s523_s22, 1 }
   0x6   : > { %229 = sbr.rel (%p226_p2) target bundleno = 223 (0xdf), region = 40 }
   0xb   : > { %v568_v0 = vmov 0.0   ;;  %v375_v1 = vld [vmem:[%s659_s3] sm:$0xff]  ;;  %s664_s22 = smov (!%p265_p3, %s523_s22), 1  ;;  %v569_v3 = vmov 0   ;;  %vm291_vm0 = vcmask 130048   ;;  %v290_v9 = vld [vmem:[%s658_s2 + $0x8] sm:$0xff] }
   0xc   : > { %362 = vmatprep.mubr.f32.mxu0 %v568_v0  ;;  %368 = vmatprep.mubr.f32.mxu1 %v568_v0  ;;  %v391_v2 = vld [vmem:[%s660_s4] sm:$0xff]  ;;  %s619_s27 = sshll.u32 %s664_s22, 4  ;;  %v376_v10 = vld [vmem:[%s659_s3 + $0x8] sm:$0xff] }
   0xd   : > { %558 = vset.pattern.permute.xlu0 %v569_v3  ;;  %559 = vset.pattern.permute.xlu1 %v569_v3  ;;  %s274_s30 = scalar_lea.vmem %s657_s1, %s619_s27  ;;  %s269_s9 = scalar_lea.vmem %s656_s0, %s619_s27  ;;  %v289_v8 = vld [vmem:[%s658_s2] sm:$0xff]  ;;  %v392_v11 = vld [vmem:[%s660_s4 + $0x8] sm:$0xff] }
   0xe   : > { %379 = vperm.xlu0 %558, %v375_v1   ;;  %395 = vperm.xlu1 %559, %v391_v2   ;;  %v288_v4 = vld [vmem:[%s274_s30 + $0x8] sm:$0xff]  ;;  %v287_v5 = vld [vmem:[%s274_s30] sm:$0xff]  ;;  %s279_s20 = scalar_lea.vmem %s661_s5, %s619_s27  ;;  %s284_s24 = scalar_lea.vmem %s662_s6, %s619_s27 }
   0xf   : > { %v286_v6 = vld [vmem:[%s269_s9 + $0x8] sm:$0xff]  ;;  %326 = vmatprep.subr.mxu0 %v288_v4  ;;  %544 = vmatprep.subr.mxu1 %v288_v4  ;;  %v285_v7 = vld [vmem:[%s269_s9] sm:$0xff] }
  0x10   : > { %327 = vmatpush1.msra.mxu0 %v287_v5  ;;  %546 = vmatpush1.msra.mxu1 %v287_v5 }
  0x11   : > { %328 = vmatprep.subr.mxu0 %v286_v6  ;;  %545 = vmatprep.subr.mxu1 %v286_v6 }
  0x12   : > { %329 = vmatpush1.msra.mxu0 %v285_v7  ;;  %547 = vmatpush1.msra.mxu1 %v285_v7 }
  0x13   : > { %536 = vmatmul.mubr.msk.f32.vlgmr.msra.gmra.mxu0 %vm291_vm0, %v289_v8  ;;  %537 = vmatmul.mubr.msk.f32.vlgmr.msra.gmra.mxu1 %vm291_vm0, %v290_v9 }
  0x14   : > { %384 = vperm.xlu0 %558, %v376_v10   ;;  %400 = vperm.xlu1 %559, %v392_v11  }
  0x89   : > { %v380_v12 = vpop.permute.xlu0 %379  ;;  %v396_v13 = vpop.permute.xlu1 %395 }
  0x8f   : > { %v385_v14 = vpop.permute.xlu0 %384  ;;  %v401_v17 = vpop.permute.xlu1 %400 }
  0xd3   : > { %v364_v15 = vpop.f32.mrf.mxu0  ;;  %v370_v16 = vpop.f32.mrf.mxu1 }
  0xd4   : > { %v387_v18 = vmul.f32 %v380_v12, %v364_v15  ;;  %v389_v19 = vmul.f32 %v385_v14, %v370_v16 }
  0xd5   : > { %v366_v20 = vpop.f32.mrf.mxu0  ;;  %v372_v21 = vpop.f32.mrf.mxu1 }
  0xd6   : > { %v403_v22 = vadd.f32 %v396_v13, %v387_v18  ;;  %v405_v23 = vadd.f32 %v401_v17, %v389_v19  ;;  %v388_v24 = vmul.f32 %v380_v12, %v366_v20  ;;  %v390_v25 = vmul.f32 %v385_v14, %v372_v21 }
  0xd8   : > { %vm407_vm1 = vcmp.ge.f32.partialorder %v403_v22, 0.0  ;;  %v411_v26 = vmul.f32 0.2, %v403_v22  ;;  %vm409_vm2 = vcmp.ge.f32.partialorder %v405_v23, 0.0  ;;  %v413_v27 = vmul.f32 0.2, %v405_v23 }
  0xd9   : > { %v404_v28 = vadd.f32 %v396_v13, %v388_v24  ;;  %v406_v29 = vadd.f32 %v401_v17, %v390_v25 }
  0xda   : > { %v415_v30 = vsel %vm407_vm1, %v403_v22, %v411_v26  ;;  %v417_v31 = vsel %vm409_vm2, %v405_v23, %v413_v27 }
  0xdb   : > { %419 = vst [vmem:[%s279_s20] sm:$0xff] %v415_v30  ;;  %421 = vst [vmem:[%s284_s24] sm:$0xff] %v417_v31  ;;  %vm408_vm3 = vcmp.ge.f32.partialorder %v404_v28, 0.0  ;;  %v412_v32 = vmul.f32 0.2, %v404_v28  ;;  %vm410_vm4 = vcmp.ge.f32.partialorder %v406_v29, 0.0  ;;  %v414_v33 = vmul.f32 0.2, %v406_v29 }
  0xdd   : > { %v416_v34 = vsel %vm408_vm3, %v404_v28, %v412_v32  ;;  %v418_v35 = vsel %vm410_vm4, %v406_v29, %v414_v33 }
  0xde   : > { %420 = vst.msk [vmem:[%s279_s20 + $0x8] sm:$0xff] %vm291_vm0, %v416_v34  ;;  %422 = vst.msk [vmem:[%s284_s24 + $0x8] sm:$0xff] %vm291_vm0, %v418_v35 }
  0xdf PF: > { %s17_s21 = sadd.s32 1, %s566_s21  }
  0xe0   : > { %p14_p4 = scmp.ge.s32.totalorder %s17_s21, 4  }
  0xe2   :  { %16 = sbr.rel (!%p14_p4) target bundleno = 1 (0x1), region = 85 }

// kernel: reverse.0
= control target key start
LH: loop header
LB: loop body
LE: loop exit
PB: predicated region body
PF: predicated region fallthrough
CT: control target
= control target key end

     0   :  { %v104_v3 = vlaneseq  ;;  %v97_v18 = vld [vmem:[#allocation0 + $0x7] ss:$-1 sm:$0xff]  ;;  %v111_v19 = vld [vmem:[#allocation0 + $0x17] ss:$-1 sm:$0xff]  ;;  %s606_s0 = inlined_call_operand.vmem [shape: f32[2,8,16,7], index: 0, kind: input, shape index: {}]   ;;  %s607_s1 = inlined_call_operand.vmem [shape: f32[2,8,16,7], index: 1, kind: output, shape index: {}]  }
   0x1   :  { %v61_v0 = vld [vmem:[%s606_s0] sm:$0xff]  ;;  %v63_v1 = vld [vmem:[%s606_s0 + $0x8] sm:$0xff]  ;;  %v65_v2 = vld [vmem:[%s606_s0 + $0x10] sm:$0xff]  ;;  %v98_v20 = vrot.slane %v97_v18, 1  ;;  %v112_v21 = vrot.slane %v111_v19, 1 }
   0x2   :  { %62 = vst [vmem:[#allocation0 + $0x8] sm:$0xff] %v61_v0  ;;  %64 = vst [vmem:[#allocation0 + $0x18] sm:$0xff] %v63_v1  ;;  %v67_v4 = vld [vmem:[%s606_s0 + $0x18] sm:$0xff]  ;;  %v69_v5 = vld [vmem:[%s606_s0 + $0x20] sm:$0xff]  ;;  %v502_v10 = vshrl.u32 %v104_v3, 7 }
   0x3   :  { %66 = vst [vmem:[#allocation0 + $0x28] sm:$0xff] %v65_v2  ;;  %v71_v6 = vld [vmem:[%s606_s0 + $0x28] sm:$0xff]  ;;  %68 = vst [vmem:[#allocation0 + $0x38] sm:$0xff] %v67_v4  ;;  %v73_v7 = vld [vmem:[%s606_s0 + $0x30] sm:$0xff] }
   0x4   :  { %70 = vst [vmem:[#allocation0 + $0x48] sm:$0xff] %v69_v5  ;;  %72 = vst [vmem:[#allocation0 + $0x58] sm:$0xff] %v71_v6  ;;  %v75_v8 = vld [vmem:[%s606_s0 + $0x38] sm:$0xff]  ;;  %v77_v9 = vld [vmem:[%s606_s0 + $0x40] sm:$0xff]  ;;  %vm106_vm0 = vcmp.lt.s32.totalorder %v502_v10, 7 }
   0x5   :  { %74 = vst [vmem:[#allocation0 + $0x68] sm:$0xff] %v73_v7  ;;  %76 = vst [vmem:[#allocation0 + $0x78] sm:$0xff] %v75_v8  ;;  %v79_v11 = vld [vmem:[%s606_s0 + $0x48] sm:$0xff]  ;;  %v81_v12 = vld [vmem:[%s606_s0 + $0x50] sm:$0xff] }
   0x6   :  { %78 = vst [vmem:[#allocation0 + $0x88] sm:$0xff] %v77_v9  ;;  %v83_v13 = vld [vmem:[%s606_s0 + $0x58] sm:$0xff]  ;;  %80 = vst [vmem:[#allocation0 + $0x98] sm:$0xff] %v79_v11  ;;  %v85_v14 = vld [vmem:[%s606_s0 + $0x60] sm:$0xff] }
   0x7   :  { %82 = vst [vmem:[#allocation0 + $0xa8] sm:$0xff] %v81_v12  ;;  %84 = vst [vmem:[#allocation0 + $0xb8] sm:$0xff] %v83_v13  ;;  %v87_v15 = vld [vmem:[%s606_s0 + $0x68] sm:$0xff]  ;;  %v89_v16 = vld [vmem:[%s606_s0 + $0x70] sm:$0xff] }
   0x8   :  { %86 = vst [vmem:[#allocation0 + $0xc8] sm:$0xff] %v85_v14  ;;  %88 = vst [vmem:[#allocation0 + $0xd8] sm:$0xff] %v87_v15  ;;  %v91_v17 = vld [vmem:[%s606_s0 + $0x78] sm:$0xff]  ;;  %v125_v22 = vld [vmem:[#allocation0 + $0x27] ss:$-1 sm:$0xff] }
   0x9   :  { %90 = vst [vmem:[#allocation0 + $0xe8] sm:$0xff] %v89_v16  ;;  %92 = vst [vmem:[#allocation0 + $0xf8] sm:$0xff] %v91_v17  ;;  %v139_v23 = vld [vmem:[#allocation0 + $0x37] ss:$-1 sm:$0xff]  ;;  %v126_v24 = vrot.slane %v125_v22, 1 }
   0xa   :  { %v140_v25 = vrot.slane %v139_v23, 1  ;;  %v153_v26 = vld [vmem:[#allocation0 + $0x47] ss:$-1 sm:$0xff]  ;;  %v167_v27 = vld [vmem:[#allocation0 + $0x57] ss:$-1 sm:$0xff]  ;;  %99 = vst [vmem:[#allocation1] sm:$0xff] %v98_v20 }
   0xb   :  { %v102_v28 = vld [vmem:[#allocation0 + $0xf] ss:$-1 sm:$0xff]  ;;  %113 = vst [vmem:[#allocation1 + $0x8] sm:$0xff] %v112_v21  ;;  %v116_v29 = vld [vmem:[#allocation0 + $0x1f] ss:$-1 sm:$0xff]  ;;  %127 = vst [vmem:[#allocation1 + $0x10] sm:$0xff] %v126_v24 }
   0xc   :  { %v130_v30 = vld [vmem:[#allocation0 + $0x2f] ss:$-1 sm:$0xff]  ;;  %v103_v31 = vrot.slane %v102_v28, 1  ;;  %v117_v32 = vrot.slane %v116_v29, 1  ;;  %141 = vst [vmem:[#allocation1 + $0x18] sm:$0xff] %v140_v25  ;;  %v154_v35 = vrot.slane %v153_v26, 1 }
   0xd   :  { %v131_v33 = vrot.slane %v130_v30, 1  ;;  %v144_v34 = vld [vmem:[#allocation0 + $0x3f] ss:$-1 sm:$0xff]  ;;  %v158_v37 = vld [vmem:[#allocation0 + $0x4f] ss:$-1 sm:$0xff]  ;;  %v168_v38 = vrot.slane %v167_v27, 1 }
   0xe   :  { %v145_v36 = vrot.slane %v144_v34, 1  ;;  %v172_v39 = vld [vmem:[#allocation0 + $0x5f] ss:$-1 sm:$0xff]  ;;  %107 = vst.msk [vmem:[#allocation1] sm:$0xff] %vm106_vm0, %v103_v31  ;;  %121 = vst.msk [vmem:[#allocation1 + $0x8] sm:$0xff] %vm106_vm0, %v117_v32  ;;  %v159_v40 = vrot.slane %v158_v37, 1 }
   0xf   :  { %135 = vst.msk [vmem:[#allocation1 + $0x10] sm:$0xff] %vm106_vm0, %v131_v33  ;;  %155 = vst [vmem:[#allocation1 + $0x20] sm:$0xff] %v154_v35  ;;  %v173_v41 = vrot.slane %v172_v39, 1  ;;  %v181_v42 = vld [vmem:[#allocation0 + $0x67] ss:$-1 sm:$0xff] }
  0x10   :  { %v186_v43 = vld [vmem:[#allocation0 + $0x6f] ss:$-1 sm:$0xff]  ;;  %149 = vst.msk [vmem:[#allocation1 + $0x18] sm:$0xff] %vm106_vm0, %v145_v36  ;;  %169 = vst [vmem:[#allocation1 + $0x28] sm:$0xff] %v168_v38  ;;  %v182_v44 = vrot.slane %v181_v42, 1 }
  0x11   :  { %v187_v45 = vrot.slane %v186_v43, 1  ;;  %v195_v46 = vld [vmem:[#allocation0 + $0x77] ss:$-1 sm:$0xff]  ;;  %v200_v47 = vld [vmem:[#allocation0 + $0x7f] ss:$-1 sm:$0xff]  ;;  %163 = vst.msk [vmem:[#allocation1 + $0x20] sm:$0xff] %vm106_vm0, %v159_v40 }
  0x12   :  { %177 = vst.msk [vmem:[#allocation1 + $0x28] sm:$0xff] %vm106_vm0, %v173_v41  ;;  %v196_v48 = vrot.slane %v195_v46, 1  ;;  %v201_v49 = vrot.slane %v200_v47, 1  ;;  %v209_v50 = vld [vmem:[#allocation0 + $0x87] ss:$-1 sm:$0xff]  ;;  %183 = vst [vmem:[#allocation1 + $0x30] sm:$0xff] %v182_v44 }
  0x13   :  { %v214_v51 = vld [vmem:[#allocation0 + $0x8f] ss:$-1 sm:$0xff]  ;;  %v210_v52 = vrot.slane %v209_v50, 1  ;;  %v223_v54 = vld [vmem:[#allocation0 + $0x97] ss:$-1 sm:$0xff]  ;;  %191 = vst.msk [vmem:[#allocation1 + $0x30] sm:$0xff] %vm106_vm0, %v187_v45 }
  0x14   :  { %v215_v53 = vrot.slane %v214_v51, 1  ;;  %v228_v55 = vld [vmem:[#allocation0 + $0x9f] ss:$-1 sm:$0xff]  ;;  %197 = vst [vmem:[#allocation1 + $0x38] sm:$0xff] %v196_v48  ;;  %v224_v56 = vrot.slane %v223_v54, 1 }
  0x15   :  { %v229_v57 = vrot.slane %v228_v55, 1  ;;  %v237_v58 = vld [vmem:[#allocation0 + $0xa7] ss:$-1 sm:$0xff]  ;;  %v242_v59 = vld [vmem:[#allocation0 + $0xaf] ss:$-1 sm:$0xff]  ;;  %205 = vst.msk [vmem:[#allocation1 + $0x38] sm:$0xff] %vm106_vm0, %v201_v49 }
  0x16   :  { %211 = vst [vmem:[#allocation1 + $0x40] sm:$0xff] %v210_v52  ;;  %v238_v60 = vrot.slane %v237_v58, 1  ;;  %v243_v61 = vrot.slane %v242_v59, 1  ;;  %v251_v62 = vld [vmem:[#allocation0 + $0xb7] ss:$-1 sm:$0xff]  ;;  %225 = vst [vmem:[#allocation1 + $0x48] sm:$0xff] %v224_v56 }
  0x17   :  { %v256_v63 = vld [vmem:[#allocation0 + $0xbf] ss:$-1 sm:$0xff]  ;;  %219 = vst.msk [vmem:[#allocation1 + $0x40] sm:$0xff] %vm106_vm0, %v215_v53  ;;  %v252_v0 = vrot.slane %v251_v62, 1  ;;  %v265_v2 = vld [vmem:[#allocation0 + $0xc7] ss:$-1 sm:$0xff] }
  0x18   :  { %v257_v1 = vrot.slane %v256_v63, 1  ;;  %v270_v3 = vld [vmem:[#allocation0 + $0xcf] ss:$-1 sm:$0xff]  ;;  %233 = vst.msk [vmem:[#allocation1 + $0x48] sm:$0xff] %vm106_vm0, %v229_v57  ;;  %239 = vst [vmem:[#allocation1 + $0x50] sm:$0xff] %v238_v60  ;;  %v266_v4 = vrot.slane %v265_v2, 1 }
  0x19   :  { %v271_v5 = vrot.slane %v270_v3, 1  ;;  %v279_v6 = vld [vmem:[#allocation0 + $0xd7] ss:$-1 sm:$0xff]  ;;  %v284_v7 = vld [vmem:[#allocation0 + $0xdf] ss:$-1 sm:$0xff]  ;;  %247 = vst.msk [vmem:[#allocation1 + $0x50] sm:$0xff] %vm106_vm0, %v243_v61 }
  0x1a   :  { %253 = vst [vmem:[#allocation1 + $0x58] sm:$0xff] %v252_v0  ;;  %v280_v8 = vrot.slane %v279_v6, 1  ;;  %v285_v9 = vrot.slane %v284_v7, 1  ;;  %v293_v11 = vld [vmem:[#allocation0 + $0xe7] ss:$-1 sm:$0xff]  ;;  %267 = vst [vmem:[#allocation1 + $0x60] sm:$0xff] %v266_v4 }
  0x1b   :  { %v298_v12 = vld [vmem:[#allocation0 + $0xef] ss:$-1 sm:$0xff]  ;;  %261 = vst.msk [vmem:[#allocation1 + $0x58] sm:$0xff] %vm106_vm0, %v257_v1  ;;  %v294_v13 = vrot.slane %v293_v11, 1  ;;  %v307_v15 = vld [vmem:[#allocation0 + $0xf7] ss:$-1 sm:$0xff] }
  0x1c   :  { %v299_v14 = vrot.slane %v298_v12, 1  ;;  %v312_v16 = vld [vmem:[#allocation0 + $0xff] ss:$-1 sm:$0xff]  ;;  %275 = vst.msk [vmem:[#allocation1 + $0x60] sm:$0xff] %vm106_vm0, %v271_v5  ;;  %281 = vst [vmem:[#allocation1 + $0x68] sm:$0xff] %v280_v8  ;;  %v308_v17 = vrot.slane %v307_v15, 1 }
  0x1d   :  { %v313_v18 = vrot.slane %v312_v16, 1  ;;  %v376_v19 = vld [vmem:[#allocation1] sm:$0xff]  ;;  %v378_v20 = vld [vmem:[#allocation1 + $0x8] sm:$0xff]  ;;  %v380_v21 = vld [vmem:[#allocation1 + $0x10] sm:$0xff]  ;;  %289 = vst.msk [vmem:[#allocation1 + $0x68] sm:$0xff] %vm106_vm0, %v285_v9 }
  0x1e   :  { %295 = vst [vmem:[#allocation1 + $0x70] sm:$0xff] %v294_v13  ;;  %377 = vst [vmem:[%s607_s1] sm:$0xff] %v376_v19  ;;  %v382_v22 = vld [vmem:[#allocation1 + $0x18] sm:$0xff]  ;;  %v384_v23 = vld [vmem:[#allocation1 + $0x20] sm:$0xff] }
  0x1f   :  { %379 = vst [vmem:[%s607_s1 + $0x8] sm:$0xff] %v378_v20  ;;  %381 = vst [vmem:[%s607_s1 + $0x10] sm:$0xff] %v380_v21  ;;  %v386_v24 = vld [vmem:[#allocation1 + $0x28] sm:$0xff]  ;;  %v388_v25 = vld [vmem:[#allocation1 + $0x30] sm:$0xff] }
  0x20   :  { %303 = vst.msk [vmem:[#allocation1 + $0x70] sm:$0xff] %vm106_vm0, %v299_v14  ;;  %309 = vst [vmem:[#allocation1 + $0x78] sm:$0xff] %v308_v17  ;;  %v390_v26 = vld [vmem:[#allocation1 + $0x38] sm:$0xff]  ;;  %v392_v10 = vld [vmem:[#allocation1 + $0x40] sm:$0xff] }
  0x21   :  { %383 = vst [vmem:[%s607_s1 + $0x18] sm:$0xff] %v382_v22  ;;  %385 = vst [vmem:[%s607_s1 + $0x20] sm:$0xff] %v384_v23  ;;  %v394_v27 = vld [vmem:[#allocation1 + $0x48] sm:$0xff]  ;;  %v396_v28 = vld [vmem:[#allocation1 + $0x50] sm:$0xff] }
  0x22   :  { %387 = vst [vmem:[%s607_s1 + $0x28] sm:$0xff] %v386_v24  ;;  %317 = vst.msk [vmem:[#allocation1 + $0x78] sm:$0xff] %vm106_vm0, %v313_v18  ;;  %v398_v29 = vld [vmem:[#allocation1 + $0x58] sm:$0xff] }
  0x23   :  { %389 = vst [vmem:[%s607_s1 + $0x30] sm:$0xff] %v388_v25  ;;  %391 = vst [vmem:[%s607_s1 + $0x38] sm:$0xff] %v390_v26  ;;  %v400_v30 = vld [vmem:[#allocation1 + $0x60] sm:$0xff] }
  0x24   :  { %393 = vst [vmem:[%s607_s1 + $0x40] sm:$0xff] %v392_v10  ;;  %395 = vst [vmem:[%s607_s1 + $0x48] sm:$0xff] %v394_v27  ;;  %v402_v31 = vld [vmem:[#allocation1 + $0x68] sm:$0xff] }
  0x25   :  { %397 = vst [vmem:[%s607_s1 + $0x50] sm:$0xff] %v396_v28  ;;  %399 = vst [vmem:[%s607_s1 + $0x58] sm:$0xff] %v398_v29 }
  0x26   :  { %401 = vst [vmem:[%s607_s1 + $0x60] sm:$0xff] %v400_v30  ;;  %403 = vst [vmem:[%s607_s1 + $0x68] sm:$0xff] %v402_v31 }
  0x27   :  { %v404_v32 = vld [vmem:[#allocation1 + $0x70] sm:$0xff] }
  0x28   :  { %405 = vst [vmem:[%s607_s1 + $0x70] sm:$0xff] %v404_v32 }
  0x29   :  { %v406_v33 = vld [vmem:[#allocation1 + $0x78] sm:$0xff] }
  0x2a   :  { %407 = vst [vmem:[%s607_s1 + $0x78] sm:$0xff] %v406_v33 }

// kernel: decoder_forward.5
= control target key start
LH: loop header
LB: loop body
LE: loop exit
PB: predicated region body
PF: predicated region fallthrough
CT: control target
= control target key end

     0   :  { %s1563_s17 = smov 0   ;;  %s2184_s0 = inlined_call_operand.vmem [shape: f32[2,8,256], index: 0, kind: input, shape index: {}]   ;;  %s2185_s1 = inlined_call_operand.vmem [shape: f32[2,8,256], index: 1, kind: input, shape index: {}]   ;;  %s2186_s2 = inlined_call_operand.vmem [shape: f32[2,8,256], index: 2, kind: input, shape index: {}]   ;;  %s2187_s3 = inlined_call_operand.vmem [shape: f32[2,8,256], index: 3, kind: input, shape index: {}]   ;;  %s2188_s4 = inlined_call_operand.vmem [shape: f32[2,8,256], index: 4, kind: input, shape index: {}]   ;;  %s2189_s5 = inlined_call_operand.vmem [shape: bf16[16,216], index: 5, kind: input, shape index: {}]   ;;  %s2190_s6 = inlined_call_operand.vmem [shape: f32[16,1], index: 6, kind: input, shape index: {}]   ;;  %s2191_s7 = inlined_call_operand.vmem [shape: f32[16,1], index: 7, kind: input, shape index: {}]   ;;  %s2192_s8 = inlined_call_operand.vmem [shape: bf16[16,16], index: 8, kind: input, shape index: {}]   ;;  %s2193_s9 = inlined_call_operand.vmem [shape: f32[16,1], index: 9, kind: input, shape index: {}]   ;;  %s2194_s10 = inlined_call_operand.vmem [shape: f32[16,1], index: 10, kind: input, shape index: {}]   ;;  %s2195_s11 = inlined_call_operand.vmem [shape: f32[2,16,256], index: 11, kind: output, shape index: {}]  }
   0x1 LB: > { %s1418_s18 = sadd.s32 4294967295, %s1485_s17   ;;  %p1422_p0 = scmp.ge.s32.totalorder %s1485_s17, 1  ;;  %s1485_s17 = sphi %s1563_s17, %s21_s17  }
   0x2   : > { %p377_p1 = scmp.lt.s32.totalorder %s1485_s17, 3 }
   0x4   : > { %p378_p2 = pnand %p1422_p0, %p377_p1 }
   0x5   : > { %p437_p3 = scmp.lt.s32.totalorder (!%p378_p2), %s1418_s18, 1  ;;  %s1488_s16 = smov (!%p378_p2), 17  }
   0x6   : > { %381 = sbr.rel (%p378_p2) target bundleno = 1011 (0x3f3), region = 64  ;;  %s1489_s20 = smov (!%p378_p2), 113  }
   0x7   : > { %s1491_s21 = smov (!%p378_p2), 16   ;;  %s1493_s23 = smov (!%p378_p2), 32  }
   0x8   : > { %s1494_s24 = smov (!%p378_p2), 34   ;;  %s1496_s26 = smov (!%p378_p2), 2  }
   0x9   : > { %s1497_s27 = smov (!%p378_p2), 1   ;;  %s1499_s29 = smov (!%p378_p2), 98  }
   0xa   : > { %s1500_s30 = smov (!%p378_p2), 114   ;;  %s1502_s13 = smov (!%p378_p2), 96  }
   0xb   : > { %v470_v0 = vlaneseq  ;;  %v1487_v1 = vmov 0   ;;  %s2199_s18 = smov (!%p437_p3, %s1418_s18), 1  ;;  %vm533_vm6 = vcmask 138240   ;;  %vm561_vm7 = vcmask 269312  }
   0xc   : > { %1474 = vset.pattern.permute.xlu1 %v1487_v1  ;;  %1473 = vset.pattern.permute.xlu0 %v1487_v1  ;;  %s1443_s19 = sshll.u32 %s2199_s18, 4  ;;  %vm542_vm8 = vcmask 7168   ;;  %vm730_vm9 = vcmask 1043456   ;;  %vm647_vm10 = vcmask 1031168   ;;  %vm719_vm11 = vcmask 261120  }
   0xd   : > { %v471_v2 = vand.u32 127, %v470_v0  ;;  %1256 = vmatprep.mubr.bf16.mxu1 %v1487_v1  ;;  %s441_s22 = scalar_lea.vmem %s2184_s0, %s1443_s19  ;;  %s446_s25 = scalar_lea.vmem %s2185_s1, %s1443_s19  ;;  %v575_v23 = vshrl.u32 %v470_v0, 7  ;;  %vm2196_vm15 = vcmask 130048  }
   0xe   : > { %v508_v4 = vld [vmem:[%s441_s22 + $0x8] sm:$0xff]  ;;  %v507_v6 = vld [vmem:[%s441_s22] sm:$0xff]  ;;  %s451_s28 = scalar_lea.vmem %s2186_s2, %s1443_s19  ;;  %s456_s12 = scalar_lea.vmem %s2187_s3, %s1443_s19 }
   0xf   : > { %v472_v3 = vadd.s32 128, %v471_v2  ;;  %v510_v5 = vld [vmem:[%s446_s25 + $0x8] sm:$0xff]  ;;  %v509_v8 = vld [vmem:[%s446_s25] sm:$0xff]  ;;  %s461_s15 = scalar_lea.vmem %s2188_s4, %s1443_s19  ;;  %v477_v16 = vand.u32 15, %v471_v2  ;;  %s1490_s19 = smov 49   ;;  %v576_v25 = vsub.s32 0, %v575_v23 }
  0x10   : > { %v512_v7 = vpack.c.bf16 %v510_v5, %v508_v4  ;;  %v497_v9 = vld [vmem:[%s451_s28] sm:$0xff]  ;;  %v511_v11 = vpack.c.bf16 %v509_v8, %v507_v6  ;;  %v498_v14 = vld [vmem:[%s451_s28 + $0x8] sm:$0xff]  ;;  %v580_v27 = vsub.s32 4, %v575_v23  ;;  %s1492_s22 = smov 18   ;;  %s1495_s25 = smov 126  }
  0x11   : > { %v499_v10 = vld [vmem:[%s456_s12] sm:$0xff]  ;;  %v500_v15 = vld [vmem:[%s456_s12 + $0x8] sm:$0xff]  ;;  %v484_v17 = vand.u32 15, %v472_v3  ;;  %vm615_vm0 = vcmp.eq.s32.totalorder %v477_v16, 15  ;;  %vm566_vm3 = vcmp.eq.s32.totalorder %v477_v16, 0  ;;  %s1498_s28 = smov 97  }
  0x12   : > { %v501_v12 = vadd.f32 %v499_v10, %v497_v9  ;;  %v503_v13 = vld [vmem:[%s461_s15] sm:$0xff]  ;;  %527 = vrot.lane.b32.xlu0 %v512_v7, %s1488_s16  ;;  %v502_v18 = vadd.f32 %v500_v15, %v498_v14  ;;  %v504_v19 = vld [vmem:[%s461_s15 + $0x8] sm:$0xff]  ;;  %519 = vrot.lane.b32.xlu1 %v511_v11, %s1489_s20  ;;  %s1501_s12 = smov 112  }
  0x13   : > { %vm616_vm1 = vcmp.eq.s32.totalorder %v484_v17, 15  ;;  %vm567_vm4 = vcmp.eq.s32.totalorder %v484_v17, 0 }
  0x14   : > { %v505_v20 = vadd.f32 %v503_v13, %v501_v12  ;;  %v506_v21 = vadd.f32 %v504_v19, %v502_v18  ;;  %vm621_vm2 = vmpackc.low %vm616_vm1, %vm615_vm0 }
  0x15   : > { %v622_v26 = vsel %vm621_vm2, 65537, %v1487_v1  ;;  %vm572_vm5 = vmpackc.low %vm567_vm4, %vm566_vm3  ;;  %vm664_vm4 = vcmask 146432  }
  0x16   : > { %538 = vrot.lane.b32.xlu0 %v512_v7, %s1490_s19  ;;  %v513_v22 = vpack.c.bf16 %v505_v20, %v505_v20  ;;  %525 = vrot.lane.b32.xlu1 %v511_v11, %s1488_s16  ;;  %v514_v24 = vpack.c.bf16 %v506_v21, %v506_v21  ;;  %v1591_v28 = vrot.slane %v622_v26, %v576_v25  ;;  %v573_v30 = vsel %vm572_vm5, 65537, %v1487_v1 }
  0x17   : > { %v1593_v29 = vrot.slane %v622_v26, %v580_v27  ;;  %v581_v31 = vrot.slane %v573_v30, %v580_v27  ;;  %v577_v32 = vrot.slane %v573_v30, %v576_v25  ;;  %vm586_vm5 = vcmask 15360  }
  0x18   : > { %vm631_vm0 = vcmp.ne.s16.totalorder %v1591_v28, 0 }
  0x19   : > { %vm632_vm12 = vcmp.ne.s16.totalorder %v1593_v29, 0 }
  0x1a   : > { %521 = vrot.lane.b32.xlu0 %v513_v22, %s1489_s20  ;;  %531 = vrot.lane.b32.xlu1 %v514_v24, %s1488_s16 }
  0x1e   : > { %540 = vrot.lane.b32.xlu0 %v514_v24, %s1490_s19  ;;  %529 = vrot.lane.b32.xlu1 %v513_v22, %s1488_s16 }
  0x22   : > { %683 = vrot.lane.b32.xlu0 %v1591_v28, %s1491_s21  ;;  %685 = vrot.lane.b32.xlu1 %v1593_v29, %s1491_s21  ;;  %s1448_s21 = sshll.u32 %s2199_s18, 5 }
  0x26   : > { %662 = vrot.lane.b32.xlu0 %v581_v31, %s1492_s22  ;;  %660 = vrot.lane.b32.xlu1 %v577_v32, %s1492_s22 }
  0x2a   : > { %715 = vrot.lane.b32.xlu0 %v1591_v28, %s1493_s23  ;;  %717 = vrot.lane.b32.xlu1 %v1593_v29, %s1493_s23 }
  0x2e   : > { %700 = vrot.lane.b32.xlu0 %v577_v32, %s1494_s24  ;;  %702 = vrot.lane.b32.xlu1 %v581_v31, %s1494_s24  ;;  %s466_s24 = scalar_lea.vmem %s2195_s11, %s1448_s21 }
  0x84   : > { %v528_v33 = vpop.permute.xlu0 %527  ;;  %v520_v34 = vpop.permute.xlu1 %519 }
  0x85   : > { %v545_v40 = vsel %vm542_vm8, 0, %v520_v34 }
  0x88   : > { %v539_v35 = vpop.permute.xlu0 %538  ;;  %v526_v37 = vpop.permute.xlu1 %525 }
  0x89   : > { %v557_v36 = vsel %vm533_vm6, %v528_v33, %v539_v35  ;;  %v1604_v39 = vsel %vm533_vm6, %v526_v37, %v528_v33  ;;  %v1612_v41 = vsel %vm533_vm6, %v545_v40, %v526_v37 }
  0x8a   : > { %v1601_v38 = vsel %vm561_vm7, %v557_v36, 0  ;;  %637 = vrot.lane.b32.xlu0 %v1604_v39, %s1495_s25  ;;  %v1641_v48 = vrot.slane %v1604_v39, 4  ;;  %v1663_v53 = vrot.slane %v1612_v41, 4 }
  0x8b   : > { %639 = vrot.lane.b32.xlu1 %v1601_v38, %s1495_s25  ;;  %v1671_v56 = vrot.slane %v1601_v38, 4 }
  0x8c   : > { %v532_v42 = vpop.permute.xlu1 %531  ;;  %v522_v43 = vpop.permute.xlu0 %521 }
  0x8d   : > { %v547_v44 = vsel %vm542_vm8, 0, %v522_v43 }
  0x8e   : > { %595 = vrot.lane.b32.xlu0 %v1604_v39, %s1496_s26 }
  0x8f   : > { %593 = vrot.lane.b32.xlu1 %v1612_v41, %s1496_s26 }
  0x90   : > { %v530_v45 = vpop.permute.xlu1 %529  ;;  %v541_v49 = vpop.permute.xlu0 %540 }
  0x91   : > { %v1628_v46 = vsel %vm533_vm6, %v547_v44, %v530_v45  ;;  %v1635_v47 = vsel %vm533_vm6, %v530_v45, %v532_v42  ;;  %v560_v50 = vsel %vm533_vm6, %v532_v42, %v541_v49 }
  0x92   : > { %805 = vrot.lane.b32.xlu0 %v1604_v39, %s1489_s20  ;;  %v1652_v51 = vsel %vm561_vm7, %v560_v50, 0  ;;  %v736_v52 = vrot.slane %v1635_v47, 4  ;;  %v734_v55 = vrot.slane %v1628_v46, 4 }
  0x93   : > { %669 = vrot.lane.b32.xlu1 %v1601_v38, %s1496_s26  ;;  %v738_v58 = vrot.slane %v1652_v51, 4 }
  0x94   : > { %v737_v54 = vsel %vm730_vm9, %v1641_v48, %v736_v52  ;;  %v735_v57 = vsel %vm730_vm9, %v1663_v53, %v734_v55  ;;  %v1683_v60 = vpop.permute.xlu0 %683  ;;  %v1685_v61 = vpop.permute.xlu1 %685 }
  0x95   : > { %v739_v59 = vsel %vm730_vm9, %v1671_v56, %v738_v58  ;;  %v1729_v15 = vsel %vm2196_vm15, %v1683_v60, %v1685_v61  ;;  %vm691_vm1 = vcmp.ne.s16.totalorder %v1685_v61, 0  ;;  %vm689_vm6 = vcmp.ne.s16.totalorder %v1683_v60, 0 }
  0x96   : > { %635 = vrot.lane.b32.xlu0 %v1612_v41, %s1495_s25  ;;  %vm690_vm7 = vcmp.ne.s16.totalorder %v1729_v15, 0  ;;  %vm704_vm15 = vcmask 277504  }
  0x97   : > { %807 = vrot.lane.b32.xlu1 %v1601_v38, %s1489_s20 }
  0x98   : > { %v1687_v62 = vpop.permute.xlu0 %662  ;;  %v1689_v63 = vpop.permute.xlu1 %660 }
  0x99   : > { %vm666_vm2 = vcmp.ne.s16.totalorder %v1689_v63, 0  ;;  %v1766_v27 = vsel %vm664_vm4, %v1689_v63, %v1687_v62 }
  0x9a   : > { %803 = vrot.lane.b32.xlu0 %v1612_v41, %s1489_s20  ;;  %vm667_vm4 = vcmp.ne.s16.totalorder %v1766_v27, 0 }
  0x9b   : > { %597 = vrot.lane.b32.xlu1 %v1628_v46, %s1496_s26 }
  0x9c   : > { %v1691_v0 = vpop.permute.xlu0 %715  ;;  %v1693_v1 = vpop.permute.xlu1 %717 }
  0x9d   : > { %vm723_vm13 = vcmp.ne.s16.totalorder %v1693_v1, 0  ;;  %v1707_v8 = vsel %vm719_vm11, %v1691_v0, %v1693_v1  ;;  %vm721_vm3 = vcmp.ne.s16.totalorder %v1691_v0, 0  ;;  %vm668_vm11 = vcmp.ne.s16.totalorder %v1687_v62, 0 }
  0x9e   : > { %599 = vrot.lane.b32.xlu0 %v1635_v47, %s1496_s26  ;;  %vm722_vm14 = vcmp.ne.s16.totalorder %v1707_v8, 0 }
  0x9f   : > { %584 = vrot.lane.b32.xlu1 %v581_v31, %s1496_s26 }
  0xa0   : > { %v1695_v2 = vpop.permute.xlu0 %700  ;;  %v1697_v3 = vpop.permute.xlu1 %702 }
  0xa2   : > { %643 = vrot.lane.b32.xlu0 %v1635_v47, %s1495_s25 }
  0xa3   : > { %742 = vrot.lane.b32.xlu1 %v1641_v48, %s1497_s27 }
  0xa6   : > { %811 = vrot.lane.b32.xlu0 %v1635_v47, %s1489_s20 }
  0xa7   : > { %641 = vrot.lane.b32.xlu1 %v1628_v46, %s1495_s25 }
  0xaa   : > { %671 = vrot.lane.b32.xlu0 %v1652_v51, %s1496_s26 }
  0xab   : > { %645 = vrot.lane.b32.xlu1 %v1652_v51, %s1495_s25 }
  0xae   : > { %582 = vrot.lane.b32.xlu0 %v577_v32, %s1496_s26 }
  0xaf   : > { %813 = vrot.lane.b32.xlu1 %v1652_v51, %s1489_s20 }
  0xb2   : > { %740 = vrot.lane.b32.xlu0 %v1663_v53, %s1497_s27 }
  0xb3   : > { %883 = vrot.lane.b32.xlu1 %v737_v54, %s1498_s28 }
  0xb6   : > { %744 = vrot.lane.b32.xlu0 %v1671_v56, %s1497_s27 }
  0xb7   : > { %746 = vrot.lane.b32.xlu1 %v735_v57, %s1497_s27 }
  0xba   : > { %809 = vrot.lane.b32.xlu0 %v1628_v46, %s1489_s20 }
  0xbb   : > { %750 = vrot.lane.b32.xlu1 %v739_v59, %s1497_s27 }
  0xbe   : > { %748 = vrot.lane.b32.xlu0 %v737_v54, %s1497_s27 }
  0xbf   : > { %881 = vrot.lane.b32.xlu1 %v735_v57, %s1498_s28 }
  0xc2   : > { %885 = vrot.lane.b32.xlu0 %v739_v59, %s1498_s28 }
  0xfc   : > { %v638_v4 = vpop.permute.xlu0 %637 }
  0xfd   : > { %v640_v5 = vpop.permute.xlu1 %639 }
  0xfe   : > { %v726_v6 = vsel %vm723_vm13, %v1601_v38, %v640_v5  ;;  %v649_v7 = vsel %vm647_vm10, %v638_v4, %v640_v5  ;;  %v1746_v21 = vsel %vm691_vm1, %v1601_v38, %v640_v5  ;;  %v705_v5 = vsel %vm704_vm15, %v1695_v2, %v1697_v3 }
  0xff   : > { %902 = vrot.lane.b32.xlu1 %v726_v6, %s1499_s29  ;;  %v657_v9 = vsel %vm632_vm12, %v1604_v39, %v649_v7  ;;  %v725_v12 = vsel %vm722_vm14, %v1604_v39, %v649_v7  ;;  %v828_v25 = vrot.slane %v1746_v21, 4  ;;  %v1774_v31 = vsel %vm690_vm7, %v1604_v39, %v649_v7 }
 0x100   : > { %763 = vrot.lane.b32.xlu0 %v657_v9, %s1496_s26  ;;  %v1714_v10 = vpop.permute.xlu0 %595  ;;  %v827_v37 = vrot.slane %v1774_v31, 4  ;;  %vm707_vm15 = vcmp.ne.s16.totalorder %v705_v5, 0 }
 0x101   : > { %v1716_v11 = vpop.permute.xlu1 %593 }
 0x102   : > { %v1752_v22 = vsel %vm666_vm2, %v1612_v41, %v1716_v11  ;;  %v1789_v33 = vsel %vm586_vm5, %v1716_v11, %v1714_v10 }
 0x103   : > { %v777_v26 = vrot.slane %v1752_v22, 4  ;;  %v1806_v42 = vsel %vm667_vm4, %v1604_v39, %v1789_v33 }
 0x104   : > { %900 = vrot.lane.b32.xlu0 %v725_v12, %s1499_s29  ;;  %v1723_v13 = vpop.permute.xlu0 %805  ;;  %v778_v45 = vrot.slane %v1806_v42, 4 }
 0x105   : > { %v670_v14 = vpop.permute.xlu1 %669 }
 0x106   : > { %v1778_v32 = vsel %vm586_vm5, %v1714_v10, %v670_v14 }
 0x107   : > { %v679_v40 = vsel %vm668_vm11, %v1601_v38, %v1778_v32 }
 0x108   : > { %v636_v16 = vpop.permute.xlu0 %635  ;;  %v779_v49 = vrot.slane %v679_v40, 4 }
 0x109   : > { %v1731_v17 = vpop.permute.xlu1 %807  ;;  %v648_v18 = vsel %vm647_vm10, %v636_v16, %v638_v4 }
 0x10a   : > { %v656_v19 = vsel %vm631_vm0, %v1612_v41, %v648_v18  ;;  %v724_v20 = vsel %vm721_vm3, %v1612_v41, %v648_v18  ;;  %v694_v30 = vsel %vm689_vm6, %v1612_v41, %v648_v18 }
 0x10b   : > { %761 = vrot.lane.b32.xlu1 %v656_v19, %s1496_s26  ;;  %898 = vrot.lane.b32.xlu0 %v724_v20, %s1499_s29  ;;  %v826_v36 = vrot.slane %v694_v30, 4 }
 0x10c   : > { %v1756_v23 = vpop.permute.xlu0 %803 }
 0x10d   : > { %v1758_v24 = vpop.permute.xlu1 %597 }
 0x10f   : > { %839 = vrot.lane.b32.xlu1 %v828_v25, %s1500_s30  ;;  %786 = vrot.lane.b32.xlu0 %v777_v26, %s1501_s12 }
 0x110   : > { %v1791_v34 = vpop.permute.xlu0 %599 }
 0x111   : > { %v1793_v35 = vpop.permute.xlu1 %584  ;;  %v1849_v12 = vsel %vm586_vm5, %v1758_v24, %v1791_v34 }
 0x112   : > { %v713_v20 = vsel %vm707_vm15, %v1635_v47, %v1849_v12  ;;  %v681_v63 = vsel %vm667_vm4, %v1635_v47, %v1849_v12 }
 0x113   : > { %835 = vrot.lane.b32.xlu1 %v826_v36, %s1500_s30  ;;  %837 = vrot.lane.b32.xlu0 %v827_v37, %s1500_s30 }
 0x114   : > { %v644_v43 = vpop.permute.xlu0 %643 }
 0x115   : > { %v1812_v44 = vpop.permute.xlu1 %742 }
 0x117   : > { %788 = vrot.lane.b32.xlu0 %v778_v45, %s1501_s12  ;;  %790 = vrot.lane.b32.xlu1 %v779_v49, %s1501_s12 }
 0x118   : > { %v812_v50 = vpop.permute.xlu0 %811 }
 0x119   : > { %v642_v52 = vpop.permute.xlu1 %641 }
 0x11a   : > { %v650_v54 = vsel %vm647_vm10, %v642_v52, %v644_v43 }
 0x11b   : > { %v697_v55 = vsel %vm689_vm6, %v1628_v46, %v650_v54  ;;  %v658_v57 = vsel %vm631_vm0, %v1628_v46, %v650_v54  ;;  %vm590_vm6 = vcmp.ne.s16.totalorder %v1793_v35, 0 }
 0x11c   : > { %765 = vrot.lane.b32.xlu0 %v658_v57, %s1496_s26  ;;  %v829_v58 = vrot.slane %v697_v55, 4  ;;  %v672_v59 = vpop.permute.xlu0 %671  ;;  %v680_v57 = vsel %vm666_vm2, %v1628_v46, %v1758_v24  ;;  %vm706_vm2 = vcmp.ne.s16.totalorder %v1695_v2, 0 }
 0x11d   : > { %v646_v4 = vpop.permute.xlu1 %645  ;;  %v674_v6 = vsel %vm586_vm5, %v1791_v34, %v672_v59  ;;  %v712_v27 = vsel %vm706_vm2, %v1628_v46, %v1758_v24  ;;  %v709_v42 = vsel %vm706_vm2, %v1612_v41, %v1716_v11 }
 0x11e   : > { %v1832_v7 = vsel %vm647_vm10, %v644_v43, %v646_v4  ;;  %v729_v60 = vsel %vm723_vm13, %v1652_v51, %v646_v4  ;;  %v682_v9 = vsel %vm668_vm11, %v1652_v51, %v674_v6  ;;  %vm815_vm13 = vcmask 924672  }
 0x11f   : > { %908 = vrot.lane.b32.xlu1 %v729_v60, %s1499_s29  ;;  %v728_v28 = vsel %vm722_vm14, %v1635_v47, %v1832_v7  ;;  %v1856_v8 = vsel %vm730_vm9, %v826_v36, %v829_v58  ;;  %v659_v18 = vsel %vm632_vm12, %v1635_v47, %v1832_v7  ;;  %v784_v19 = vrot.slane %v682_v9, 4 }
 0x120   : > { %906 = vrot.lane.b32.xlu0 %v728_v28, %s1499_s29  ;;  %v1851_v1 = vpop.permute.xlu0 %582  ;;  %v727_v43 = vsel %vm721_vm3, %v1628_v46, %v650_v54  ;;  %vm708_vm12 = vcmp.ne.s16.totalorder %v1697_v3, 0  ;;  %vm887_vm3 = vcmask 793600   ;;  %v816_v3 = vsel %vm815_vm13, %v1756_v23, %v1723_v13 }
 0x121   : > { %v1853_v14 = vpop.permute.xlu1 %813  ;;  %v1861_v62 = vsel %vm586_vm5, %v1851_v1, %v1793_v35  ;;  %vm588_vm14 = vcmp.ne.s16.totalorder %v1851_v1, 0  ;;  %v785_v55 = vsel %vm730_vm9, %v779_v49, %v784_v19  ;;  %v714_v54 = vsel %vm708_vm12, %v1652_v51, %v674_v6 }
 0x122   : > { %v1866_v16 = vsel %vm815_vm13, %v812_v50, %v1853_v14  ;;  %vm589_vm0 = vcmp.ne.s16.totalorder %v1861_v62, 0  ;;  %v612_v40 = vsel %vm588_vm14, %v1628_v46, %v1758_v24  ;;  %v780_v49 = vrot.slane %v680_v57, 4 }
 0x123   : > { %767 = vrot.lane.b32.xlu1 %v659_v18, %s1496_s26  ;;  %v1882_v30 = vsel %vm589_vm0, %v1604_v39, %v1789_v33  ;;  %v782_v18 = vrot.slane %v681_v63, 4  ;;  %v699_v46 = vsel %vm691_vm1, %v1652_v51, %v646_v4  ;;  %vm798_vm1 = vcmask 916480  }
 0x124   : > { %866 = vrot.lane.b32.xlu0 %v713_v20, %s1502_s13  ;;  %v741_v29 = vpop.permute.xlu0 %740  ;;  %v781_v6 = vsel %vm730_vm9, %v777_v26, %v780_v49  ;;  %v710_v26 = vsel %vm707_vm15, %v1604_v39, %v1789_v33  ;;  %v833_v24 = vrot.slane %v699_v46, 4  ;;  %v698_v33 = vsel %vm690_vm7, %v1635_v47, %v1832_v7 }
 0x125   : > { %v1884_v36 = vpop.permute.xlu1 %883  ;;  %v1894_v52 = vsel %vm730_vm9, %v612_v40, %v741_v29  ;;  %v783_v22 = vsel %vm730_vm9, %v778_v45, %v782_v18  ;;  %v753_v21 = vsel %vm542_vm8, %v741_v29, %v1812_v44  ;;  %vm870_vm7 = vcmask 785408  }
 0x126   : > { %v834_v39 = vsel %vm730_vm9, %v828_v25, %v833_v24  ;;  %v613_v25 = vsel %vm589_vm0, %v1635_v47, %v1849_v12  ;;  %vm1114_vm11 = vcmask 719872  }
 0x127   : > { %904 = vrot.lane.b32.xlu1 %v727_v43, %s1499_s29 }
 0x128   : > { %796 = vrot.lane.b32.xlu0 %v785_v55, %s1501_s12  ;;  %v745_v58 = vpop.permute.xlu0 %744 }
 0x129   : > { %v747_v59 = vpop.permute.xlu1 %746  ;;  %v1906_v0 = vsel %vm542_vm8, %v1812_v44, %v745_v58 }
 0x12b   : > { %868 = vrot.lane.b32.xlu1 %v714_v54, %s1502_s13 }
 0x12c   : > { %877 = vrot.lane.b32.xlu0 %v1641_v48, %s1498_s28  ;;  %v810_v60 = vpop.permute.xlu0 %809 }
 0x12d   : > { %v751_v28 = vpop.permute.xlu1 %750  ;;  %v1920_v9 = vsel %vm815_vm13, %v810_v60, %v812_v50 }
 0x12f   : > { %792 = vrot.lane.b32.xlu1 %v781_v6, %s1501_s12 }
 0x130   : > { %864 = vrot.lane.b32.xlu0 %v712_v27, %s1502_s13  ;;  %v749_v61 = vpop.permute.xlu0 %748 }
 0x131   : > { %v882_v48 = vpop.permute.xlu1 %881  ;;  %v756_v2 = vsel %vm542_vm8, %v749_v61, %v751_v28 }
 0x132   : > { %v1933_v50 = vsel %vm887_vm3, %v882_v48, %v1884_v36  ;;  %v614_v48 = vsel %vm590_vm6, %v1652_v51, %v1791_v34 }
 0x133   : > { %794 = vrot.lane.b32.xlu1 %v783_v22, %s1501_s12  ;;  %v924_v22 = vsel %vm730_vm9, %v614_v48, %v1906_v0 }
 0x134   : > { %860 = vrot.lane.b32.xlu0 %v710_v26, %s1502_s13  ;;  %v1997_v44 = vpop.permute.xlu0 %885 }
 0x137   : > { %879 = vrot.lane.b32.xlu1 %v1671_v56, %s1498_s28  ;;  %v711_v56 = vsel %vm708_vm12, %v1601_v38, %v1778_v32  ;;  %v755_v32 = vsel %vm542_vm8, %v747_v59, %v749_v61  ;;  %vm847_vm8 = vcmask 932864  }
 0x138   : > { %858 = vrot.lane.b32.xlu0 %v709_v42, %s1502_s13  ;;  %v609_v42 = vsel %vm588_vm14, %v1612_v41, %v1716_v11  ;;  %v611_v11 = vsel %vm590_vm6, %v1601_v38, %v1714_v10 }
 0x13b   : > { %875 = vrot.lane.b32.xlu1 %v1663_v53, %s1498_s28  ;;  %v817_v53 = vsel %vm815_vm13, %v1723_v13, %v1731_v17  ;;  %v831_v13 = vrot.slane %v698_v33, 4  ;;  %vm2197_vm13 = vcmask 130048  }
 0x13c   : > { %845 = vrot.lane.b32.xlu0 %v834_v39, %s1500_s30 }
 0x13d   : > { %v832_v23 = vsel %vm730_vm9, %v827_v37, %v831_v13 }
 0x13f   : > { %862 = vrot.lane.b32.xlu1 %v711_v56, %s1502_s13 }
 0x140   : > { %1016 = vrot.lane.b32.xlu0 %v1731_v17, %s1495_s25  ;;  %v921_v17 = vsel %vm730_vm9, %v613_v25, %v753_v21 }
 0x143   : > { %1014 = vrot.lane.b32.xlu1 %v817_v53, %s1495_s25 }
 0x144   : > { %992 = vrot.lane.b32.xlu0 %v756_v2, %s1495_s25 }
 0x147   : > { %1012 = vrot.lane.b32.xlu1 %v816_v3, %s1495_s25 }
 0x148   : > { %984 = vrot.lane.b32.xlu0 %v921_v17, %s1495_s25 }
 0x14b   : > { %990 = vrot.lane.b32.xlu1 %v755_v32, %s1495_s25 }
 0x14f   : > { %988 = vrot.lane.b32.xlu1 %v747_v59, %s1495_s25 }
 0x153   : > { %843 = vrot.lane.b32.xlu1 %v832_v23, %s1500_s30 }
 0x157   : > { %841 = vrot.lane.b32.xlu1 %v1856_v8, %s1500_s30 }
 0x171   : > { %v2000_v47 = vpop.permute.xlu1 %902 }
 0x172   : > { %v764_v45 = vpop.permute.xlu0 %763 }
 0x173   : > { %998 = vrot.lane.b32.xlu1 %v764_v45, %s1495_s25 }
 0x176   : > { %v2002_v15 = vpop.permute.xlu0 %900 }
 0x17d   : > { %v2004_v4 = vpop.permute.xlu0 %898  ;;  %v762_v5 = vpop.permute.xlu1 %761 }
 0x17e   : > { %994 = vrot.lane.b32.xlu0 %v762_v5, %s1495_s25  ;;  %v769_v7 = vsel %vm586_vm5, %v762_v5, %v764_v45  ;;  %v891_v45 = vsel %vm887_vm3, %v1884_v36, %v1997_v44 }
 0x181   : > { %v787_v31 = vpop.permute.xlu0 %786  ;;  %v840_v37 = vpop.permute.xlu1 %839 }
 0x182   : > { %996 = vrot.lane.b32.xlu0 %v769_v7, %s1495_s25  ;;  %v942_v12 = vsel %vm730_vm9, %v1853_v14, %v840_v37 }
 0x183   : > { %1022 = vrot.lane.b32.xlu1 %v942_v12, %s1495_s25  ;;  %v1183_v12 = vld [vmem:[%s2191_s7] sm:$0xff] }
 0x185   : > { %v838_v8 = vpop.permute.xlu0 %837  ;;  %v836_v62 = vpop.permute.xlu1 %835 }
 0x186   : > { %v849_v19 = vsel %vm847_vm8, %v838_v8, %v840_v37  ;;  %v848_v29 = vsel %vm847_vm8, %v836_v62, %v838_v8  ;;  %v1477_v37 = vld [vmem:[%s2189_s5 + $0x4] ss:$8 sps:$4 sm:$0xff]  }
 0x187   : > { %v939_v20 = vsel %vm730_vm9, %v1866_v16, %v849_v19  ;;  %v936_v43 = vsel %vm730_vm9, %v1920_v9, %v848_v29  ;;  %1438 = vmatprep.mubr.msk.bf16.mxu0 %vm1114_vm11, %v1477_v37  ;;  %v1267_v62 = vld [vmem:[%s2193_s9] sm:$0xff]  ;;  %v1184_v29 = vld [vmem:[%s2191_s7 + $0x8] sm:$0xff] }
 0x188   : > { %1020 = vrot.lane.b32.xlu0 %v939_v20, %s1495_s25  ;;  %v1167_v19 = vld [vmem:[%s2190_s6] sm:$0xff] }
 0x189   : > { %v789_v40 = vpop.permute.xlu0 %788  ;;  %v791_v14 = vpop.permute.xlu1 %790  ;;  %v1283_v20 = vld [vmem:[%s2194_s10] sm:$0xff] }
 0x18a   : > { %v799_v55 = vsel %vm798_vm1, %v787_v31, %v789_v40  ;;  %v800_v49 = vsel %vm798_vm1, %v789_v40, %v791_v14  ;;  %v1268_v40 = vld [vmem:[%s2193_s9 + $0x8] sm:$0xff] }
 0x18c   : > { %1018 = vrot.lane.b32.xlu0 %v936_v43, %s1495_s25 }
 0x18e   : > { %v766_v57 = vpop.permute.xlu0 %765 }
 0x18f   : > { %v927_v58 = vsel %vm730_vm9, %v766_v57, %v799_v55 }
 0x190   : > { %1000 = vrot.lane.b32.xlu1 %v927_v58, %s1495_s25 }
 0x191   : > { %v909_v16 = vpop.permute.xlu1 %908 }
 0x192   : > { %v907_v59 = vpop.permute.xlu0 %906 }
 0x195   : > { %v768_v54 = vpop.permute.xlu1 %767 }
 0x196   : > { %v770_v63 = vsel %vm586_vm5, %v766_v57, %v768_v54  ;;  %v867_v60 = vpop.permute.xlu0 %866  ;;  %v933_v28 = vsel %vm730_vm9, %v768_v54, %v791_v14  ;;  %vm910_vm5 = vcmask 801792   ;;  %v1284_v14 = vld [vmem:[%s2194_s10 + $0x8] sm:$0xff] }
 0x197   : > { %1004 = vrot.lane.b32.xlu0 %v933_v28, %s1495_s25  ;;  %v930_v9 = vsel %vm730_vm9, %v770_v63, %v800_v49  ;;  %v914_v0 = vsel %vm910_vm5, %v907_v59, %v909_v16  ;;  %v912_v56 = vsel %vm910_vm5, %v2002_v15, %v2000_v47  ;;  %v911_v1 = vsel %vm910_vm5, %v2004_v4, %v2002_v15 }
 0x198   : > { %1002 = vrot.lane.b32.xlu1 %v930_v9, %s1495_s25 }
 0x199   : > { %v905_v6 = vpop.permute.xlu1 %904 }
 0x19a   : > { %v797_v18 = vpop.permute.xlu0 %796 }
 0x19c   : > { %1010 = vrot.lane.b32.xlu1 %v797_v18, %s1495_s25 }
 0x19d   : > { %v869_v27 = vpop.permute.xlu1 %868 }
 0x19e   : > { %v874_v35 = vsel %vm870_vm7, %v867_v60, %v869_v27 }
 0x1a0   : > { %986 = vrot.lane.b32.xlu1 %v924_v22, %s1495_s25 }
 0x1a1   : > { %v793_v26 = vpop.permute.xlu1 %792 }
 0x1a4   : > { %978 = vrot.lane.b32.xlu1 %v1882_v30, %s1495_s25  ;;  %v878_v30 = vpop.permute.xlu0 %877 }
 0x1a5   : > { %v795_v46 = vpop.permute.xlu1 %794 }
 0x1a6   : > { %v802_v24 = vsel %vm798_vm1, %v795_v46, %v797_v18  ;;  %v801_v34 = vsel %vm798_vm1, %v793_v26, %v795_v46 }
 0x1a7   : > { %1008 = vrot.lane.b32.xlu0 %v802_v24, %s1495_s25 }
 0x1a8   : > { %976 = vrot.lane.b32.xlu1 %v609_v42, %s1495_s25  ;;  %v865_v61 = vpop.permute.xlu0 %864 }
 0x1a9   : > { %v880_v51 = vpop.permute.xlu1 %879  ;;  %v873_v32 = vsel %vm870_vm7, %v865_v61, %v867_v60 }
 0x1aa   : > { %v889_v2 = vsel %vm887_vm3, %v878_v30, %v880_v51  ;;  %v951_v36 = vsel %vm730_vm9, %v869_v27, %v880_v51 }
 0x1ab   : > { %1006 = vrot.lane.b32.xlu0 %v801_v34, %s1495_s25  ;;  %v948_v3 = vsel %vm730_vm9, %v874_v35, %v889_v2 }
 0x1ac   : > { %1056 = vrot.lane.b32.xlu1 %v914_v0, %s1495_s25  ;;  %v861_v38 = vpop.permute.xlu0 %860 }
 0x1ad   : > { %v876_v39 = vpop.permute.xlu1 %875 }
 0x1ae   : > { %v888_v25 = vsel %vm887_vm3, %v876_v39, %v878_v30 }
 0x1af   : > { %982 = vrot.lane.b32.xlu0 %v1894_v52, %s1495_s25  ;;  %v913_v52 = vsel %vm910_vm5, %v905_v6, %v907_v59  ;;  %v945_v13 = vsel %vm730_vm9, %v873_v32, %v888_v25 }
 0x1b0   : > { %1050 = vrot.lane.b32.xlu1 %v912_v56, %s1495_s25  ;;  %v859_v33 = vpop.permute.xlu0 %858 }
 0x1b1   : > { %v863_v41 = vpop.permute.xlu1 %862  ;;  %v871_v8 = vsel %vm870_vm7, %v859_v33, %v861_v38 }
 0x1b2   : > { %v872_v7 = vsel %vm870_vm7, %v861_v38, %v863_v41 }
 0x1b3   : > { %980 = vrot.lane.b32.xlu0 %v611_v11, %s1495_s25 }
 0x1b4   : > { %1048 = vrot.lane.b32.xlu1 %v911_v1, %s1495_s25  ;;  %v846_v4 = vpop.permute.xlu0 %845 }
 0x1b5   : > { %v2066_v53 = vpop.permute.xlu1 %1014 }
 0x1b7   : > { %1054 = vrot.lane.b32.xlu0 %v913_v52, %s1495_s25 }
 0x1b8   : > { %1046 = vrot.lane.b32.xlu1 %v1997_v44, %s1495_s25  ;;  %v1017_v43 = vpop.permute.xlu0 %1016 }
 0x1b9   : > { %v1013_v10 = vpop.permute.xlu1 %1012  ;;  %v1073_v9 = vsel %vm647_vm10, %v2066_v53, %v1017_v43 }
 0x1ba   : > { %v2076_v21 = vsel %vm647_vm10, %v1013_v10, %v2066_v53 }
 0x1bb   : > { %1058 = vrot.lane.b32.xlu0 %v909_v16, %s1495_s25 }
 0x1bc   : > { %1038 = vrot.lane.b32.xlu1 %v948_v3, %s1495_s25  ;;  %v993_v55 = vpop.permute.xlu0 %992 }
 0x1bd   : > { %v2082_v17 = vpop.permute.xlu1 %990 }
 0x1be   : > { %v1065_v52 = vsel %vm647_vm10, %v2082_v17, %v993_v55  ;;  %v1475_v55 = vld [vmem:[%s2189_s5] ss:$8 sps:$4 sm:$0xff]  }
 0x1bf   : > { %1052 = vrot.lane.b32.xlu0 %v2000_v47, %s1495_s25 }
 0x1c0   : > { %1036 = vrot.lane.b32.xlu1 %v945_v13, %s1495_s25  ;;  %v985_v57 = vpop.permute.xlu0 %984 }
 0x1c1   : > { %v989_v23 = vpop.permute.xlu1 %988 }
 0x1c2   : > { %v2094_v15 = vsel %vm647_vm10, %v989_v23, %v2082_v17 }
 0x1c3   : > { %1044 = vrot.lane.b32.xlu0 %v891_v45, %s1495_s25 }
 0x1c4   : > { %1034 = vrot.lane.b32.xlu1 %v863_v41, %s1495_s25 }
 0x1c5   : > { %v844_v5 = vpop.permute.xlu1 %843 }
 0x1c6   : > { %v851_v47 = vsel %vm847_vm8, %v844_v5, %v846_v4 }
 0x1c7   : > { %1042 = vrot.lane.b32.xlu0 %v1933_v50, %s1495_s25  ;;  %v1168_v50 = vld [vmem:[%s2190_s6 + $0x8] sm:$0xff] }
 0x1c8   : > { %1026 = vrot.lane.b32.xlu1 %v851_v47, %s1495_s25 }
 0x1c9   : > { %v842_v31 = vpop.permute.xlu1 %841 }
 0x1ca   : > { %v850_v44 = vsel %vm847_vm8, %v842_v31, %v844_v5 }
 0x1cb   : > { %1040 = vrot.lane.b32.xlu0 %v951_v36, %s1495_s25 }
 0x1cc   : > { %1024 = vrot.lane.b32.xlu1 %v850_v44, %s1495_s25 }
 0x1cf   : > { %1032 = vrot.lane.b32.xlu0 %v872_v7, %s1495_s25 }
 0x1d0   : > { %1176 = vperm.xlu1 %1474, %v1168_v50  }
 0x1d3   : > { %1030 = vrot.lane.b32.xlu0 %v871_v8, %s1495_s25 }
 0x1d4   : > { %1187 = vperm.xlu1 %1474, %v1183_v12  }
 0x1d7   : > { %1028 = vrot.lane.b32.xlu0 %v846_v4, %s1495_s25 }
 0x1d8   : > { %1271 = vperm.xlu1 %1474, %v1267_v62  }
 0x1db   : > { %1171 = vperm.xlu0 %1473, %v1167_v19  }
 0x1dc   : > { %1287 = vperm.xlu1 %1474, %v1283_v20  }
 0x1df   : > { %1192 = vperm.xlu0 %1473, %v1184_v29  }
 0x1e3   : > { %1276 = vperm.xlu0 %1473, %v1268_v40  }
 0x1e5   : > { %v999_v16 = vpop.permute.xlu1 %998 }
 0x1e7   : > { %1292 = vperm.xlu0 %1473, %v1284_v14  }
 0x1f0   : > { %v995_v58 = vpop.permute.xlu0 %994 }
 0x1f4   : > { %v997_v59 = vpop.permute.xlu0 %996 }
 0x1f5   : > { %v1023_v54 = vpop.permute.xlu1 %1022  ;;  %v1067_v11 = vsel %vm647_vm10, %v997_v59, %v999_v16  ;;  %v1066_v53 = vsel %vm647_vm10, %v995_v58, %v997_v59 }
 0x1fa   : > { %v1021_v49 = vpop.permute.xlu0 %1020 }
 0x1fb   : > { %v1075_v63 = vsel %vm647_vm10, %v1021_v49, %v1023_v54 }
 0x1fc   : > { %1124 = vmatprep.subr.bf16.mxu0 %v1075_v63 }
 0x1fe   : > { %v1019_v60 = vpop.permute.xlu0 %1018 }
 0x1ff   : > { %v1074_v28 = vsel %vm647_vm10, %v1019_v60, %v1021_v49 }
 0x200   : > { %1125 = vmatpush1.bf16.msra.mxu0 %v1074_v28 }
 0x201   : > { %1126 = vmatprep.subr.bf16.mxu0 %v1073_v9 }
 0x202   : > { %v1001_v6 = vpop.permute.xlu1 %1000 }
 0x204   : > { %1127 = vmatpush1.bf16.msra.mxu0 %v2076_v21 }
 0x209   : > { %v1005_v22 = vpop.permute.xlu0 %1004 }
 0x20a   : > { %v1003_v18 = vpop.permute.xlu1 %1002 }
 0x20b   : > { %v1069_v30 = vsel %vm647_vm10, %v1003_v18, %v1005_v22  ;;  %v1068_v41 = vsel %vm647_vm10, %v1001_v6, %v1003_v18 }
 0x20e   : > { %v1011_v27 = vpop.permute.xlu1 %1010 }
 0x212   : > { %v987_v48 = vpop.permute.xlu1 %986 }
 0x213   : > { %v1063_v10 = vsel %vm647_vm10, %v985_v57, %v987_v48 }
 0x216   : > { %v979_v26 = vpop.permute.xlu1 %978 }
 0x219   : > { %v1009_v46 = vpop.permute.xlu0 %1008 }
 0x21a   : > { %v977_v24 = vpop.permute.xlu1 %976  ;;  %v1071_v42 = vsel %vm647_vm10, %v1009_v46, %v1011_v27 }
 0x21b   : > { %1128 = vmatprep.subr.bf16.mxu0 %v1071_v42  ;;  %v1060_v33 = vsel %vm647_vm10, %v977_v24, %v979_v26 }
 0x21d   : > { %v1007_v51 = vpop.permute.xlu0 %1006 }
 0x21e   : > { %v1057_v34 = vpop.permute.xlu1 %1056  ;;  %v1070_v0 = vsel %vm647_vm10, %v1007_v51, %v1009_v46 }
 0x21f   : > { %1129 = vmatpush1.bf16.msra.mxu0 %v1070_v0 }
 0x220   : > { %1130 = vmatprep.subr.bf16.mxu0 %v1069_v30 }
 0x221   : > { %v983_v39 = vpop.permute.xlu0 %982 }
 0x222   : > { %v1051_v56 = vpop.permute.xlu1 %1050  ;;  %v1062_v21 = vsel %vm647_vm10, %v983_v39, %v985_v57 }
 0x223   : > { %1131 = vmatpush1.bf16.msra.mxu0 %v1068_v41 }
 0x224   : > { %1132 = vmatprep.subr.bf16.mxu0 %v1067_v11  ;;  %v1478_v11 = vld [vmem:[%s2192_s8] sm:$0xff]  }
 0x225   : > { %v981_v1 = vpop.permute.xlu0 %980 }
 0x226   : > { %v1049_v61 = vpop.permute.xlu1 %1048  ;;  %v1061_v3 = vsel %vm647_vm10, %v979_v26, %v981_v1 }
 0x227   : > { %1133 = vmatpush1.bf16.msra.mxu0 %v1066_v53  ;;  %v1084_v47 = vsel %vm647_vm10, %v1049_v61, %v1051_v56 }
 0x228   : > { %1134 = vmatprep.subr.bf16.mxu0 %v1065_v52 }
 0x229   : > { %v1055_v2 = vpop.permute.xlu0 %1054 }
 0x22a   : > { %v1047_v38 = vpop.permute.xlu1 %1046  ;;  %v1086_v17 = vsel %vm647_vm10, %v1055_v2, %v1057_v34 }
 0x22b   : > { %1135 = vmatpush1.bf16.msra.mxu0 %v2094_v15  ;;  %v1119_v15 = vsel %vm730_vm9, %v1086_v17, 0 }
 0x22c   : > { %1136 = vmatprep.subr.bf16.mxu0 %v1063_v10 }
 0x22d   : > { %v1059_v35 = vpop.permute.xlu0 %1058 }
 0x22e   : > { %v1039_v25 = vpop.permute.xlu1 %1038  ;;  %v1087_v13 = vsel %vm647_vm10, %v1057_v34, %v1059_v35 }
 0x22f   : > { %1137 = vmatpush1.bf16.msra.mxu0 %v1062_v21 }
 0x230   : > { %1138 = vmatprep.subr.bf16.mxu0 %v1061_v3 }
 0x231   : > { %v1053_v32 = vpop.permute.xlu0 %1052 }
 0x232   : > { %v1037_v45 = vpop.permute.xlu1 %1036  ;;  %v1085_v4 = vsel %vm647_vm10, %v1051_v56, %v1053_v32 }
 0x233   : > { %1139 = vmatpush1.bf16.msra.mxu0 %v1060_v33  ;;  %v1080_v8 = vsel %vm647_vm10, %v1037_v45, %v1039_v25 }
 0x234   : > { %1437 = vmatprep.subr.msk.bf16.mxu0 %vm730_vm9, %v1087_v13 }
 0x235   : > { %v1045_v23 = vpop.permute.xlu0 %1044 }
 0x236   : > { %v1083_v31 = vsel %vm647_vm10, %v1045_v23, %v1047_v38  ;;  %v1035_v36 = vpop.permute.xlu1 %1034 }
 0x237   : > { %1145 = vmatpush2.bf16.msra.mxu0 %v1119_v15 }
 0x238   : > { %1146 = vmatprep.subr.bf16.mxu0 %v1085_v4 }
 0x239   : > { %v1043_v5 = vpop.permute.xlu0 %1042 }
 0x23a   : > { %v1082_v37 = vsel %vm647_vm10, %v1043_v5, %v1045_v23  ;;  %v1027_v12 = vpop.permute.xlu1 %1026 }
 0x23b   : > { %1147 = vmatpush2.bf16.msra.mxu0 %v1084_v47 }
 0x23c   : > { %1148 = vmatprep.subr.bf16.mxu0 %v1083_v31 }
 0x23d   : > { %v1041_v44 = vpop.permute.xlu0 %1040 }
 0x23e   : > { %v1081_v7 = vsel %vm647_vm10, %v1039_v25, %v1041_v44  ;;  %v1025_v29 = vpop.permute.xlu1 %1024 }
 0x23f   : > { %1149 = vmatpush2.bf16.msra.mxu0 %v1082_v37  ;;  %v1076_v14 = vsel %vm647_vm10, %v1025_v29, %v1027_v12 }
 0x240   : > { %1150 = vmatprep.subr.bf16.mxu0 %v1081_v7 }
 0x241   : > { %v1033_v50 = vpop.permute.xlu0 %1032 }
 0x242   : > { %v1079_v62 = vsel %vm647_vm10, %v1033_v50, %v1035_v36 }
 0x243   : > { %1151 = vmatpush2.bf16.msra.mxu0 %v1080_v8 }
 0x244   : > { %1152 = vmatprep.subr.bf16.mxu0 %v1079_v62 }
 0x245   : > { %v1031_v19 = vpop.permute.xlu0 %1030 }
 0x246   : > { %v1078_v20 = vsel %vm647_vm10, %v1031_v19, %v1033_v50 }
 0x247   : > { %1153 = vmatpush2.bf16.msra.mxu0 %v1078_v20 }
 0x249   : > { %v1029_v40 = vpop.permute.xlu0 %1028 }
 0x24a   : > { %v1077_v43 = vsel %vm647_vm10, %v1027_v12, %v1029_v40 }
 0x24b   : > { %1154 = vmatprep.subr.bf16.mxu0 %v1077_v43  ;;  %v1177_v57 = vpop.permute.xlu1 %1176 }
 0x24c   : > { %1155 = vmatpush2.bf16.msra.mxu0 %v1076_v14 }
 0x24f   : > { %1157 = vmatmul.mubr.bf16.vlgmr.msra.gmra.mxu0 %v1475_v55  ;;  %v1188_v63 = vpop.permute.xlu1 %1187 }
 0x253   : > { %v1272_v1 = vpop.permute.xlu1 %1271 }
 0x256   : > { %v1172_v58 = vpop.permute.xlu0 %1171 }
 0x257   : > { %v1288_v2 = vpop.permute.xlu1 %1287 }
 0x25a   : > { %v1193_v6 = vpop.permute.xlu0 %1192 }
 0x25e   : > { %v1277_v61 = vpop.permute.xlu0 %1276 }
 0x262   : > { %v1293_v33 = vpop.permute.xlu0 %1292 }
 0x30f   : > { %v1158_v16 = vpop.f32.mrf.mxu0 }
 0x310   : > { %v1179_v59 = vmul.f32 %v1172_v58, %v1158_v16 }
 0x311   : > { %v1160_v54 = vpop.f32.mrf.mxu0 }
 0x312   : > { %v1180_v49 = vmul.f32 %v1172_v58, %v1160_v54  ;;  %v1195_v18 = vadd.f32 %v1188_v63, %v1179_v59 }
 0x313   : > { %v1162_v60 = vpop.f32.mrf.mxu0 }
 0x314   : > { %v1196_v28 = vadd.f32 %v1188_v63, %v1180_v49  ;;  %v1181_v9 = vmul.f32 %v1177_v57, %v1162_v60  ;;  %v1203_v42 = vmul.f32 0.2, %v1195_v18  ;;  %vm1199_vm15 = vcmp.ge.f32.partialorder %v1195_v18, 0.0 }
 0x315   : > { %v1164_v27 = vpop.f32.mrf.mxu0 }
 0x316   : > { %v1197_v48 = vadd.f32 %v1193_v6, %v1181_v9  ;;  %v1182_v22 = vmul.f32 %v1177_v57, %v1164_v27  ;;  %v1204_v46 = vmul.f32 0.2, %v1196_v28  ;;  %vm1200_vm10 = vcmp.ge.f32.partialorder %v1196_v28, 0.0 }
 0x317   : > { %v1207_v56 = vsel %vm1199_vm15, %v1195_v18, %v1203_v42 }
 0x318   : > { %v1198_v26 = vadd.f32 %v1193_v6, %v1182_v22  ;;  %vm1201_vm9 = vcmp.ge.f32.partialorder %v1197_v48, 0.0  ;;  %v1205_v24 = vmul.f32 0.2, %v1197_v48  ;;  %v1208_v0 = vsel %vm1200_vm10, %v1196_v28, %v1204_v46 }
 0x31a   : > { %vm1202_vm4 = vcmp.ge.f32.partialorder %v1198_v26, 0.0  ;;  %v1206_v51 = vmul.f32 0.2, %v1198_v26  ;;  %v1209_v34 = vsel %vm1201_vm9, %v1197_v48, %v1205_v24 }
 0x31b   : > { %v1213_v41 = vpack.c.bf16 %v1209_v34, %v1207_v56 }
 0x31c   : > { %v1210_v30 = vsel %vm1202_vm4, %v1198_v26, %v1206_v51 }
 0x31d   : > { %v1214_v39 = vpack.c.bf16 %v1210_v30, %v1208_v0 }
 0x31f   : > { %1238 = vmatprep.subr.bf16.mxu1 %v1214_v39 }
 0x320   : > { %1239 = vmatpush1.bf16.msra.mxu1 %v1213_v41 }
 0x323   : > { %1440 = vmatmul.mubr.msk.bf16.vlgmr.msra.gmra.mxu1 %vm2197_vm13, %v1478_v11 }
 0x3e3   : > { %v1258_v53 = vpop.f32.mrf.mxu1 }
 0x3e4   : > { %v1279_v52 = vmul.f32 %v1272_v1, %v1258_v53 }
 0x3e5   : > { %v1260_v38 = vpop.f32.mrf.mxu1 }
 0x3e6   : > { %v1295_v10 = vadd.f32 %v1288_v2, %v1279_v52  ;;  %v1280_v35 = vmul.f32 %v1272_v1, %v1260_v38 }
 0x3e7   : > { %v1262_v21 = vpop.f32.mrf.mxu1 }
 0x3e8   : > { %vm1299_vm14 = vcmp.ge.f32.partialorder %v1295_v10, 0.0  ;;  %v1303_v3 = vmul.f32 0.2, %v1295_v10  ;;  %v1296_v25 = vadd.f32 %v1288_v2, %v1280_v35  ;;  %v1281_v32 = vmul.f32 %v1277_v61, %v1262_v21 }
 0x3e9   : > { %v1264_v17 = vpop.f32.mrf.mxu1 }
 0x3ea   : > { %v1307_v13 = vsel %vm1299_vm14, %v1295_v10, %v1303_v3  ;;  %vm1300_vm0 = vcmp.ge.f32.partialorder %v1296_v25, 0.0  ;;  %v1304_v23 = vmul.f32 0.2, %v1296_v25  ;;  %v1297_v45 = vadd.f32 %v1293_v33, %v1281_v32 }
 0x3eb   : > { %1311 = vst [vmem:[%s466_s24] sm:$0xff] %v1307_v13  ;;  %v1282_v15 = vmul.f32 %v1277_v61, %v1264_v17 }
 0x3ec   : > { %v1308_v4 = vsel %vm1300_vm0, %v1296_v25, %v1304_v23  ;;  %vm1301_vm12 = vcmp.ge.f32.partialorder %v1297_v45, 0.0  ;;  %v1305_v5 = vmul.f32 0.2, %v1297_v45 }
 0x3ed   : > { %1312 = vst [vmem:[%s466_s24 + $0x8] sm:$0xff] %v1308_v4  ;;  %v1298_v47 = vadd.f32 %v1293_v33, %v1282_v15 }
 0x3ee   : > { %v1309_v31 = vsel %vm1301_vm12, %v1297_v45, %v1305_v5 }
 0x3ef   : > { %1313 = vst [vmem:[%s466_s24 + $0x10] sm:$0xff] %v1309_v31  ;;  %vm1302_vm2 = vcmp.ge.f32.partialorder %v1298_v47, 0.0  ;;  %v1306_v36 = vmul.f32 0.2, %v1298_v47 }
 0x3f1   : > { %v1310_v44 = vsel %vm1302_vm2, %v1298_v47, %v1306_v36 }
 0x3f2   : > { %1314 = vst [vmem:[%s466_s24 + $0x18] sm:$0xff] %v1310_v44 }
 0x3f3 PF: > { %s21_s17 = sadd.s32 1, %s1485_s17  }
 0x3f4   : > { %p18_p4 = scmp.ge.s32.totalorder %s21_s17, 4  }
 0x3f6   :  { %20 = sbr.rel (!%p18_p4) target bundleno = 1 (0x1), region = 106 }

</bundles_post_ra>
